<compile_context>
chip_gen: v5e
topology: v5e:2x2
jax: 0.10.0
libtpu: 0.0.40
codegen_flags: <defaults>
</compile_context>

<pallas_src>
import jax
import jax.numpy as jnp
from jax.experimental import pallas as pl
from jax.experimental.pallas import tpu as pltpu

LANE = 128


def _round_up(a, b):
    return ((a + b - 1) // b) * b


def _pad_to(a, shape):
    pads = [(0, t - s) for s, t in zip(a.shape, shape)]
    return jnp.pad(a, pads)


# ----------------------------------------------------------------------------
# Fused kernel. Per edge tile i:
#   e_new   = (1+edge_eps)*e + MLP_e([x_src, x_dst, e])
#   agg    += one_hot(dst)^T-style scatter of e_new               (VMEM scratch)
# Epilogue (last tile):
#   x_new   = (1+node_eps)*x + MLP_n([x, agg])
# ----------------------------------------------------------------------------
def fused_meta_kernel(eps_ref,                                   # SMEM (1, 2)
                      x_ref, ea_ref, src_ref, dstc_ref, dstr_ref,
                      ew1s_ref, ew1d_ref, ew1e_ref, eb1_ref, ew2_ref, eb2_ref,
                      nw1x_ref, nw1a_ref, nb1_ref, nw2_ref, nb2_ref,
                      ea_out_ref, x_out_ref,
                      agg_ref, xw1s_ref, xw1d_ref):
    i = pl.program_id(0)
    n_tiles = pl.num_programs(0)
    edge_eps = eps_ref[0, 0]
    node_eps = eps_ref[0, 1]

    TE = ea_ref.shape[0]
    N_p = x_ref.shape[0]

    @pl.when(i == 0)
    def _init():
        agg_ref[...] = jnp.zeros_like(agg_ref)
        # Precompute x @ W1_src and x @ W1_dst once; reused by every edge tile
        # (gather + first-layer matmul then collapse into one matmul per tile).
        xw1s_ref[...] = jnp.dot(x_ref[...], ew1s_ref[...],
                                preferred_element_type=jnp.float32)
        xw1d_ref[...] = jnp.dot(x_ref[...], ew1d_ref[...],
                                preferred_element_type=jnp.float32)

    # One-hot gather / scatter masks for this edge tile.
    # Padded edges carry node id -1 -> all-zero rows/columns (no contribution).
    src = src_ref[...]                                            # (TE, 1) int32
    dst_c = dstc_ref[...]                                         # (TE, 1) int32
    dst_r = dstr_ref[...]                                         # (1, TE) int32
    node_iota_l = jax.lax.broadcasted_iota(jnp.int32, (TE, N_p), 1)
    oh_src = (node_iota_l == src).astype(jnp.float32)             # (TE, N_p)
    oh_dst_g = (node_iota_l == dst_c).astype(jnp.float32)         # (TE, N_p)
    node_iota_s = jax.lax.broadcasted_iota(jnp.int32, (N_p, TE), 0)
    oh_dst_s = (node_iota_s == dst_r).astype(jnp.float32)         # (N_p, TE)

    e = ea_ref[...]                                               # (TE, Fe_p)
    h = (jnp.dot(oh_src, xw1s_ref[...], preferred_element_type=jnp.float32)
         + jnp.dot(oh_dst_g, xw1d_ref[...], preferred_element_type=jnp.float32)
         + jnp.dot(e, ew1e_ref[...], preferred_element_type=jnp.float32)
         + eb1_ref[...])
    h = jnp.maximum(h, 0.0)
    msg = jnp.dot(h, ew2_ref[...], preferred_element_type=jnp.float32) + eb2_ref[...]
    e_new = (1.0 + edge_eps) * e + msg
    ea_out_ref[...] = e_new

    # Scatter-sum (segment-sum over destination nodes) on the MXU.
    agg_ref[...] += jnp.dot(oh_dst_s, e_new, preferred_element_type=jnp.float32)

    @pl.when(i == n_tiles - 1)
    def _epilogue():
        h2 = (jnp.dot(x_ref[...], nw1x_ref[...], preferred_element_type=jnp.float32)
              + jnp.dot(agg_ref[...], nw1a_ref[...], preferred_element_type=jnp.float32)
              + nb1_ref[...])
        h2 = jnp.maximum(h2, 0.0)
        upd = jnp.dot(h2, nw2_ref[...], preferred_element_type=jnp.float32) + nb2_ref[...]
        x_out_ref[...] = (1.0 + node_eps) * x_ref[...] + upd


def meta_layer_forward(x, edge_index, edge_attr, params, *, tile_edges=256):
    """Replicates MetaLayer.forward with MLP edge/node models (fused Pallas pass)."""
    N, Fn = x.shape
    E, Fe = edge_attr.shape
    H = params["eb1"].shape[-1]

    Fn_p = _round_up(Fn, LANE)
    Fe_p = _round_up(Fe, LANE)
    H_p = _round_up(H, LANE)
    N_p = _round_up(N, LANE)
    TE = tile_edges
    E_p = _round_up(max(E, TE), TE)
    n_tiles = E_p // TE

    # ---- pad activations / indices (padded edges get node id -1) -------------
    x_p = _pad_to(x.astype(jnp.float32), (N_p, Fn_p))
    ea_p = _pad_to(edge_attr.astype(jnp.float32), (E_p, Fe_p))
    src = edge_index[0].astype(jnp.int32)
    dst = edge_index[1].astype(jnp.int32)
    src_p = jnp.full((E_p,), -1, jnp.int32).at[:E].set(src)
    dst_p = jnp.full((E_p,), -1, jnp.int32).at[:E].set(dst)
    src_col = src_p.reshape(E_p, 1)
    dst_col = dst_p.reshape(E_p, 1)
    dst_row = dst_p.reshape(1, E_p)

    # ---- pad parameters to lane-dense shapes ---------------------------------
    ew1s = _pad_to(params["ew1_src"], (Fn_p, H_p))
    ew1d = _pad_to(params["ew1_dst"], (Fn_p, H_p))
    ew1e = _pad_to(params["ew1_edge"], (Fe_p, H_p))
    eb1 = _pad_to(params["eb1"], (1, H_p))
    ew2 = _pad_to(params["ew2"], (H_p, Fe_p))
    eb2 = _pad_to(params["eb2"], (1, Fe_p))
    nw1x = _pad_to(params["nw1_x"], (Fn_p, H_p))
    nw1a = _pad_to(params["nw1_agg"], (Fe_p, H_p))
    nb1 = _pad_to(params["nb1"], (1, H_p))
    nw2 = _pad_to(params["nw2"], (H_p, Fn_p))
    nb2 = _pad_to(params["nb2"], (1, Fn_p))

    eps = jnp.stack([params["edge_eps"][0], params["node_eps"][0]]).reshape(1, 2)

    resident = lambda bs: pl.BlockSpec(bs, lambda i: (0, 0))       # VMEM-resident

    grid_spec = pltpu.PrefetchScalarGridSpec(
        num_scalar_prefetch=0,
        grid=(n_tiles,),
        in_specs=[
            pl.BlockSpec(memory_space=pltpu.MemorySpace.SMEM),     # eps (shared)
            resident((N_p, Fn_p)),                                 # x
            pl.BlockSpec((TE, Fe_p), lambda i: (i, 0)),            # edge_attr tile
            pl.BlockSpec((TE, 1), lambda i: (i, 0)),               # src (col)
            pl.BlockSpec((TE, 1), lambda i: (i, 0)),               # dst (col)
            pl.BlockSpec((1, TE), lambda i: (0, i)),               # dst (row)
            resident((Fn_p, H_p)),                                 # ew1_src
            resident((Fn_p, H_p)),                                 # ew1_dst
            resident((Fe_p, H_p)),                                 # ew1_edge
            resident((1, H_p)),                                    # eb1
            resident((H_p, Fe_p)),                                 # ew2
            resident((1, Fe_p)),                                   # eb2
            resident((Fn_p, H_p)),                                 # nw1_x
            resident((Fe_p, H_p)),                                 # nw1_agg
            resident((1, H_p)),                                    # nb1
            resident((H_p, Fn_p)),                                 # nw2
            resident((1, Fn_p)),                                   # nb2
        ],
        out_specs=[
            pl.BlockSpec((TE, Fe_p), lambda i: (i, 0)),            # edge_attr_new
            pl.BlockSpec((N_p, Fn_p), lambda i: (0, 0)),           # x_new (resident)
        ],
        scratch_shapes=[
            pltpu.VMEM((N_p, Fe_p), jnp.float32),                  # agg accumulator
            pltpu.VMEM((N_p, H_p), jnp.float32),                   # x @ W1_src
            pltpu.VMEM((N_p, H_p), jnp.float32),                   # x @ W1_dst
        ],
    )

    ea_new_p, x_new_p = pl.pallas_call(
        fused_meta_kernel,
        out_shape=(jax.ShapeDtypeStruct((E_p, Fe_p), jnp.float32),
                   jax.ShapeDtypeStruct((N_p, Fn_p), jnp.float32)),
        grid_spec=grid_spec,
        # Grid axis carries the agg accumulator + resident x_new -> "arbitrary".
        # (Trade-off vs. v7x 2-TC sharding; fusion removes the largest HBM
        #  round-trip which dominates for this memory-bound layer.)
        compiler_params=pltpu.CompilerParams(
            dimension_semantics=("arbitrary",),
            vmem_limit_bytes=48 * 1024 * 1024,
        ),
        # Write edge_attr_new in place over the padded edge_attr input.
        input_output_aliases={2: 0},
    )(eps, x_p, ea_p, src_col, dst_col, dst_row,
      ew1s, ew1d, ew1e, eb1, ew2, eb2,
      nw1x, nw1a, nb1, nw2, nb2)

    return x_new_p[:N, :Fn], ea_new_p[:E, :Fe]


def make_params(key, Fn, Fe, H):
    ks = jax.random.split(key, 10)
    s = 0.1
    return {
        # edge model MLP: Lin(2*Fn + Fe -> H), ReLU, Lin(H -> Fe)
        "ew1_src":  s * jax.random.normal(ks[0], (Fn, H), jnp.float32),
        "ew1_dst":  s * jax.random.normal(ks[1], (Fn, H), jnp.float32),
        "ew1_edge": s * jax.random.normal(ks[2], (Fe, H), jnp.float32),
        "eb1":      s * jax.random.normal(ks[3], (1, H), jnp.float32),
        "ew2":      s * jax.random.normal(ks[4], (H, Fe), jnp.float32),
        "eb2":      s * jax.random.normal(ks[5], (1, Fe), jnp.float32),
        # node model MLP: Lin(Fn + Fe -> H), ReLU, Lin(H -> Fn)
        "nw1_x":    s * jax.random.normal(ks[6], (Fn, H), jnp.float32),
        "nw1_agg":  s * jax.random.normal(ks[7], (Fe, H), jnp.float32),
        "nb1":      s * jax.random.normal(ks[8], (1, H), jnp.float32),
        "nw2":      s * jax.random.normal(ks[9], (H, Fn), jnp.float32),
        "nb2":      jnp.zeros((1, Fn), jnp.float32),
        # MetaLayer.__init__: both eps initialized to 0
        "edge_eps": jnp.zeros((1,), jnp.float32),
        "node_eps": jnp.zeros((1,), jnp.float32),
    }


def reference_forward(x, edge_index, edge_attr, params):
    """Plain-JAX reference of the same forward (correctness check)."""
    src, dst = edge_index[0], edge_index[1]
    xs, xd = x[src], x[dst]
    h = jnp.maximum(xs @ params["ew1_src"] + xd @ params["ew1_dst"]
                    + edge_attr @ params["ew1_edge"] + params["eb1"], 0.0)
    msg = h @ params["ew2"] + params["eb2"]
    ea_new = (1.0 + params["edge_eps"]) * edge_attr + msg

    agg = jax.ops.segment_sum(ea_new, dst, num_segments=x.shape[0])
    h2 = jnp.maximum(x @ params["nw1_x"] + agg @ params["nw1_agg"] + params["nb1"], 0.0)
    upd = h2 @ params["nw2"] + params["nb2"]
    x_new = (1.0 + params["node_eps"]) * x + upd
    return x_new, ea_new


if __name__ == "__main__":
    # Small graph, but big enough to exercise multiple edge tiles (E_p=512, 2 tiles)
    # plus edge/node padding and the -1 padded-edge masking.
    N, E, Fn, Fe, H = 20, 300, 8, 8, 32

    key = jax.random.PRNGKey(0)
    k_x, k_e, k_src, k_dst, k_p = jax.random.split(key, 5)

    x = jax.random.normal(k_x, (N, Fn), jnp.float32)
    edge_attr = jax.random.normal(k_e, (E, Fe), jnp.float32)
    edge_index = jnp.stack([
        jax.random.randint(k_src, (E,), 0, N, jnp.int32),
        jax.random.randint(k_dst, (E,), 0, N, jnp.int32),
    ], axis=0)  # (2, E)

    params = make_params(k_p, Fn, Fe, H)
    # Exercise the learnable eps path with non-trivial values.
    params["edge_eps"] = jnp.array([0.05], jnp.float32)
    params["node_eps"] = jnp.array([-0.03], jnp.float32)

    x_new, ea_new = meta_layer_forward(x, edge_index, edge_attr, params, tile_edges=256)
    jax.block_until_ready((x_new, ea_new))

    x_ref, ea_ref = reference_forward(x, edge_index, edge_attr, params)
    assert x_new.shape == x_ref.shape and ea_new.shape == ea_ref.shape
    assert jnp.allclose(x_new, x_ref, atol=1e-4, rtol=1e-4)
    assert jnp.allclose(ea_new, ea_ref, atol=1e-4, rtol=1e-4)

    print("KERNEL_OK")
</pallas_src>

<mosaic_0001>
module attributes {stable_mosaic.version = 11 : i64} {
  func.func @fused_meta_kernel(%arg0: i32, %arg1: memref<1x2xf32, #tpu.memory_space<smem>>, %arg2: memref<128x128xf32, #tpu.memory_space<vmem>>, %arg3: memref<256x128xf32, #tpu.memory_space<vmem>>, %arg4: memref<256x1xi32, #tpu.memory_space<vmem>>, %arg5: memref<256x1xi32, #tpu.memory_space<vmem>>, %arg6: memref<1x256xi32, #tpu.memory_space<vmem>>, %arg7: memref<128x128xf32, #tpu.memory_space<vmem>>, %arg8: memref<128x128xf32, #tpu.memory_space<vmem>>, %arg9: memref<128x128xf32, #tpu.memory_space<vmem>>, %arg10: memref<1x128xf32, #tpu.memory_space<vmem>>, %arg11: memref<128x128xf32, #tpu.memory_space<vmem>>, %arg12: memref<1x128xf32, #tpu.memory_space<vmem>>, %arg13: memref<128x128xf32, #tpu.memory_space<vmem>>, %arg14: memref<128x128xf32, #tpu.memory_space<vmem>>, %arg15: memref<1x128xf32, #tpu.memory_space<vmem>>, %arg16: memref<128x128xf32, #tpu.memory_space<vmem>>, %arg17: memref<1x128xf32, #tpu.memory_space<vmem>>, %arg18: memref<256x128xf32, #tpu.memory_space<vmem>>, %arg19: memref<128x128xf32, #tpu.memory_space<vmem>>, %arg20: memref<128x128xf32, #tpu.memory_space<vmem>>, %arg21: memref<128x128xf32, #tpu.memory_space<vmem>>, %arg22: memref<128x128xf32, #tpu.memory_space<vmem>>) attributes {dimension_semantics = [#tpu.dimension_semantics<arbitrary>], iteration_bounds = array<i64: 2>, scalar_prefetch = 0 : i64, scratch_operands = 3 : i64, tpu.core_type = #tpu.core_type<tc>, window_params = [{transform_indices = @transform_0, window_bounds = array<i64: 1, 2>}, {pipeline_mode = #tpu.pipeline_mode<synchronous>, transform_indices = @transform_1, window_bounds = array<i64: 128, 128>}, {transform_indices = @transform_2, window_bounds = array<i64: 256, 128>}, {transform_indices = @transform_3, window_bounds = array<i64: 256, 1>}, {transform_indices = @transform_4, window_bounds = array<i64: 256, 1>}, {transform_indices = @transform_5, window_bounds = array<i64: 1, 256>}, {pipeline_mode = #tpu.pipeline_mode<synchronous>, transform_indices = @transform_6, window_bounds = array<i64: 128, 128>}, {pipeline_mode = #tpu.pipeline_mode<synchronous>, transform_indices = @transform_7, window_bounds = array<i64: 128, 128>}, {pipeline_mode = #tpu.pipeline_mode<synchronous>, transform_indices = @transform_8, window_bounds = array<i64: 128, 128>}, {pipeline_mode = #tpu.pipeline_mode<synchronous>, transform_indices = @transform_9, window_bounds = array<i64: 1, 128>}, {pipeline_mode = #tpu.pipeline_mode<synchronous>, transform_indices = @transform_10, window_bounds = array<i64: 128, 128>}, {pipeline_mode = #tpu.pipeline_mode<synchronous>, transform_indices = @transform_11, window_bounds = array<i64: 1, 128>}, {pipeline_mode = #tpu.pipeline_mode<synchronous>, transform_indices = @transform_12, window_bounds = array<i64: 128, 128>}, {pipeline_mode = #tpu.pipeline_mode<synchronous>, transform_indices = @transform_13, window_bounds = array<i64: 128, 128>}, {pipeline_mode = #tpu.pipeline_mode<synchronous>, transform_indices = @transform_14, window_bounds = array<i64: 1, 128>}, {pipeline_mode = #tpu.pipeline_mode<synchronous>, transform_indices = @transform_15, window_bounds = array<i64: 128, 128>}, {pipeline_mode = #tpu.pipeline_mode<synchronous>, transform_indices = @transform_16, window_bounds = array<i64: 1, 128>}, {transform_indices = @transform_17, window_bounds = array<i64: 256, 128>}, {pipeline_mode = #tpu.pipeline_mode<synchronous>, transform_indices = @transform_18, window_bounds = array<i64: 128, 128>}]} {
    %c0 = arith.constant 0 : index
    %c0_0 = arith.constant 0 : index
    %0 = memref.load %arg1[%c0, %c0_0] : memref<1x2xf32, #tpu.memory_space<smem>>
    %c0_1 = arith.constant 0 : index
    %c1 = arith.constant 1 : index
    %1 = memref.load %arg1[%c0_1, %c1] : memref<1x2xf32, #tpu.memory_space<smem>>
    %c0_i32 = arith.constant 0 : i32
    %2 = arith.cmpi eq, %arg0, %c0_i32 : i32
    %3 = arith.extui %2 : i1 to i32
    %c0_i32_2 = arith.constant 0 : i32
    %4 = arith.cmpi ne, %3, %c0_i32_2 : i32
    scf.if %4 {
      %cst_36 = arith.constant 0.000000e+00 : f32
      %53 = vector.broadcast %cst_36 : f32 to vector<128x128xf32>
      %c0_37 = arith.constant 0 : index
      %c0_38 = arith.constant 0 : index
      %54 = vector.load %arg20[%c0_37, %c0_38] : memref<128x128xf32, #tpu.memory_space<vmem>>, vector<128x128xf32>
      tpu.vector_store %arg20[%c0_37, %c0_38], %53 {strides = array<i32>} : memref<128x128xf32, #tpu.memory_space<vmem>>, vector<128x128xf32>,
      %c0_39 = arith.constant 0 : index
      %c0_40 = arith.constant 0 : index
      %55 = vector.load %arg2[%c0_39, %c0_40] : memref<128x128xf32, #tpu.memory_space<vmem>>, vector<128x128xf32>
      %c0_41 = arith.constant 0 : index
      %c0_42 = arith.constant 0 : index
      %56 = vector.load %arg7[%c0_41, %c0_42] : memref<128x128xf32, #tpu.memory_space<vmem>>, vector<128x128xf32>
      %cst_43 = arith.constant dense<0.000000e+00> : vector<128x128xf32>
      %57 = tpu.matmul %55, %56, %cst_43 {dimension_numbers = #tpu.dot_dimension_numbers<[1], [0], [0], [1], [0, 0, 1, 1], [], []>} : vector<128x128xf32>, vector<128x128xf32>, vector<128x128xf32> -> vector<128x128xf32>
      %c0_44 = arith.constant 0 : index
      %c0_45 = arith.constant 0 : index
      %58 = vector.load %arg21[%c0_44, %c0_45] : memref<128x128xf32, #tpu.memory_space<vmem>>, vector<128x128xf32>
      tpu.vector_store %arg21[%c0_44, %c0_45], %57 {strides = array<i32>} : memref<128x128xf32, #tpu.memory_space<vmem>>, vector<128x128xf32>,
      %c0_46 = arith.constant 0 : index
      %c0_47 = arith.constant 0 : index
      %59 = vector.load %arg2[%c0_46, %c0_47] : memref<128x128xf32, #tpu.memory_space<vmem>>, vector<128x128xf32>
      %c0_48 = arith.constant 0 : index
      %c0_49 = arith.constant 0 : index
      %60 = vector.load %arg8[%c0_48, %c0_49] : memref<128x128xf32, #tpu.memory_space<vmem>>, vector<128x128xf32>
      %cst_50 = arith.constant dense<0.000000e+00> : vector<128x128xf32>
      %61 = tpu.matmul %59, %60, %cst_50 {dimension_numbers = #tpu.dot_dimension_numbers<[1], [0], [0], [1], [0, 0, 1, 1], [], []>} : vector<128x128xf32>, vector<128x128xf32>, vector<128x128xf32> -> vector<128x128xf32>
      %c0_51 = arith.constant 0 : index
      %c0_52 = arith.constant 0 : index
      %62 = vector.load %arg22[%c0_51, %c0_52] : memref<128x128xf32, #tpu.memory_space<vmem>>, vector<128x128xf32>
      tpu.vector_store %arg22[%c0_51, %c0_52], %61 {strides = array<i32>} : memref<128x128xf32, #tpu.memory_space<vmem>>, vector<128x128xf32>,
    } else {
    }
    %c0_3 = arith.constant 0 : index
    %c0_4 = arith.constant 0 : index
    %5 = vector.load %arg4[%c0_3, %c0_4] : memref<256x1xi32, #tpu.memory_space<vmem>>, vector<256x1xi32>
    %c0_5 = arith.constant 0 : index
    %c0_6 = arith.constant 0 : index
    %6 = vector.load %arg5[%c0_5, %c0_6] : memref<256x1xi32, #tpu.memory_space<vmem>>, vector<256x1xi32>
    %c0_7 = arith.constant 0 : index
    %c0_8 = arith.constant 0 : index
    %7 = vector.load %arg6[%c0_7, %c0_8] : memref<1x256xi32, #tpu.memory_space<vmem>>, vector<1x256xi32>
    %8 = tpu.iota {dimensions = array<i32: 1>} : vector<256x128xi32>
    %9 = vector.broadcast %5 : vector<256x1xi32> to vector<256x128xi32>
    %10 = arith.cmpi eq, %8, %9 : vector<256x128xi32>
    %11 = arith.extui %10 : vector<256x128xi1> to vector<256x128xi32>
    %12 = arith.sitofp %11 : vector<256x128xi32> to vector<256x128xf32>
    %13 = vector.broadcast %6 : vector<256x1xi32> to vector<256x128xi32>
    %14 = arith.cmpi eq, %8, %13 : vector<256x128xi32>
    %15 = arith.extui %14 : vector<256x128xi1> to vector<256x128xi32>
    %16 = arith.sitofp %15 : vector<256x128xi32> to vector<256x128xf32>
    %17 = tpu.iota {dimensions = array<i32: 0>} : vector<128x256xi32>
    %18 = vector.broadcast %7 : vector<1x256xi32> to vector<128x256xi32>
    %19 = arith.cmpi eq, %17, %18 : vector<128x256xi32>
    %20 = arith.extui %19 : vector<128x256xi1> to vector<128x256xi32>
    %21 = arith.sitofp %20 : vector<128x256xi32> to vector<128x256xf32>
    %c0_9 = arith.constant 0 : index
    %c0_10 = arith.constant 0 : index
    %22 = vector.load %arg3[%c0_9, %c0_10] : memref<256x128xf32, #tpu.memory_space<vmem>>, vector<256x128xf32>
    %c0_11 = arith.constant 0 : index
    %c0_12 = arith.constant 0 : index
    %23 = vector.load %arg21[%c0_11, %c0_12] : memref<128x128xf32, #tpu.memory_space<vmem>>, vector<128x128xf32>
    %cst = arith.constant dense<0.000000e+00> : vector<256x128xf32>
    %24 = tpu.matmul %12, %23, %cst {dimension_numbers = #tpu.dot_dimension_numbers<[1], [0], [0], [1], [0, 0, 1, 1], [], []>} : vector<256x128xf32>, vector<128x128xf32>, vector<256x128xf32> -> vector<256x128xf32>
    %c0_13 = arith.constant 0 : index
    %c0_14 = arith.constant 0 : index
    %25 = vector.load %arg22[%c0_13, %c0_14] : memref<128x128xf32, #tpu.memory_space<vmem>>, vector<128x128xf32>
    %cst_15 = arith.constant dense<0.000000e+00> : vector<256x128xf32>
    %26 = tpu.matmul %16, %25, %cst_15 {dimension_numbers = #tpu.dot_dimension_numbers<[1], [0], [0], [1], [0, 0, 1, 1], [], []>} : vector<256x128xf32>, vector<128x128xf32>, vector<256x128xf32> -> vector<256x128xf32>
    %27 = arith.addf %24, %26 : vector<256x128xf32>
    %c0_16 = arith.constant 0 : index
    %c0_17 = arith.constant 0 : index
    %28 = vector.load %arg9[%c0_16, %c0_17] : memref<128x128xf32, #tpu.memory_space<vmem>>, vector<128x128xf32>
    %cst_18 = arith.constant dense<0.000000e+00> : vector<256x128xf32>
    %29 = tpu.matmul %22, %28, %cst_18 {dimension_numbers = #tpu.dot_dimension_numbers<[1], [0], [0], [1], [0, 0, 1, 1], [], []>} : vector<256x128xf32>, vector<128x128xf32>, vector<256x128xf32> -> vector<256x128xf32>
    %30 = arith.addf %27, %29 : vector<256x128xf32>
    %c0_19 = arith.constant 0 : index
    %c0_20 = arith.constant 0 : index
    %31 = vector.load %arg10[%c0_19, %c0_20] : memref<1x128xf32, #tpu.memory_space<vmem>>, vector<1x128xf32>
    %32 = vector.broadcast %31 : vector<1x128xf32> to vector<256x128xf32>
    %33 = arith.addf %30, %32 : vector<256x128xf32>
    %cst_21 = arith.constant 0.000000e+00 : f32
    %34 = vector.broadcast %cst_21 : f32 to vector<256x128xf32>
    %35 = arith.maximumf %33, %34 : vector<256x128xf32>
    %c0_22 = arith.constant 0 : index
    %c0_23 = arith.constant 0 : index
    %36 = vector.load %arg11[%c0_22, %c0_23] : memref<128x128xf32, #tpu.memory_space<vmem>>, vector<128x128xf32>
    %cst_24 = arith.constant dense<0.000000e+00> : vector<256x128xf32>
    %37 = tpu.matmul %35, %36, %cst_24 {dimension_numbers = #tpu.dot_dimension_numbers<[1], [0], [0], [1], [0, 0, 1, 1], [], []>} : vector<256x128xf32>, vector<128x128xf32>, vector<256x128xf32> -> vector<256x128xf32>
    %c0_25 = arith.constant 0 : index
    %c0_26 = arith.constant 0 : index
    %38 = vector.load %arg12[%c0_25, %c0_26] : memref<1x128xf32, #tpu.memory_space<vmem>>, vector<1x128xf32>
    %39 = vector.broadcast %38 : vector<1x128xf32> to vector<256x128xf32>
    %40 = arith.addf %37, %39 : vector<256x128xf32>
    %cst_27 = arith.constant 1.000000e+00 : f32
    %41 = arith.addf %cst_27, %0 : f32
    %42 = vector.broadcast %41 : f32 to vector<256x128xf32>
    %43 = arith.mulf %42, %22 : vector<256x128xf32>
    %44 = arith.addf %43, %40 : vector<256x128xf32>
    %c0_28 = arith.constant 0 : index
    %c0_29 = arith.constant 0 : index
    %45 = vector.load %arg18[%c0_28, %c0_29] : memref<256x128xf32, #tpu.memory_space<vmem>>, vector<256x128xf32>
    tpu.vector_store %arg18[%c0_28, %c0_29], %44 {strides = array<i32>} : memref<256x128xf32, #tpu.memory_space<vmem>>, vector<256x128xf32>,
    %c0_30 = arith.constant 0 : index
    %c0_31 = arith.constant 0 : index
    %46 = vector.load %arg20[%c0_30, %c0_31] : memref<128x128xf32, #tpu.memory_space<vmem>>, vector<128x128xf32>
    %cst_32 = arith.constant dense<0.000000e+00> : vector<128x128xf32>
    %47 = tpu.matmul %21, %44, %cst_32 {dimension_numbers = #tpu.dot_dimension_numbers<[1], [0], [0], [1], [0, 0, 1, 1], [], []>} : vector<128x256xf32>, vector<256x128xf32>, vector<128x128xf32> -> vector<128x128xf32>
    %48 = arith.addf %46, %47 : vector<128x128xf32>
    %c0_33 = arith.constant 0 : index
    %c0_34 = arith.constant 0 : index
    %49 = vector.load %arg20[%c0_33, %c0_34] : memref<128x128xf32, #tpu.memory_space<vmem>>, vector<128x128xf32>
    tpu.vector_store %arg20[%c0_33, %c0_34], %48 {strides = array<i32>} : memref<128x128xf32, #tpu.memory_space<vmem>>, vector<128x128xf32>,
    %c1_i32 = arith.constant 1 : i32
    %50 = arith.cmpi eq, %arg0, %c1_i32 : i32
    %51 = arith.extui %50 : i1 to i32
    %c0_i32_35 = arith.constant 0 : i32
    %52 = arith.cmpi ne, %51, %c0_i32_35 : i32
    scf.if %52 {
      %c0_36 = arith.constant 0 : index
      %c0_37 = arith.constant 0 : index
      %53 = vector.load %arg2[%c0_36, %c0_37] : memref<128x128xf32, #tpu.memory_space<vmem>>, vector<128x128xf32>
      %c0_38 = arith.constant 0 : index
      %c0_39 = arith.constant 0 : index
      %54 = vector.load %arg13[%c0_38, %c0_39] : memref<128x128xf32, #tpu.memory_space<vmem>>, vector<128x128xf32>
      %cst_40 = arith.constant dense<0.000000e+00> : vector<128x128xf32>
      %55 = tpu.matmul %53, %54, %cst_40 {dimension_numbers = #tpu.dot_dimension_numbers<[1], [0], [0], [1], [0, 0, 1, 1], [], []>} : vector<128x128xf32>, vector<128x128xf32>, vector<128x128xf32> -> vector<128x128xf32>
      %c0_41 = arith.constant 0 : index
      %c0_42 = arith.constant 0 : index
      %56 = vector.load %arg20[%c0_41, %c0_42] : memref<128x128xf32, #tpu.memory_space<vmem>>, vector<128x128xf32>
      %c0_43 = arith.constant 0 : index
      %c0_44 = arith.constant 0 : index
      %57 = vector.load %arg14[%c0_43, %c0_44] : memref<128x128xf32, #tpu.memory_space<vmem>>, vector<128x128xf32>
      %cst_45 = arith.constant dense<0.000000e+00> : vector<128x128xf32>
      %58 = tpu.matmul %56, %57, %cst_45 {dimension_numbers = #tpu.dot_dimension_numbers<[1], [0], [0], [1], [0, 0, 1, 1], [], []>} : vector<128x128xf32>, vector<128x128xf32>, vector<128x128xf32> -> vector<128x128xf32>
      %59 = arith.addf %55, %58 : vector<128x128xf32>
      %c0_46 = arith.constant 0 : index
      %c0_47 = arith.constant 0 : index
      %60 = vector.load %arg15[%c0_46, %c0_47] : memref<1x128xf32, #tpu.memory_space<vmem>>, vector<1x128xf32>
      %61 = vector.broadcast %60 : vector<1x128xf32> to vector<128x128xf32>
      %62 = arith.addf %59, %61 : vector<128x128xf32>
      %cst_48 = arith.constant 0.000000e+00 : f32
      %63 = vector.broadcast %cst_48 : f32 to vector<128x128xf32>
      %64 = arith.maximumf %62, %63 : vector<128x128xf32>
      %c0_49 = arith.constant 0 : index
      %c0_50 = arith.constant 0 : index
      %65 = vector.load %arg16[%c0_49, %c0_50] : memref<128x128xf32, #tpu.memory_space<vmem>>, vector<128x128xf32>
      %cst_51 = arith.constant dense<0.000000e+00> : vector<128x128xf32>
      %66 = tpu.matmul %64, %65, %cst_51 {dimension_numbers = #tpu.dot_dimension_numbers<[1], [0], [0], [1], [0, 0, 1, 1], [], []>} : vector<128x128xf32>, vector<128x128xf32>, vector<128x128xf32> -> vector<128x128xf32>
      %c0_52 = arith.constant 0 : index
      %c0_53 = arith.constant 0 : index
      %67 = vector.load %arg17[%c0_52, %c0_53] : memref<1x128xf32, #tpu.memory_space<vmem>>, vector<1x128xf32>
      %68 = vector.broadcast %67 : vector<1x128xf32> to vector<128x128xf32>
      %69 = arith.addf %66, %68 : vector<128x128xf32>
      %cst_54 = arith.constant 1.000000e+00 : f32
      %70 = arith.addf %cst_54, %1 : f32
      %c0_55 = arith.constant 0 : index
      %c0_56 = arith.constant 0 : index
      %71 = vector.load %arg2[%c0_55, %c0_56] : memref<128x128xf32, #tpu.memory_space<vmem>>, vector<128x128xf32>
      %72 = vector.broadcast %70 : f32 to vector<128x128xf32>
      %73 = arith.mulf %72, %71 : vector<128x128xf32>
      %74 = arith.addf %73, %69 : vector<128x128xf32>
      %c0_57 = arith.constant 0 : index
      %c0_58 = arith.constant 0 : index
      %75 = vector.load %arg19[%c0_57, %c0_58] : memref<128x128xf32, #tpu.memory_space<vmem>>, vector<128x128xf32>
      tpu.vector_store %arg19[%c0_57, %c0_58], %74 {strides = array<i32>} : memref<128x128xf32, #tpu.memory_space<vmem>>, vector<128x128xf32>,
    } else {
    }
    return
  }
  func.func @transform_0(%arg0: i32) -> (i32, i32) {
    %c0_i32 = arith.constant 0 : i32
    %c0_i32_0 = arith.constant 0 : i32
    %c0_i32_1 = arith.constant 0 : i32
    return %c0_i32, %c0_i32_0 : i32, i32
  }
  func.func @transform_1(%arg0: i32) -> (i32, i32) {
    %c0_i32 = arith.constant 0 : i32
    %c0_i32_0 = arith.constant 0 : i32
    %c0_i32_1 = arith.constant 0 : i32
    return %c0_i32, %c0_i32_0 : i32, i32
  }
  func.func @transform_2(%arg0: i32) -> (i32, i32) {
    %c0_i32 = arith.constant 0 : i32
    %c0_i32_0 = arith.constant 0 : i32
    return %arg0, %c0_i32 : i32, i32
  }
  func.func @transform_3(%arg0: i32) -> (i32, i32) {
    %c0_i32 = arith.constant 0 : i32
    %c0_i32_0 = arith.constant 0 : i32
    return %arg0, %c0_i32 : i32, i32
  }
  func.func @transform_4(%arg0: i32) -> (i32, i32) {
    %c0_i32 = arith.constant 0 : i32
    %c0_i32_0 = arith.constant 0 : i32
    return %arg0, %c0_i32 : i32, i32
  }
  func.func @transform_5(%arg0: i32) -> (i32, i32) {
    %c0_i32 = arith.constant 0 : i32
    %c0_i32_0 = arith.constant 0 : i32
    return %c0_i32, %arg0 : i32, i32
  }
  func.func @transform_6(%arg0: i32) -> (i32, i32) {
    %c0_i32 = arith.constant 0 : i32
    %c0_i32_0 = arith.constant 0 : i32
    %c0_i32_1 = arith.constant 0 : i32
    return %c0_i32, %c0_i32_0 : i32, i32
  }
  func.func @transform_7(%arg0: i32) -> (i32, i32) {
    %c0_i32 = arith.constant 0 : i32
    %c0_i32_0 = arith.constant 0 : i32
    %c0_i32_1 = arith.constant 0 : i32
    return %c0_i32, %c0_i32_0 : i32, i32
  }
  func.func @transform_8(%arg0: i32) -> (i32, i32) {
    %c0_i32 = arith.constant 0 : i32
    %c0_i32_0 = arith.constant 0 : i32
    %c0_i32_1 = arith.constant 0 : i32
    return %c0_i32, %c0_i32_0 : i32, i32
  }
  func.func @transform_9(%arg0: i32) -> (i32, i32) {
    %c0_i32 = arith.constant 0 : i32
    %c0_i32_0 = arith.constant 0 : i32
    %c0_i32_1 = arith.constant 0 : i32
    return %c0_i32, %c0_i32_0 : i32, i32
  }
  func.func @transform_10(%arg0: i32) -> (i32, i32) {
    %c0_i32 = arith.constant 0 : i32
    %c0_i32_0 = arith.constant 0 : i32
    %c0_i32_1 = arith.constant 0 : i32
    return %c0_i32, %c0_i32_0 : i32, i32
  }
  func.func @transform_11(%arg0: i32) -> (i32, i32) {
    %c0_i32 = arith.constant 0 : i32
    %c0_i32_0 = arith.constant 0 : i32
    %c0_i32_1 = arith.constant 0 : i32
    return %c0_i32, %c0_i32_0 : i32, i32
  }
  func.func @transform_12(%arg0: i32) -> (i32, i32) {
    %c0_i32 = arith.constant 0 : i32
    %c0_i32_0 = arith.constant 0 : i32
    %c0_i32_1 = arith.constant 0 : i32
    return %c0_i32, %c0_i32_0 : i32, i32
  }
  func.func @transform_13(%arg0: i32) -> (i32, i32) {
    %c0_i32 = arith.constant 0 : i32
    %c0_i32_0 = arith.constant 0 : i32
    %c0_i32_1 = arith.constant 0 : i32
    return %c0_i32, %c0_i32_0 : i32, i32
  }
  func.func @transform_14(%arg0: i32) -> (i32, i32) {
    %c0_i32 = arith.constant 0 : i32
    %c0_i32_0 = arith.constant 0 : i32
    %c0_i32_1 = arith.constant 0 : i32
    return %c0_i32, %c0_i32_0 : i32, i32
  }
  func.func @transform_15(%arg0: i32) -> (i32, i32) {
    %c0_i32 = arith.constant 0 : i32
    %c0_i32_0 = arith.constant 0 : i32
    %c0_i32_1 = arith.constant 0 : i32
    return %c0_i32, %c0_i32_0 : i32, i32
  }
  func.func @transform_16(%arg0: i32) -> (i32, i32) {
    %c0_i32 = arith.constant 0 : i32
    %c0_i32_0 = arith.constant 0 : i32
    %c0_i32_1 = arith.constant 0 : i32
    return %c0_i32, %c0_i32_0 : i32, i32
  }
  func.func @transform_17(%arg0: i32) -> (i32, i32) {
    %c0_i32 = arith.constant 0 : i32
    %c0_i32_0 = arith.constant 0 : i32
    return %arg0, %c0_i32 : i32, i32
  }
  func.func @transform_18(%arg0: i32) -> (i32, i32) {
    %c0_i32 = arith.constant 0 : i32
    %c0_i32_0 = arith.constant 0 : i32
    %c0_i32_1 = arith.constant 0 : i32
    return %c0_i32, %c0_i32_0 : i32, i32
  }
}

</mosaic_0001>

<bundles_post_ra>
// kernel: tpu_custom_call.1
= control target key start
LH: loop header
LB: loop body
LE: loop exit
PB: predicated region body
PF: predicated region fallthrough
CT: control target
= control target key end

     0   :  { %s5142_s0 = inlined_call_operand.vmem [shape: f32[1,2], index: 0, kind: input, shape index: {}]   ;;  %s5143_s1 = inlined_call_operand.vmem [shape: f32[128,128], index: 1, kind: input, shape index: {}]   ;;  %s5144_s2 = inlined_call_operand.hbm [shape: f32[512,128], index: 2, kind: input, shape index: {}, may-alias: {2,17}]   ;;  %s5145_s3 = inlined_call_operand.vmem [shape: s32[512,1], index: 3, kind: input, shape index: {}]   ;;  %s5146_s4 = inlined_call_operand.vmem [shape: s32[512,1], index: 4, kind: input, shape index: {}]   ;;  %s5147_s5 = inlined_call_operand.vmem [shape: s32[1,512], index: 5, kind: input, shape index: {}]   ;;  %s5148_s6 = inlined_call_operand.vmem [shape: f32[128,128], index: 6, kind: input, shape index: {}]   ;;  %s5149_s7 = inlined_call_operand.vmem [shape: f32[128,128], index: 7, kind: input, shape index: {}]   ;;  %s5150_s8 = inlined_call_operand.vmem [shape: f32[128,128], index: 8, kind: input, shape index: {}]   ;;  %s5151_s9 = inlined_call_operand.vmem [shape: f32[1,128], index: 9, kind: input, shape index: {}]   ;;  %s5152_s10 = inlined_call_operand.vmem [shape: f32[128,128], index: 10, kind: input, shape index: {}]   ;;  %s5153_s11 = inlined_call_operand.vmem [shape: f32[1,128], index: 11, kind: input, shape index: {}]   ;;  %s5154_s12 = inlined_call_operand.vmem [shape: f32[128,128], index: 12, kind: input, shape index: {}]   ;;  %s5155_s13 = inlined_call_operand.vmem [shape: f32[128,128], index: 13, kind: input, shape index: {}]   ;;  %s5156_s14 = inlined_call_operand.vmem [shape: f32[1,128], index: 14, kind: input, shape index: {}]   ;;  %s5157_s15 = inlined_call_operand.vmem [shape: f32[128,128], index: 15, kind: input, shape index: {}]   ;;  %s5158_s16 = inlined_call_operand.vmem [shape: f32[1,128], index: 16, kind: input, shape index: {}]   ;;  %s5159_s17 = inlined_call_operand.hbm [shape: f32[512,128], index: 17, kind: output, shape index: {0}, may-alias: {2,17}]   ;;  %s5160_s18 = inlined_call_operand.hbm [shape: f32[128,128], index: 18, kind: output, shape index: {1}]  }
   0x1   :  { %5183 = sst [smem:[#allocation27_spill]] %s5142_s0 }
   0x2   :  { %5184 = sst [smem:[#allocation28_spill]] %s5143_s1 }
   0x3   :  { %5185 = sst [smem:[#allocation29_spill]] %s5144_s2 }
   0x4   :  { %5186 = sst [smem:[#allocation30_spill]] %s5145_s3 }
   0x5   :  { %5187 = sst [smem:[#allocation31_spill]] %s5154_s12 }
   0x6   :  { %5188 = sst [smem:[#allocation32_spill]] %s5156_s14 }
   0x7   :  { %5189 = sst [smem:[#allocation33_spill]] %s5157_s15 }
   0x8   :  { %5190 = sst [smem:[#allocation34_spill]] %s5158_s16 }
   0x9   :  { %5191 = sst [smem:[#allocation35_spill]] %s5159_s17 }
   0xa   :  { %5192 = sst [smem:[#allocation36_spill]] %s5160_s18 }
   0xb   :  { %24 = vsyncpa [#allocation8], 0 }
   0xc   :  { %25 = vsyncpa [#allocation6], 0 }
   0xd   :  { %27 = vsyncpa [#allocation6 + $0x1], 0 }
   0xe   :  { %28 = vsyncpa [#allocation7], 0 }
   0xf   :  { %30 = vsyncpa [#allocation7 + $0x1], 0 }
  0x10   :  { %31 = vsyncpa [#allocation12], 0  ;;  %s3608_s27 = smov 0   ;;  %s3610_s28 = smov 0  }
  0x11   :  { %s3612_s29 = smov 0   ;;  %s3614_s30 = smov 0  }
  0x12 LB: > { %5193 = sst [smem:[#allocation17_spill]] %s3490_s27  ;;  %s3629_s0 = sadd.s32 4294967295, %s3502_s30   ;;  %s3502_s30 = sphi %s3614_s30, %s5235_s30   ;;  %s3498_s29 = sphi %s3612_s29, %s5237_s29   ;;  %s3494_s28 = sphi %s3610_s28, %s5239_s28   ;;  %s3490_s27 = sphi %s3608_s27, %s5238_s27  }
  0x13   : > { %5194 = sst [smem:[#allocation18_spill]] %s3498_s29  ;;  %s2945_s19 = sadd.s32 4294967294, %s3502_s30  }
  0x14   : > { %5195 = sst [smem:[#allocation19_spill]] %s3502_s30  ;;  %s3633_s1 = sadd.s32 1, %s3502_s30  }
  0x15   : > { %5196 = sst [smem:[#allocation20_spill]] %s3633_s1  ;;  %s86_s20 = sadd.s32 1, %s3498_s29 }
  0x16   : > { %s83_s21 = ssub.s32 %s3502_s30, %s3633_s1  ;;  %p93_p0 = scmp.ne.s32.totalorder %s3498_s29, %s3494_s28 }
  0x17   : > { %p84_p1 = scmp.eq.s32.totalorder %s83_s21, 0  ;;  %p94_p2 = scmp.eq.s32.totalorder %s3502_s30, 0 }
  0x18   : > { %p99_p3 = scmp.ne.s32.totalorder %s3494_s28, %s3490_s27  ;;  %p100_p4 = scmp.eq.s32.totalorder %s3629_s0, 0 }
  0x19   : > { %s3645_s22 = scalar_select %p84_p1, %s3498_s29, %s86_s20  }
  0x1a   : > { %p3647_p5 = por %p94_p2, %p93_p0  ;;  %p3653_p6 = por %p100_p4, %p99_p3 }
  0x1b   : > { %5197 = sst [smem:[#allocation21_spill]] %s3645_s22  ;;  %p5164_p7 = scmp.eq.s32.totalorder %s3629_s0, 1 }
  0x1c   : > { %p438_p8 = scmp.eq.s32.totalorder %s2945_s19, 1  ;;  %p2946_p9 = scmp.ge.s32.totalorder %s3502_s30, 1 }
  0x1d   : > { %p466_p10 = scmp.lt.s32.totalorder %s3502_s30, 3  ;;  %p3662_p11 = por %p5164_p7, %p93_p0 }
  0x1e   : > { %p3666_p12 = por %p438_p8, %p99_p3  ;;  %s5205_s21 = sld [smem:[#allocation27_spill]] }
  0x1f   : > { %s5200_s24 = scalar_select %p3662_p11, 1, 0 }
  0x20   : > { %s5202_s25 = scalar_select %p3666_p12, 1, 0 }
  0x21   : > { %5201 = sst [smem:[#allocation22_spill]] %s5200_s24  ;;  %p3670_p13 = pnand %p2946_p9, %p466_p10 }
  0x22   : > { %5203 = sst [smem:[#allocation23_spill]] %s5202_s25  ;;  %p3302_p7 = scmp.lt.s32.totalorder %s3502_s30, 2 }
  0x23   : > { %p3289_p2 = pneg %p3670_p13  ;;  %s525_s1 = sand.u32 1, %s3498_s29  }
  0x24   : > { %s478_s22 = sshll.u32 %s5205_s21, 4  ;;  %p3687_p8 = pnand %p3302_p7, %p3647_p5  ;;  %s479_s22 = int_to_ptr.vmem [resolvable:$true] %s478_s22 }
  0x25   : > { %p3290_p3 = pnand %p3289_p2, %p100_p4  ;;  %s2949_s27 = sshll.u32 %s525_s1, 8 }
  0x26   : > { %s3504_s18 = smov [#allocation5]   ;;  %s3163_s17 = sshll.u32 %s3502_s30, 8 }
  0x27   : > { %3292 = dma.vmem_to_smem (!%p3290_p3), %s479_s22, 16, %s3504_s18, [#allocation8]  }
  0x28   : > { %s529_s20 = scalar_lea.vmem [#allocation9], %s2949_s27  ;;  %s5207_s16 = sld [smem:[#allocation29_spill]] }
  0x29   : > { %s537_s19 = sshll.u32 %s529_s20, 4  ;;  %s526_s29 = scalar_lea.sflag [#allocation6], %s525_s1  ;;  %s538_s19 = int_to_ptr.vmem [resolvable:$true] %s537_s19 }
  0x2a   : > { %p3374_p7 = pneg %p3687_p8 }
  0x2e   : > { %s534_s14 = scalar_lea.hbm %s5207_s16, %s3163_s17  ;;  %s3377_s27 = scalar_lea.hbm %s5207_s16, 512 }
  0x2f   : > { %s535_s15 = sshll.u32 %s534_s14, 4  ;;  %s536_s15 = int_to_ptr.hbm [resolvable:$true] %s535_s15 }
  0x30   : > { %s3370_s2 = sshra.s32 %s536_s15, 4  ;;  %s3371_s2 = int_to_ptr.hbm [resolvable:$true] %s3370_s2 }
  0x31   : > { %s3372_s12 = scalar_lea.hbm %s3371_s2, 256  ;;  %p3378_p2 = scmp.lt.s32.totalorder %s3371_s2, %s5207_s16 }
  0x32   : > { %p3373_p5 = scmp.ne.s32.totalorder %s3371_s2, %s3372_s12  ;;  %p3379_p3 = scmp.lt.s32.totalorder %s3377_s27, %s3372_s12 }
  0x34   : > { %p3375_p9 = pnand %p3374_p7, %p3373_p5  ;;  %p3380_p0 = por %p3379_p3, %p3378_p2 }
  0x36   : > { %p3376_p10 = pneg %p3375_p9 }
  0x38   : > { %p3381_p1 = pnand %p3380_p0, %p3376_p10 }
  0x3a   : > { %3384 = shalt.err (!%p3381_p1)
}
  0x3b   : > { %s3505_s14 = smov 128   ;;  %s3506_s17 = smov 8  }
  0x3c   : > { %3296 = dma.hbm_to_vmem [thread:$0]  (!%p3687_p8), %s536_s15, 4096, %s538_s19, %s526_s29, %s3505_s14, %s3505_s14, %s3506_s17  }
  0x3d   : > { %575 = sbr.rel (%p3670_p13) target bundleno = 1717 (0x6b5), region = 88 }
  0x42   : > { %3473 = dma.done.wait (%p100_p4), [#allocation8], 16  }
  0x43   : > { %3475 = vsyncadd (%p100_p4), [#allocation8], 4294967280  ;;  %s3712_s12 = sand.u32 1, %s3494_s28  }
  0x44   : > { %s2954_s30 = sshll.u32 %s3712_s12, 8  ;;  %s583_s1 = scalar_lea.sflag [#allocation6], %s3712_s12 }
  0x45   : > { %s3716_s24 = scalar_lea.vmem [#allocation9], %s2954_s30 }
  0x46   : > { %3477 = dma.done.wait (%p3653_p6), %s583_s1, 4096  }
  0x47   : > { %3479 = vsyncadd (%p3653_p6), %s583_s1, 4294963200 }
  0x48   : > { %592 = sfence }
  0x49   : > { %s2956_s15 = sshll.u32 %s3629_s0, 5  ;;  %s2960_s29 = sshll.u32 %s3629_s0, 1 }
  0x4a   : > { %p657_p4 = scmp.lt.s32.totalorder %s2956_s15, 63  ;;  %p669_p13 = scmp.lt.s32.totalorder %s2960_s29, 3 }
  0x4b   : > { %s3724_s25 = sld [smem:[#allocation5]]  ;;  %s3744_s1 = scalar_lea.vmem [#allocation10], %s2954_s30 }
  0x4c   : > { %s5241_s15 = smov (!%p657_p4, %s2956_s15), 63  ;;  %s5243_s29 = smov (!%p669_p13, %s2960_s29), 3 }
  0x4d   : > { %s2957_s26 = sshll.u32 %s5241_s15, 3  ;;  %s3728_s19 = sld [smem:[#allocation5 + $0x1]] }
  0x4e   : > { %s5208_s3 = sld [smem:[#allocation30_spill]]  ;;  %s3738_s27 = scalar_lea.vmem %s5146_s4, %s2957_s26 }
  0x4f   : > { %s671_s17 = scalar_lea.vmem %s5147_s5, %s5243_s29  ;;  %p5209_p6 = scmp.ne.s32.totalorder %s3629_s0, 0 }
  0x50   : > { %s5210_s22 = sld [smem:[#allocation28_spill]] (!%p5209_p6) }
  0x51   : > { %679 = sbr.rel (%p5209_p6) target bundleno = 308 (0x134), region = 100 }
  0x54   : > { %s3733_s23 = scalar_lea.vmem %s5208_s3, %s2957_s26 }
  0x56   : > { %v727_v0 = vld [vmem:[%s5148_s6 + $0x78] sm:$0xff]  ;;  %v726_v2 = vld [vmem:[%s5148_s6 + $0x70] sm:$0xff]  ;;  %v3507_v4 = vmov 0.0   ;;  %v725_v5 = vld [vmem:[%s5148_s6 + $0x68] sm:$0xff] }
  0x57   : > { %v840_v1 = vld [vmem:[%s5149_s7 + $0x78] sm:$0xff]  ;;  %3165 = vmatpush.msra.mxu2 %v727_v0  ;;  %v839_v3 = vld [vmem:[%s5149_s7 + $0x70] sm:$0xff]  ;;  %680 = vst [vmem:[#allocation2 + $0x30] sm:$0xff] %v3507_v4  ;;  %v838_v6 = vld [vmem:[%s5149_s7 + $0x68] sm:$0xff]  ;;  %728 = vmatpush.msra.mxu0 %v727_v0 }
  0x58   : > { %3181 = vmatpush.msra.mxu3 %v840_v1  ;;  %681 = vst [vmem:[#allocation2] sm:$0xff] %v3507_v4  ;;  %841 = vmatpush.msra.mxu1 %v840_v1  ;;  %v724_v7 = vld [vmem:[%s5148_s6 + $0x60] sm:$0xff]  ;;  %v723_v9 = vld [vmem:[%s5148_s6 + $0x58] sm:$0xff]  ;;  %v722_v11 = vld [vmem:[%s5148_s6 + $0x50] sm:$0xff] }
  0x59   : > { %3166 = vmatpush.msra.mxu2 %v726_v2  ;;  %682 = vst [vmem:[#allocation2 + $0x58] sm:$0xff] %v3507_v4  ;;  %v837_v8 = vld [vmem:[%s5149_s7 + $0x60] sm:$0xff]  ;;  %729 = vmatpush.msra.mxu0 %v726_v2  ;;  %v836_v10 = vld [vmem:[%s5149_s7 + $0x58] sm:$0xff]  ;;  %v835_v12 = vld [vmem:[%s5149_s7 + $0x50] sm:$0xff] }
  0x5a   : > { %3182 = vmatpush.msra.mxu3 %v839_v3  ;;  %683 = vst [vmem:[#allocation2 + $0x18] sm:$0xff] %v3507_v4  ;;  %842 = vmatpush.msra.mxu1 %v839_v3  ;;  %v721_v13 = vld [vmem:[%s5148_s6 + $0x48] sm:$0xff]  ;;  %v720_v15 = vld [vmem:[%s5148_s6 + $0x40] sm:$0xff]  ;;  %v719_v17 = vld [vmem:[%s5148_s6 + $0x38] sm:$0xff] }
  0x5b   : > { %3167 = vmatpush.msra.mxu2 %v725_v5  ;;  %684 = vst [vmem:[#allocation2 + $0x50] sm:$0xff] %v3507_v4  ;;  %730 = vmatpush.msra.mxu0 %v725_v5  ;;  %v834_v14 = vld [vmem:[%s5149_s7 + $0x48] sm:$0xff]  ;;  %v833_v16 = vld [vmem:[%s5149_s7 + $0x40] sm:$0xff]  ;;  %v832_v18 = vld [vmem:[%s5149_s7 + $0x38] sm:$0xff] }
  0x5c   : > { %3183 = vmatpush.msra.mxu3 %v838_v6  ;;  %685 = vst [vmem:[#allocation2 + $0x68] sm:$0xff] %v3507_v4  ;;  %843 = vmatpush.msra.mxu1 %v838_v6  ;;  %v718_v19 = vld [vmem:[%s5148_s6 + $0x30] sm:$0xff]  ;;  %v717_v21 = vld [vmem:[%s5148_s6 + $0x28] sm:$0xff]  ;;  %v716_v23 = vld [vmem:[%s5148_s6 + $0x20] sm:$0xff] }
  0x5d   : > { %686 = vst [vmem:[#allocation2 + $0x8] sm:$0xff] %v3507_v4  ;;  %3168 = vmatpush.msra.mxu2 %v724_v7  ;;  %731 = vmatpush.msra.mxu0 %v724_v7  ;;  %v831_v20 = vld [vmem:[%s5149_s7 + $0x30] sm:$0xff]  ;;  %v830_v22 = vld [vmem:[%s5149_s7 + $0x28] sm:$0xff]  ;;  %v829_v24 = vld [vmem:[%s5149_s7 + $0x20] sm:$0xff] }
  0x5e   : > { %3184 = vmatpush.msra.mxu3 %v837_v8  ;;  %687 = vst [vmem:[#allocation2 + $0x48] sm:$0xff] %v3507_v4  ;;  %844 = vmatpush.msra.mxu1 %v837_v8  ;;  %v715_v25 = vld [vmem:[%s5148_s6 + $0x18] sm:$0xff]  ;;  %v714_v27 = vld [vmem:[%s5148_s6 + $0x10] sm:$0xff]  ;;  %v713_v29 = vld [vmem:[%s5148_s6 + $0x8] sm:$0xff] }
  0x5f   : > { %688 = vst [vmem:[#allocation2 + $0x40] sm:$0xff] %v3507_v4  ;;  %3169 = vmatpush.msra.mxu2 %v723_v9  ;;  %732 = vmatpush.msra.mxu0 %v723_v9  ;;  %v828_v26 = vld [vmem:[%s5149_s7 + $0x18] sm:$0xff]  ;;  %v827_v28 = vld [vmem:[%s5149_s7 + $0x10] sm:$0xff]  ;;  %v826_v30 = vld [vmem:[%s5149_s7 + $0x8] sm:$0xff] }
  0x60   : > { %3185 = vmatpush.msra.mxu3 %v836_v10  ;;  %689 = vst [vmem:[#allocation2 + $0x20] sm:$0xff] %v3507_v4  ;;  %845 = vmatpush.msra.mxu1 %v836_v10  ;;  %v712_v31 = vld [vmem:[%s5148_s6] sm:$0xff]  ;;  %v705_v35 = vld [vmem:[%s5210_s22 + $0x48] sm:$0xff]  ;;  %v706_v37 = vld [vmem:[%s5210_s22 + $0x50] sm:$0xff] }
  0x61   : > { %690 = vst [vmem:[#allocation2 + $0x10] sm:$0xff] %v3507_v4  ;;  %3170 = vmatpush.msra.mxu2 %v722_v11  ;;  %733 = vmatpush.msra.mxu0 %v722_v11  ;;  %v825_v32 = vld [vmem:[%s5149_s7] sm:$0xff]  ;;  %v697_v36 = vld [vmem:[%s5210_s22 + $0x8] sm:$0xff]  ;;  %v698_v38 = vld [vmem:[%s5210_s22 + $0x10] sm:$0xff] }
  0x62   : > { %3186 = vmatpush.msra.mxu3 %v835_v12  ;;  %691 = vst [vmem:[#allocation2 + $0x38] sm:$0xff] %v3507_v4  ;;  %846 = vmatpush.msra.mxu1 %v835_v12  ;;  %v704_v33 = vld [vmem:[%s5210_s22 + $0x40] sm:$0xff]  ;;  %v707_v39 = vld [vmem:[%s5210_s22 + $0x58] sm:$0xff]  ;;  %v709_v43 = vld [vmem:[%s5210_s22 + $0x68] sm:$0xff] }
  0x63   : > { %692 = vst [vmem:[#allocation2 + $0x60] sm:$0xff] %v3507_v4  ;;  %3171 = vmatpush.msra.mxu2 %v721_v13  ;;  %734 = vmatpush.msra.mxu0 %v721_v13  ;;  %v696_v34 = vld [vmem:[%s5210_s22] sm:$0xff]  ;;  %v699_v40 = vld [vmem:[%s5210_s22 + $0x18] sm:$0xff]  ;;  %v701_v44 = vld [vmem:[%s5210_s22 + $0x28] sm:$0xff] }
  0x64   : > { %3187 = vmatpush.msra.mxu3 %v834_v14  ;;  %693 = vst [vmem:[#allocation2 + $0x70] sm:$0xff] %v3507_v4  ;;  %847 = vmatpush.msra.mxu1 %v834_v14  ;;  %v708_v41 = vld [vmem:[%s5210_s22 + $0x60] sm:$0xff]  ;;  %v710_v45 = vld [vmem:[%s5210_s22 + $0x70] sm:$0xff]  ;;  %v711_v47 = vld [vmem:[%s5210_s22 + $0x78] sm:$0xff] }
  0x65   : > { %694 = vst [vmem:[#allocation2 + $0x78] sm:$0xff] %v3507_v4  ;;  %3172 = vmatpush.msra.mxu2 %v720_v15  ;;  %735 = vmatpush.msra.mxu0 %v720_v15  ;;  %v700_v42 = vld [vmem:[%s5210_s22 + $0x20] sm:$0xff]  ;;  %v702_v46 = vld [vmem:[%s5210_s22 + $0x30] sm:$0xff]  ;;  %v703_v48 = vld [vmem:[%s5210_s22 + $0x38] sm:$0xff] }
  0x66   : > { %3188 = vmatpush.msra.mxu3 %v833_v16  ;;  %695 = vst [vmem:[#allocation2 + $0x28] sm:$0xff] %v3507_v4  ;;  %848 = vmatpush.msra.mxu1 %v833_v16 }
  0x67   : > { %3173 = vmatpush.msra.mxu2 %v719_v17  ;;  %736 = vmatpush.msra.mxu0 %v719_v17 }
  0x68   : > { %3189 = vmatpush.msra.mxu3 %v832_v18  ;;  %849 = vmatpush.msra.mxu1 %v832_v18 }
  0x69   : > { %3174 = vmatpush.msra.mxu2 %v718_v19  ;;  %737 = vmatpush.msra.mxu0 %v718_v19 }
  0x6a   : > { %3190 = vmatpush.msra.mxu3 %v831_v20  ;;  %850 = vmatpush.msra.mxu1 %v831_v20 }
  0x6b   : > { %3175 = vmatpush.msra.mxu2 %v717_v21  ;;  %738 = vmatpush.msra.mxu0 %v717_v21 }
  0x6c   : > { %3191 = vmatpush.msra.mxu3 %v830_v22  ;;  %851 = vmatpush.msra.mxu1 %v830_v22 }
  0x6d   : > { %3176 = vmatpush.msra.mxu2 %v716_v23  ;;  %739 = vmatpush.msra.mxu0 %v716_v23 }
  0x6e   : > { %3192 = vmatpush.msra.mxu3 %v829_v24  ;;  %852 = vmatpush.msra.mxu1 %v829_v24 }
  0x6f   : > { %3177 = vmatpush.msra.mxu2 %v715_v25  ;;  %740 = vmatpush.msra.mxu0 %v715_v25 }
  0x70   : > { %3193 = vmatpush.msra.mxu3 %v828_v26  ;;  %853 = vmatpush.msra.mxu1 %v828_v26 }
  0x71   : > { %3178 = vmatpush.msra.mxu2 %v714_v27  ;;  %741 = vmatpush.msra.mxu0 %v714_v27 }
  0x72   : > { %3194 = vmatpush.msra.mxu3 %v827_v28  ;;  %854 = vmatpush.msra.mxu1 %v827_v28 }
  0x73   : > { %3179 = vmatpush.msra.mxu2 %v713_v29  ;;  %742 = vmatpush.msra.mxu0 %v713_v29 }
  0x74   : > { %3195 = vmatpush.msra.mxu3 %v826_v30  ;;  %855 = vmatpush.msra.mxu1 %v826_v30 }
  0x75   : > { %3180 = vmatpush.msra.mxu2 %v712_v31  ;;  %743 = vmatpush.msra.mxu0 %v712_v31 }
  0x76   : > { %3196 = vmatpush.msra.mxu3 %v825_v32  ;;  %768 = vmatmul.f32.vlgmr.msra.gmra.mxu2 %v704_v33 }
  0x77   : > { %881 = vmatmul.f32.vlgmr.msra.gmra.mxu3 %v704_v33  ;;  %856 = vmatpush.msra.mxu1 %v825_v32 }
  0x78   : > { %744 = vmatmul.f32.vlgmr.msra.gmra.mxu0 %v696_v34  ;;  %857 = vmatmul.f32.vlgmr.msra.gmra.mxu1 %v696_v34 }
  0x7e   : > { %771 = vmatmul.f32.gmra.mxu2 %v705_v35 }
  0x7f   : > { %884 = vmatmul.f32.gmra.mxu3 %v705_v35 }
  0x80   : > { %747 = vmatmul.f32.gmra.mxu0 %v697_v36  ;;  %860 = vmatmul.f32.gmra.mxu1 %v697_v36 }
  0x86   : > { %774 = vmatmul.f32.gmra.mxu2 %v706_v37 }
  0x87   : > { %887 = vmatmul.f32.gmra.mxu3 %v706_v37 }
  0x88   : > { %750 = vmatmul.f32.gmra.mxu0 %v698_v38  ;;  %863 = vmatmul.f32.gmra.mxu1 %v698_v38 }
  0x8e   : > { %777 = vmatmul.f32.gmra.mxu2 %v707_v39 }
  0x8f   : > { %890 = vmatmul.f32.gmra.mxu3 %v707_v39 }
  0x90   : > { %753 = vmatmul.f32.gmra.mxu0 %v699_v40  ;;  %866 = vmatmul.f32.gmra.mxu1 %v699_v40 }
  0x96   : > { %780 = vmatmul.f32.gmra.mxu2 %v708_v41 }
  0x97   : > { %893 = vmatmul.f32.gmra.mxu3 %v708_v41 }
  0x98   : > { %756 = vmatmul.f32.gmra.mxu0 %v700_v42  ;;  %869 = vmatmul.f32.gmra.mxu1 %v700_v42 }
  0x9e   : > { %783 = vmatmul.f32.gmra.mxu2 %v709_v43 }
  0x9f   : > { %896 = vmatmul.f32.gmra.mxu3 %v709_v43 }
  0xa0   : > { %759 = vmatmul.f32.gmra.mxu0 %v701_v44  ;;  %872 = vmatmul.f32.gmra.mxu1 %v701_v44 }
  0xa6   : > { %786 = vmatmul.f32.gmra.mxu2 %v710_v45 }
  0xa7   : > { %899 = vmatmul.f32.gmra.mxu3 %v710_v45 }
  0xa8   : > { %762 = vmatmul.f32.gmra.mxu0 %v702_v46  ;;  %875 = vmatmul.f32.gmra.mxu1 %v702_v46 }
  0xae   : > { %789 = vmatmul.f32.gmra.mxu2 %v711_v47 }
  0xaf   : > { %902 = vmatmul.f32.gmra.mxu3 %v711_v47 }
  0xb0   : > { %765 = vmatmul.f32.gmra.mxu0 %v703_v48  ;;  %878 = vmatmul.f32.gmra.mxu1 %v703_v48 }
  0xf5   : > { %v745_v49 = vpop.f32.mrf.mxu0  ;;  %v858_v50 = vpop.f32.mrf.mxu1 }
  0xf6   : > { %793 = vst [vmem:[#allocation3 + $0x28] sm:$0xff] %v745_v49 }
  0xf7   : > { %906 = vst [vmem:[#allocation4 + $0x8] sm:$0xff] %v858_v50 }
  0xf9   : > { %v769_v51 = vpop.f32.mrf.mxu2 }
  0xfa   : > { %v882_v52 = vpop.f32.mrf.mxu3  ;;  %801 = vst [vmem:[#allocation3 + $0x20] sm:$0xff] %v769_v51 }
  0xfb   : > { %914 = vst [vmem:[#allocation4 + $0x40] sm:$0xff] %v882_v52 }
  0xfd   : > { %v748_v53 = vpop.f32.mrf.mxu0  ;;  %v861_v54 = vpop.f32.mrf.mxu1 }
  0xfe   : > { %794 = vst [vmem:[#allocation3 + $0x68] sm:$0xff] %v748_v53 }
  0xff   : > { %907 = vst [vmem:[#allocation4] sm:$0xff] %v861_v54 }
 0x101   : > { %v772_v55 = vpop.f32.mrf.mxu2 }
 0x102   : > { %v885_v56 = vpop.f32.mrf.mxu3  ;;  %802 = vst [vmem:[#allocation3 + $0x78] sm:$0xff] %v772_v55 }
 0x103   : > { %915 = vst [vmem:[#allocation4 + $0x28] sm:$0xff] %v885_v56 }
 0x105   : > { %v751_v57 = vpop.f32.mrf.mxu0  ;;  %v864_v58 = vpop.f32.mrf.mxu1 }
 0x106   : > { %795 = vst [vmem:[#allocation3 + $0x10] sm:$0xff] %v751_v57 }
 0x107   : > { %908 = vst [vmem:[#allocation4 + $0x48] sm:$0xff] %v864_v58 }
 0x109   : > { %v775_v59 = vpop.f32.mrf.mxu2 }
 0x10a   : > { %v888_v60 = vpop.f32.mrf.mxu3  ;;  %803 = vst [vmem:[#allocation3 + $0x18] sm:$0xff] %v775_v59 }
 0x10b   : > { %916 = vst [vmem:[#allocation4 + $0x70] sm:$0xff] %v888_v60 }
 0x10d   : > { %v754_v61 = vpop.f32.mrf.mxu0  ;;  %v867_v62 = vpop.f32.mrf.mxu1 }
 0x10e   : > { %796 = vst [vmem:[#allocation3 + $0x40] sm:$0xff] %v754_v61 }
 0x10f   : > { %909 = vst [vmem:[#allocation4 + $0x60] sm:$0xff] %v867_v62 }
 0x111   : > { %v778_v63 = vpop.f32.mrf.mxu2 }
 0x112   : > { %v891_v0 = vpop.f32.mrf.mxu3  ;;  %804 = vst [vmem:[#allocation3 + $0x58] sm:$0xff] %v778_v63 }
 0x113   : > { %917 = vst [vmem:[#allocation4 + $0x20] sm:$0xff] %v891_v0 }
 0x115   : > { %v757_v1 = vpop.f32.mrf.mxu0  ;;  %v870_v2 = vpop.f32.mrf.mxu1 }
 0x116   : > { %797 = vst [vmem:[#allocation3 + $0x48] sm:$0xff] %v757_v1 }
 0x117   : > { %910 = vst [vmem:[#allocation4 + $0x68] sm:$0xff] %v870_v2 }
 0x119   : > { %v781_v3 = vpop.f32.mrf.mxu2 }
 0x11a   : > { %v894_v4 = vpop.f32.mrf.mxu3  ;;  %805 = vst [vmem:[#allocation3] sm:$0xff] %v781_v3 }
 0x11b   : > { %918 = vst [vmem:[#allocation4 + $0x58] sm:$0xff] %v894_v4 }
 0x11d   : > { %v760_v5 = vpop.f32.mrf.mxu0  ;;  %v873_v6 = vpop.f32.mrf.mxu1 }
 0x11e   : > { %798 = vst [vmem:[#allocation3 + $0x30] sm:$0xff] %v760_v5 }
 0x11f   : > { %911 = vst [vmem:[#allocation4 + $0x18] sm:$0xff] %v873_v6 }
 0x121   : > { %v784_v7 = vpop.f32.mrf.mxu2 }
 0x122   : > { %v897_v8 = vpop.f32.mrf.mxu3  ;;  %806 = vst [vmem:[#allocation3 + $0x8] sm:$0xff] %v784_v7 }
 0x123   : > { %919 = vst [vmem:[#allocation4 + $0x30] sm:$0xff] %v897_v8 }
 0x125   : > { %v763_v9 = vpop.f32.mrf.mxu0  ;;  %v876_v10 = vpop.f32.mrf.mxu1 }
 0x126   : > { %799 = vst [vmem:[#allocation3 + $0x70] sm:$0xff] %v763_v9 }
 0x127   : > { %912 = vst [vmem:[#allocation4 + $0x10] sm:$0xff] %v876_v10 }
 0x129   : > { %v787_v11 = vpop.f32.mrf.mxu2 }
 0x12a   : > { %v900_v12 = vpop.f32.mrf.mxu3  ;;  %807 = vst [vmem:[#allocation3 + $0x60] sm:$0xff] %v787_v11 }
 0x12b   : > { %920 = vst [vmem:[#allocation4 + $0x50] sm:$0xff] %v900_v12 }
 0x12d   : > { %v766_v13 = vpop.f32.mrf.mxu0  ;;  %v879_v14 = vpop.f32.mrf.mxu1 }
 0x12e   : > { %800 = vst [vmem:[#allocation3 + $0x38] sm:$0xff] %v766_v13 }
 0x12f   : > { %913 = vst [vmem:[#allocation4 + $0x38] sm:$0xff] %v879_v14 }
 0x131   : > { %v790_v15 = vpop.f32.mrf.mxu2 }
 0x132   : > { %v903_v16 = vpop.f32.mrf.mxu3  ;;  %808 = vst [vmem:[#allocation3 + $0x50] sm:$0xff] %v790_v15 }
 0x133   : > { %921 = vst [vmem:[#allocation4 + $0x78] sm:$0xff] %v903_v16 }
 0x134 PF: > { %v982_v17 = vld [vmem:[%s3738_s27 + $0xe0] sm:$0xff]  ;;  %v980_v18 = vld [vmem:[%s3738_s27 + $0xd0] sm:$0xff]  ;;  %v3508_v20 = vmov 0   ;;  %v983_v21 = vld [vmem:[%s3738_s27 + $0xe8] sm:$0xff]  ;;  %p3155_p1 = scmp.ne.s32.totalorder %s3629_s0, 1 }
 0x135   : > { %v978_v19 = vld [vmem:[%s3738_s27 + $0xc0] sm:$0xff]  ;;  %3350 = vset.pattern.permute.xlu2 %v3508_v20  ;;  %3349 = vset.pattern.permute.xlu1 %v3508_v20  ;;  %v981_v22 = vld [vmem:[%s3738_s27 + $0xd8] sm:$0xff]  ;;  %v979_v23 = vld [vmem:[%s3738_s27 + $0xc8] sm:$0xff]  ;;  %s5219_s21 = sld [smem:[#allocation31_spill]] (!%p3155_p1) }
 0x136   : > { %3348 = vset.pattern.permute.xlu0 %v3508_v20  ;;  %1266 = vperm.xlu2 %3350, %v982_v17   ;;  %v922_v24 = vld [vmem:[%s3733_s23] sm:$0xff]  ;;  %v985_v25 = vld [vmem:[%s3738_s27 + $0xf8] sm:$0xff]  ;;  %v984_v26 = vld [vmem:[%s3738_s27 + $0xf0] sm:$0xff]  ;;  %s5220_s26 = sld [smem:[#allocation28_spill]] (!%p3155_p1) }
 0x137   : > { %1260 = vperm.xlu1 %3349, %v980_v18   ;;  %1254 = vperm.xlu0 %3348, %v978_v19   ;;  %v955_v27 = vld [vmem:[%s3738_s27 + $0x8] sm:$0xff]  ;;  %v954_v28 = vld [vmem:[%s3738_s27] sm:$0xff]  ;;  %v925_v30 = vld [vmem:[%s3733_s23 + $0x18] sm:$0xff]  ;;  %s5223_s2 = sld [smem:[#allocation32_spill]] (!%p3155_p1) }
 0x138   : > { %v923_v29 = vld [vmem:[%s3733_s23 + $0x8] sm:$0xff]  ;;  %v924_v31 = vld [vmem:[%s3733_s23 + $0x10] sm:$0xff]  ;;  %v958_v33 = vld [vmem:[%s3738_s27 + $0x20] sm:$0xff]  ;;  %s2735_s18 = sadd.f32 (!%p3155_p1), 1.0, %s3728_s19 }
 0x139   : > { %v956_v32 = vld [vmem:[%s3738_s27 + $0x10] sm:$0xff]  ;;  %v957_v34 = vld [vmem:[%s3738_s27 + $0x18] sm:$0xff]  ;;  %v926_v35 = vld [vmem:[%s3733_s23 + $0x20] sm:$0xff]  ;;  %s5224_s14 = sld [smem:[#allocation34_spill]] (!%p3155_p1) }
 0x13a   : > { %v928_v36 = vld [vmem:[%s3733_s23 + $0x30] sm:$0xff]  ;;  %v927_v37 = vld [vmem:[%s3733_s23 + $0x28] sm:$0xff]  ;;  %v1551_v39 = vld [vmem:[#allocation4 + $0x78] sm:$0xff] }
 0x13b   : > { %v959_v38 = vld [vmem:[%s3738_s27 + $0x28] sm:$0xff]  ;;  %v1550_v40 = vld [vmem:[#allocation4 + $0x50] sm:$0xff]  ;;  %3197 = vmatpush.msra.mxu2 %v1551_v39  ;;  %1552 = vmatpush.msra.mxu0 %v1551_v39  ;;  %v961_v41 = vld [vmem:[%s3738_s27 + $0x38] sm:$0xff] }
 0x13c   : > { %v960_v42 = vld [vmem:[%s3738_s27 + $0x30] sm:$0xff]  ;;  %v929_v43 = vld [vmem:[%s3733_s23 + $0x38] sm:$0xff]  ;;  %v1547_v46 = vld [vmem:[#allocation4 + $0x20] sm:$0xff] }
 0x13d   : > { %3198 = vmatpush.msra.mxu2 %v1550_v40  ;;  %1553 = vmatpush.msra.mxu0 %v1550_v40  ;;  %v1549_v44 = vld [vmem:[#allocation4 + $0x30] sm:$0xff]  ;;  %v1548_v45 = vld [vmem:[#allocation4 + $0x58] sm:$0xff]  ;;  %v946_v47 = vld [vmem:[%s3733_s23 + $0xc0] sm:$0xff] }
 0x13e   : > { %1269 = vperm.xlu2 %3350, %v983_v21   ;;  %v1546_v48 = vld [vmem:[#allocation4 + $0x70] sm:$0xff]  ;;  %v930_v49 = vld [vmem:[%s3733_s23 + $0x40] sm:$0xff]  ;;  %v1545_v51 = vld [vmem:[#allocation4 + $0x28] sm:$0xff] }
 0x13f   : > { %1263 = vperm.xlu1 %3349, %v981_v22   ;;  %1257 = vperm.xlu0 %3348, %v979_v23   ;;  %v962_v50 = vld [vmem:[%s3738_s27 + $0x40] sm:$0xff]  ;;  %v1543_v53 = vld [vmem:[#allocation4 + $0x38] sm:$0xff]  ;;  %v1535_v54 = vld [vmem:[#allocation3 + $0x50] sm:$0xff] }
 0x140   : > { %3199 = vmatpush.msra.mxu2 %v1549_v44  ;;  %1554 = vmatpush.msra.mxu0 %v1549_v44  ;;  %v1544_v52 = vld [vmem:[#allocation4 + $0x40] sm:$0xff]  ;;  %v947_v56 = vld [vmem:[%s3733_s23 + $0xc8] sm:$0xff]  ;;  %v1542_v57 = vld [vmem:[#allocation4 + $0x10] sm:$0xff] }
 0x141   : > { %1665 = vmatpush.msra.mxu1 %v1535_v54  ;;  %v1534_v55 = vld [vmem:[#allocation3 + $0x60] sm:$0xff]  ;;  %3213 = vmatpush.msra.mxu3 %v1535_v54  ;;  %v931_v58 = vld [vmem:[%s3733_s23 + $0x48] sm:$0xff]  ;;  %v1541_v60 = vld [vmem:[#allocation4 + $0x18] sm:$0xff] }
 0x142   : > { %3200 = vmatpush.msra.mxu2 %v1548_v45  ;;  %1555 = vmatpush.msra.mxu0 %v1548_v45  ;;  %v963_v59 = vld [vmem:[%s3738_s27 + $0x48] sm:$0xff]  ;;  %v1532_v63 = vld [vmem:[#allocation3] sm:$0xff]  ;;  %v1531_v1 = vld [vmem:[#allocation3 + $0x58] sm:$0xff] }
 0x143   : > { %1666 = vmatpush.msra.mxu1 %v1534_v55  ;;  %3214 = vmatpush.msra.mxu3 %v1534_v55  ;;  %v1533_v61 = vld [vmem:[#allocation3 + $0x8] sm:$0xff]  ;;  %v1539_v0 = vld [vmem:[#allocation4 + $0x60] sm:$0xff]  ;;  %v948_v2 = vld [vmem:[%s3733_s23 + $0xd0] sm:$0xff] }
 0x144   : > { %3201 = vmatpush.msra.mxu2 %v1547_v46  ;;  %1556 = vmatpush.msra.mxu0 %v1547_v46  ;;  %v1540_v62 = vld [vmem:[#allocation4 + $0x68] sm:$0xff]  ;;  %v932_v4 = vld [vmem:[%s3733_s23 + $0x50] sm:$0xff]  ;;  %v1530_v6 = vld [vmem:[#allocation3 + $0x18] sm:$0xff] }
 0x145   : > { %1667 = vmatpush.msra.mxu1 %v1533_v61  ;;  %3215 = vmatpush.msra.mxu3 %v1533_v61  ;;  %v1538_v3 = vld [vmem:[#allocation4 + $0x48] sm:$0xff]  ;;  %v964_v5 = vld [vmem:[%s3738_s27 + $0x50] sm:$0xff]  ;;  %v1537_v7 = vld [vmem:[#allocation4] sm:$0xff] }
 0x146   : > { %990 = vperm.xlu2 %3350, %v922_v24   ;;  %3202 = vmatpush.msra.mxu2 %v1546_v48  ;;  %v1529_v8 = vld [vmem:[#allocation3 + $0x78] sm:$0xff]  ;;  %v1536_v9 = vld [vmem:[#allocation4 + $0x8] sm:$0xff]  ;;  %v1528_v10 = vld [vmem:[#allocation3 + $0x20] sm:$0xff] }
 0x147   : > { %1275 = vperm.xlu1 %3349, %v985_v25   ;;  %1272 = vperm.xlu0 %3348, %v984_v26   ;;  %v949_v11 = vld [vmem:[%s3733_s23 + $0xd8] sm:$0xff]  ;;  %v1526_v15 = vld [vmem:[#allocation3 + $0x70] sm:$0xff]  ;;  %v1524_v18 = vld [vmem:[#allocation3 + $0x48] sm:$0xff] }
 0x148   : > { %3203 = vmatpush.msra.mxu2 %v1545_v51  ;;  %1557 = vmatpush.msra.mxu0 %v1546_v48  ;;  %v1527_v12 = vld [vmem:[#allocation3 + $0x38] sm:$0xff]  ;;  %v1525_v16 = vld [vmem:[#allocation3 + $0x30] sm:$0xff]  ;;  %v950_v19 = vld [vmem:[%s3733_s23 + $0xe0] sm:$0xff] }
 0x149   : > { %1668 = vmatpush.msra.mxu1 %v1532_v63  ;;  %3216 = vmatpush.msra.mxu3 %v1532_v63  ;;  %v933_v13 = vld [vmem:[%s3733_s23 + $0x58] sm:$0xff]  ;;  %v1523_v20 = vld [vmem:[#allocation3 + $0x40] sm:$0xff]  ;;  %v1522_v23 = vld [vmem:[#allocation3 + $0x10] sm:$0xff] }
 0x14a   : > { %3204 = vmatpush.msra.mxu2 %v1544_v52  ;;  %1558 = vmatpush.msra.mxu0 %v1545_v51  ;;  %v965_v14 = vld [vmem:[%s3738_s27 + $0x58] sm:$0xff]  ;;  %v934_v21 = vld [vmem:[%s3733_s23 + $0x60] sm:$0xff]  ;;  %v1521_v24 = vld [vmem:[#allocation3 + $0x68] sm:$0xff] }
 0x14b   : > { %1669 = vmatpush.msra.mxu1 %v1531_v1  ;;  %3217 = vmatpush.msra.mxu3 %v1531_v1  ;;  %v966_v22 = vld [vmem:[%s3738_s27 + $0x60] sm:$0xff]  ;;  %v1520_v26 = vld [vmem:[#allocation3 + $0x28] sm:$0xff]  ;;  %v953_v40 = vld [vmem:[%s3733_s23 + $0xf8] sm:$0xff] }
 0x14c   : > { %3205 = vmatpush.msra.mxu2 %v1543_v53  ;;  %1559 = vmatpush.msra.mxu0 %v1544_v52  ;;  %v1792_v44 = vld [vmem:[%s5150_s8 + $0x70] sm:$0xff]  ;;  %v1791_v45 = vld [vmem:[%s5150_s8 + $0x68] sm:$0xff]  ;;  %v938_v51 = vld [vmem:[%s3733_s23 + $0x80] sm:$0xff] }
 0x14d   : > { %1670 = vmatpush.msra.mxu1 %v1530_v6  ;;  %3218 = vmatpush.msra.mxu3 %v1530_v6  ;;  %v970_v52 = vld [vmem:[%s3738_s27 + $0x80] sm:$0xff]  ;;  %v1788_v54 = vld [vmem:[%s5150_s8 + $0x50] sm:$0xff]  ;;  %v1787_v55 = vld [vmem:[%s5150_s8 + $0x48] sm:$0xff] }
 0x14e   : > { %1185 = vperm.xlu2 %3350, %v955_v27   ;;  %3206 = vmatpush.msra.mxu2 %v1542_v57  ;;  %v5179_v27 = vlaneseq  ;;  %v971_v61 = vld [vmem:[%s3738_s27 + $0x88] sm:$0xff]  ;;  %v1785_v63 = vld [vmem:[%s5150_s8 + $0x38] sm:$0xff]  ;;  %v942_v6 = vld [vmem:[%s3733_s23 + $0xa0] sm:$0xff] }
 0x14f   : > { %1182 = vperm.xlu0 %3348, %v954_v28   ;;  %993 = vperm.xlu1 %3349, %v923_v29   ;;  %v951_v28 = vld [vmem:[%s3733_s23 + $0xe8] sm:$0xff] }
 0x150   : > { %3207 = vmatpush.msra.mxu2 %v1541_v60  ;;  %1560 = vmatpush.msra.mxu0 %v1543_v53  ;;  %v935_v29 = vld [vmem:[%s3733_s23 + $0x68] sm:$0xff]  ;;  %v1789_v53 = vld [vmem:[%s5150_s8 + $0x58] sm:$0xff] }
 0x151   : > { %1671 = vmatpush.msra.mxu1 %v1529_v8  ;;  %3219 = vmatpush.msra.mxu3 %v1529_v8  ;;  %v1783_v1 = vld [vmem:[%s5150_s8 + $0x28] sm:$0xff]  ;;  %v973_v8 = vld [vmem:[%s3738_s27 + $0x98] sm:$0xff] }
 0x152   : > { %3208 = vmatpush.msra.mxu2 %v1540_v62  ;;  %1561 = vmatpush.msra.mxu0 %v1542_v57 }
 0x153   : > { %1672 = vmatpush.msra.mxu1 %v1528_v10  ;;  %3220 = vmatpush.msra.mxu3 %v1528_v10  ;;  %v1780_v10 = vld [vmem:[%s5150_s8 + $0x10] sm:$0xff] }
 0x154   : > { %3209 = vmatpush.msra.mxu2 %v1539_v0  ;;  %1562 = vmatpush.msra.mxu0 %v1541_v60  ;;  %v972_v60 = vld [vmem:[%s3738_s27 + $0x90] sm:$0xff] }
 0x155   : > { %1673 = vmatpush.msra.mxu1 %v1527_v12  ;;  %3221 = vmatpush.msra.mxu3 %v1527_v12 }
 0x156   : > { %999 = vperm.xlu2 %3350, %v925_v30   ;;  %3210 = vmatpush.msra.mxu2 %v1538_v3  ;;  %v967_v30 = vld [vmem:[%s3738_s27 + $0x68] sm:$0xff] }
 0x157   : > { %996 = vperm.xlu0 %3348, %v924_v31   ;;  %1188 = vperm.xlu1 %3349, %v956_v32   ;;  %v3939_v31 = vand.u32 127, %v5179_v27  ;;  %v4403_v27 = vld [vmem:[%s3716_s24 + $0xf8] sm:$0xff] }
 0x158   : > { %3211 = vmatpush.msra.mxu2 %v1537_v7  ;;  %1563 = vmatpush.msra.mxu0 %v1540_v62  ;;  %v940_v62 = vld [vmem:[%s3733_s23 + $0x90] sm:$0xff]  ;;  %5213 = vst [vmem:[#allocation26_spill] sm:$0xff] %v4403_v27 }
 0x159   : > { %1674 = vmatpush.msra.mxu1 %v1526_v15  ;;  %3222 = vmatpush.msra.mxu3 %v1526_v15  ;;  %v1778_v15 = vld [vmem:[%s5150_s8] sm:$0xff] }
 0x15a   : > { %3212 = vmatpush.msra.mxu2 %v1536_v9  ;;  %1564 = vmatpush.msra.mxu0 %v1539_v0  ;;  %v1784_v0 = vld [vmem:[%s5150_s8 + $0x30] sm:$0xff] }
 0x15b   : > { %1675 = vmatpush.msra.mxu1 %v1525_v16  ;;  %3223 = vmatpush.msra.mxu3 %v1525_v16  ;;  %v975_v16 = vld [vmem:[%s3738_s27 + $0xa8] sm:$0xff] }
 0x15c   : > { %1565 = vmatpush.msra.mxu0 %v1538_v3 }
 0x15d   : > { %1676 = vmatpush.msra.mxu1 %v1524_v18  ;;  %3224 = vmatpush.msra.mxu3 %v1524_v18  ;;  %v943_v18 = vld [vmem:[%s3733_s23 + $0xa8] sm:$0xff] }
 0x15e   : > { %1194 = vperm.xlu2 %3350, %v958_v33   ;;  %1566 = vmatpush.msra.mxu0 %v1537_v7  ;;  %v5177_v33 = vmov 1.0   ;;  %v941_v7 = vld [vmem:[%s3733_s23 + $0x98] sm:$0xff] }
 0x15f   : > { %1191 = vperm.xlu0 %3348, %v957_v34   ;;  %1002 = vperm.xlu1 %3349, %v926_v35   ;;  %v952_v34 = vld [vmem:[%s3733_s23 + $0xf0] sm:$0xff] }
 0x160   : > { %1567 = vmatpush.msra.mxu0 %v1536_v9  ;;  %1677 = vmatpush.msra.mxu1 %v1523_v20  ;;  %v936_v35 = vld [vmem:[%s3733_s23 + $0x70] sm:$0xff]  ;;  %v1781_v9 = vld [vmem:[%s5150_s8 + $0x18] sm:$0xff] }
 0x161   : > { %3225 = vmatpush.msra.mxu3 %v1523_v20 }
 0x162   : > { %1678 = vmatpush.msra.mxu1 %v1522_v23 }
 0x163   : > { %3226 = vmatpush.msra.mxu3 %v1522_v23  ;;  %v944_v23 = vld [vmem:[%s3733_s23 + $0xb0] sm:$0xff] }
 0x164   : > { %1679 = vmatpush.msra.mxu1 %v1521_v24 }
 0x165   : > { %3227 = vmatpush.msra.mxu3 %v1521_v24  ;;  %v976_v24 = vld [vmem:[%s3738_s27 + $0xb0] sm:$0xff] }
 0x166   : > { %1008 = vperm.xlu2 %3350, %v928_v36   ;;  %1680 = vmatpush.msra.mxu1 %v1520_v26  ;;  %v968_v36 = vld [vmem:[%s3738_s27 + $0x70] sm:$0xff] }
 0x167   : > { %1005 = vperm.xlu0 %3348, %v927_v37   ;;  %1197 = vperm.xlu1 %3349, %v959_v38  }
 0x168   : > { %3228 = vmatpush.msra.mxu3 %v1520_v26 }
 0x16e   : > { %1203 = vperm.xlu2 %3350, %v961_v41   ;;  %v937_v41 = vld [vmem:[%s3733_s23 + $0x78] sm:$0xff] }
 0x16f   : > { %1200 = vperm.xlu0 %3348, %v960_v42   ;;  %1011 = vperm.xlu1 %3349, %v929_v43   ;;  %v969_v42 = vld [vmem:[%s3738_s27 + $0x78] sm:$0xff] }
 0x170   : > { %v1793_v43 = vld [vmem:[%s5150_s8 + $0x78] sm:$0xff] }
 0x171   : > { %1794 = vmatpush.msrb.mxu2 %v1793_v43 }
 0x173   : > { %1795 = vmatpush.msrb.mxu2 %v1792_v44  ;;  %v4098_v44 = vld [vmem:[%s3716_s24 + $0x10] sm:$0xff] }
 0x175   : > { %1796 = vmatpush.msrb.mxu2 %v1791_v45 }
 0x176   : > { %1062 = vperm.xlu2 %3350, %v946_v47  }
 0x177   : > { %1014 = vperm.xlu0 %3348, %v930_v49   ;;  %1206 = vperm.xlu1 %3349, %v962_v50   ;;  %v1790_v49 = vld [vmem:[%s5150_s8 + $0x60] sm:$0xff]  ;;  %v939_v50 = vld [vmem:[%s3733_s23 + $0x88] sm:$0xff] }
 0x178   : > { %1797 = vmatpush.msrb.mxu2 %v1790_v49 }
 0x17a   : > { %1798 = vmatpush.msrb.mxu2 %v1789_v53 }
 0x17c   : > { %1799 = vmatpush.msrb.mxu2 %v1788_v54  ;;  %v4129_v54 = vld [vmem:[%s3716_s24 + $0x28] sm:$0xff] }
 0x17e   : > { %1065 = vperm.xlu2 %3350, %v947_v56   ;;  %1800 = vmatpush.msrb.mxu2 %v1787_v55 }
 0x17f   : > { %1017 = vperm.xlu0 %3348, %v931_v58   ;;  %1209 = vperm.xlu1 %3349, %v963_v59   ;;  %v1786_v59 = vld [vmem:[%s5150_s8 + $0x40] sm:$0xff] }
 0x180   : > { %1801 = vmatpush.msrb.mxu2 %v1786_v59  ;;  %v4145_v59 = vld [vmem:[%s3716_s24 + $0x38] sm:$0xff] }
 0x182   : > { %1802 = vmatpush.msrb.mxu2 %v1785_v63 }
 0x184   : > { %1803 = vmatpush.msrb.mxu2 %v1784_v0 }
 0x186   : > { %1068 = vperm.xlu2 %3350, %v948_v2   ;;  %1804 = vmatpush.msrb.mxu2 %v1783_v1  ;;  %v4163_v1 = vld [vmem:[%s3716_s24 + $0x48] sm:$0xff] }
 0x187   : > { %1020 = vperm.xlu0 %3348, %v932_v4   ;;  %1212 = vperm.xlu1 %3349, %v964_v5   ;;  %v1782_v5 = vld [vmem:[%s5150_s8 + $0x20] sm:$0xff] }
 0x188   : > { %1805 = vmatpush.msrb.mxu2 %v1782_v5 }
 0x18a   : > { %1806 = vmatpush.msrb.mxu2 %v1781_v9  ;;  %v2019_v9 = vld [vmem:[%s5152_s10 + $0x60] sm:$0xff] }
 0x18c   : > { %1807 = vmatpush.msrb.mxu2 %v1780_v10 }
 0x18e   : > { %1071 = vperm.xlu2 %3350, %v949_v11   ;;  %v1779_v11 = vld [vmem:[%s5150_s8 + $0x8] sm:$0xff] }
 0x18f   : > { %1023 = vperm.xlu0 %3348, %v933_v13   ;;  %1215 = vperm.xlu1 %3349, %v965_v14  }
 0x190   : > { %v3928_v17 = vpop.permute.xlu2 %1266  ;;  %1808 = vmatpush.msrb.mxu2 %v1779_v11 }
 0x191   : > { %vm1305_vm7 = vcmp.eq.s32.totalorder %v3939_v31, %v3928_v17  ;;  %v974_v17 = vld [vmem:[%s3738_s27 + $0xa0] sm:$0xff] }
 0x192   : > { %1809 = vmatpush.msrb.mxu2 %v1778_v15 }
 0x196   : > { %1074 = vperm.xlu2 %3350, %v950_v19  }
 0x197   : > { %1026 = vperm.xlu0 %3348, %v934_v21   ;;  %1218 = vperm.xlu1 %3349, %v966_v22   ;;  %v945_v22 = vld [vmem:[%s3733_s23 + $0xb8] sm:$0xff] }
 0x198   : > { %v3933_v25 = vpop.permute.xlu2 %1269 }
 0x199   : > { %vm1306_vm11 = vcmp.eq.s32.totalorder %v3939_v31, %v3933_v25 }
 0x19e   : > { %1077 = vperm.xlu2 %3350, %v951_v28  }
 0x19f   : > { %1029 = vperm.xlu0 %3348, %v935_v29   ;;  %1221 = vperm.xlu1 %3349, %v967_v30   ;;  %v977_v29 = vld [vmem:[%s3738_s27 + $0xb8] sm:$0xff]  ;;  %s5221_s27 = sld [smem:[#allocation33_spill]] (!%p3155_p1) }
 0x1a0   : > { %v991_v32 = vpop.permute.xlu2 %990 }
 0x1a1   : > { %vm1085_vm0 = vcmp.eq.s32.totalorder %v3939_v31, %v991_v32 }
 0x1a2   : > { %3091 = vmatmul.msk.f32.vlgmr.msra.gmra.mxu1 %vm1085_vm0, %v5177_v33 }
 0x1a5   : > { %s5222_s15 = smov (!%p3155_p1), %s5221_s27 }
 0x1a6   : > { %1080 = vperm.xlu2 %3350, %v952_v34  }
 0x1a7   : > { %1032 = vperm.xlu0 %3348, %v936_v35   ;;  %1224 = vperm.xlu1 %3349, %v968_v36   ;;  %v4077_v36 = vld [vmem:[%s3716_s24] sm:$0xff] }
 0x1a8   : > { %v3946_v37 = vpop.permute.xlu2 %1185 }
 0x1a9   : > { %v1261_v38 = vpop.permute.xlu1 %1260  ;;  %v1255_v39 = vpop.permute.xlu0 %1254  ;;  %vm1278_vm8 = vcmp.eq.s32.totalorder %v3939_v31, %v3946_v37 }
 0x1aa   : > { %vm1301_vm1 = vcmp.eq.s32.totalorder %v3939_v31, %v1255_v39  ;;  %vm1303_vm3 = vcmp.eq.s32.totalorder %v3939_v31, %v1261_v38 }
 0x1ab   : > { %3083 = vmatmul.msk.f32.vlgmr.msra.gmra.mxu2 %vm1301_vm1, %v5177_v33 }
 0x1ae   : > { %1083 = vperm.xlu2 %3350, %v953_v40   ;;  %v4088_v40 = vld [vmem:[%s3716_s24 + $0x8] sm:$0xff] }
 0x1af   : > { %1035 = vperm.xlu0 %3348, %v937_v41   ;;  %1227 = vperm.xlu1 %3349, %v969_v42  }
 0x1b0   : > { %v3962_v46 = vpop.permute.xlu2 %999 }
 0x1b1   : > { %v1264_v47 = vpop.permute.xlu1 %1263  ;;  %v1258_v48 = vpop.permute.xlu0 %1257  ;;  %vm1088_vm13 = vcmp.eq.s32.totalorder %v3939_v31, %v3962_v46 }
 0x1b2   : > { %vm1302_vm2 = vcmp.eq.s32.totalorder %v3939_v31, %v1258_v48  ;;  %vm1304_vm4 = vcmp.eq.s32.totalorder %v3939_v31, %v1264_v47  ;;  %v4109_v47 = vld [vmem:[%s3716_s24 + $0x18] sm:$0xff] }
 0x1b3   : > { %3084 = vmatmul.msk.f32.gmra.mxu2 %vm1302_vm2, %v5177_v33 }
 0x1b6   : > { %1041 = vperm.xlu2 %3350, %v939_v50  }
 0x1b7   : > { %1038 = vperm.xlu0 %3348, %v938_v51   ;;  %1230 = vperm.xlu1 %3349, %v970_v52   ;;  %v4119_v51 = vld [vmem:[%s3716_s24 + $0x20] sm:$0xff] }
 0x1b8   : > { %v3982_v56 = vpop.permute.xlu2 %1194 }
 0x1b9   : > { %v3984_v57 = vpop.permute.xlu1 %1275  ;;  %v3986_v58 = vpop.permute.xlu0 %1272 }
 0x1ba   : > { %vm1307_vm15 = vcmp.eq.s32.totalorder %v3939_v31, %v3986_v58 }
 0x1bb   : > { %3085 = vmatmul.msk.f32.gmra.mxu2 %vm1303_vm3, %v5177_v33  ;;  %vm1308_vm3 = vcmp.eq.s32.totalorder %v3939_v31, %v3984_v57 }
 0x1be   : > { %1236 = vperm.xlu2 %3350, %v972_v60  }
 0x1bf   : > { %1233 = vperm.xlu0 %3348, %v971_v61   ;;  %1044 = vperm.xlu1 %3349, %v940_v62   ;;  %v4153_v61 = vld [vmem:[%s3716_s24 + $0x40] sm:$0xff] }
 0x1c0   : > { %v4004_v2 = vpop.permute.xlu2 %1008 }
 0x1c1   : > { %v1183_v3 = vpop.permute.xlu0 %1182  ;;  %v994_v4 = vpop.permute.xlu1 %993 }
 0x1c2   : > { %vm1277_vm5 = vcmp.eq.s32.totalorder %v3939_v31, %v1183_v3  ;;  %vm1086_vm6 = vcmp.eq.s32.totalorder %v3939_v31, %v994_v4  ;;  %v2022_v4 = vld [vmem:[%s5152_s10 + $0x78] sm:$0xff] }
 0x1c3   : > { %3059 = vmatmul.msk.f32.vlgmr.msra.gmra.mxu0 %vm1277_vm5, %v5177_v33  ;;  %3086 = vmatmul.msk.f32.gmra.mxu2 %vm1304_vm4, %v5177_v33  ;;  %vm1281_vm4 = vcmp.eq.s32.totalorder %v3939_v31, %v3982_v56  ;;  %v4137_v56 = vld [vmem:[%s3716_s24 + $0x30] sm:$0xff] }
 0x1c4   : > { %3092 = vmatmul.msk.f32.gmra.mxu1 %vm1086_vm6, %v5177_v33  ;;  %2027 = vmatpush.msrb.mxu3 %v2022_v4 }
 0x1c6   : > { %1050 = vperm.xlu2 %3350, %v942_v6   ;;  %v4176_v6 = vld [vmem:[%s3716_s24 + $0x50] sm:$0xff] }
 0x1c7   : > { %1047 = vperm.xlu0 %3348, %v941_v7   ;;  %1239 = vperm.xlu1 %3349, %v973_v8   ;;  %v2021_v7 = vld [vmem:[%s5152_s10 + $0x70] sm:$0xff]  ;;  %v2020_v8 = vld [vmem:[%s5152_s10 + $0x68] sm:$0xff] }
 0x1c8   : > { %v4031_v12 = vpop.permute.xlu2 %1203  ;;  %2028 = vmatpush.msrb.mxu3 %v2021_v7  ;;  %v4295_v7 = vld [vmem:[%s3716_s24 + $0x80] sm:$0xff] }
 0x1c9   : > { %v997_v13 = vpop.permute.xlu0 %996  ;;  %v1189_v14 = vpop.permute.xlu1 %1188 }
 0x1ca   : > { %vm1087_vm9 = vcmp.eq.s32.totalorder %v3939_v31, %v997_v13  ;;  %vm1279_vm12 = vcmp.eq.s32.totalorder %v3939_v31, %v1189_v14  ;;  %2029 = vmatpush.msrb.mxu3 %v2020_v8  ;;  %v2018_v13 = vld [vmem:[%s5152_s10 + $0x58] sm:$0xff] }
 0x1cb   : > { %3060 = vmatmul.msk.f32.gmra.mxu0 %vm1278_vm8, %v5177_v33  ;;  %3087 = vmatmul.msk.f32.gmra.mxu2 %vm1305_vm7, %v5177_v33  ;;  %vm1091_vm8 = vcmp.eq.s32.totalorder %v3939_v31, %v4004_v2 }
 0x1cc   : > { %3093 = vmatmul.msk.f32.gmra.mxu1 %vm1087_vm9, %v5177_v33  ;;  %2030 = vmatpush.msrb.mxu3 %v2019_v9  ;;  %v4307_v9 = vld [vmem:[%s5151_s9] ss:$0 sm:$0xff] }
 0x1ce   : > { %1245 = vperm.xlu2 %3350, %v975_v16   ;;  %v4202_v16 = vld [vmem:[%s3716_s24 + $0x58] sm:$0xff]  ;;  %2031 = vmatpush.msrb.mxu3 %v2018_v13 }
 0x1cf   : > { %1242 = vperm.xlu0 %3348, %v974_v17   ;;  %1053 = vperm.xlu1 %3349, %v943_v18   ;;  %v2017_v17 = vld [vmem:[%s5152_s10 + $0x50] sm:$0xff]  ;;  %v2016_v18 = vld [vmem:[%s5152_s10 + $0x48] sm:$0xff] }
 0x1d0   : > { %v1063_v19 = vpop.permute.xlu2 %1062  ;;  %2032 = vmatpush.msrb.mxu3 %v2017_v17 }
 0x1d1   : > { %v1192_v20 = vpop.permute.xlu0 %1191  ;;  %v1003_v21 = vpop.permute.xlu1 %1002  ;;  %vm1109_vm10 = vcmp.eq.s32.totalorder %v3939_v31, %v1063_v19  ;;  %v2015_v19 = vld [vmem:[%s5152_s10 + $0x40] sm:$0xff] }
 0x1d2   : > { %3115 = vmatmul.msk.f32.vlgmr.msra.gmra.mxu3 %vm1109_vm10, %v5177_v33  ;;  %vm1280_vm0 = vcmp.eq.s32.totalorder %v3939_v31, %v1192_v20  ;;  %vm1089_vm1 = vcmp.eq.s32.totalorder %v3939_v31, %v1003_v21 }
 0x1d3   : > { %3061 = vmatmul.msk.f32.gmra.mxu0 %vm1279_vm12, %v5177_v33  ;;  %3088 = vmatmul.msk.f32.gmra.mxu2 %vm1306_vm11, %v5177_v33 }
 0x1d4   : > { %3094 = vmatmul.msk.f32.gmra.mxu1 %vm1088_vm13, %v5177_v33  ;;  %vm1284_vm13 = vcmp.eq.s32.totalorder %v3939_v31, %v4031_v12  ;;  %2033 = vmatpush.msrb.mxu3 %v2016_v18 }
 0x1d6   : > { %1059 = vperm.xlu2 %3350, %v945_v22   ;;  %2034 = vmatpush.msrb.mxu3 %v2015_v19  ;;  %v2014_v22 = vld [vmem:[%s5152_s10 + $0x38] sm:$0xff] }
 0x1d7   : > { %1056 = vperm.xlu0 %3348, %v944_v23   ;;  %1248 = vperm.xlu1 %3349, %v976_v24  }
 0x1d8   : > { %v1066_v25 = vpop.permute.xlu2 %1065  ;;  %2035 = vmatpush.msrb.mxu3 %v2014_v22 }
 0x1d9   : > { %v1006_v26 = vpop.permute.xlu0 %1005  ;;  %v1198_v28 = vpop.permute.xlu1 %1197  ;;  %vm1110_vm14 = vcmp.eq.s32.totalorder %v3939_v31, %v1066_v25 }
 0x1da   : > { %3116 = vmatmul.msk.f32.gmra.mxu3 %vm1110_vm14, %v5177_v33  ;;  %vm1090_vm5 = vcmp.eq.s32.totalorder %v3939_v31, %v1006_v26  ;;  %vm1282_vm7 = vcmp.eq.s32.totalorder %v3939_v31, %v1198_v28  ;;  %v4228_v26 = vld [vmem:[%s3716_s24 + $0x60] sm:$0xff]  ;;  %v2013_v28 = vld [vmem:[%s5152_s10 + $0x30] sm:$0xff] }
 0x1db   : > { %3062 = vmatmul.msk.f32.gmra.mxu0 %vm1280_vm0, %v5177_v33  ;;  %3089 = vmatmul.msk.f32.gmra.mxu2 %vm1307_vm15, %v5177_v33 }
 0x1dc   : > { %3095 = vmatmul.msk.f32.gmra.mxu1 %vm1089_vm1, %v5177_v33  ;;  %2036 = vmatpush.msrb.mxu3 %v2013_v28 }
 0x1df   : > { %1251 = vperm.xlu0 %3348, %v977_v29   ;;  %v2012_v29 = vld [vmem:[%s5152_s10 + $0x28] sm:$0xff] }
 0x1e0   : > { %v1069_v30 = vpop.permute.xlu2 %1068  ;;  %2037 = vmatpush.msrb.mxu3 %v2012_v29 }
 0x1e1   : > { %v1201_v32 = vpop.permute.xlu0 %1200  ;;  %vm1111_vm2 = vcmp.eq.s32.totalorder %v3939_v31, %v1069_v30  ;;  %v1012_v34 = vpop.permute.xlu1 %1011  ;;  %v2011_v30 = vld [vmem:[%s5152_s10 + $0x20] sm:$0xff] }
 0x1e2   : > { %3117 = vmatmul.msk.f32.gmra.mxu3 %vm1111_vm2, %v5177_v33  ;;  %vm1283_vm10 = vcmp.eq.s32.totalorder %v3939_v31, %v1201_v32  ;;  %vm1092_vm11 = vcmp.eq.s32.totalorder %v3939_v31, %v1012_v34 }
 0x1e3   : > { %3063 = vmatmul.msk.f32.gmra.mxu0 %vm1281_vm4, %v5177_v33  ;;  %3090 = vmatmul.msk.f32.gmra.mxu2 %vm1308_vm3, %v5177_v33 }
 0x1e4   : > { %3096 = vmatmul.msk.f32.gmra.mxu1 %vm1090_vm5, %v5177_v33  ;;  %2038 = vmatpush.msrb.mxu3 %v2011_v30 }
 0x1e8   : > { %v1072_v35 = vpop.permute.xlu2 %1071 }
 0x1e9   : > { %v1015_v37 = vpop.permute.xlu0 %1014  ;;  %vm1112_vm6 = vcmp.eq.s32.totalorder %v3939_v31, %v1072_v35  ;;  %v1207_v38 = vpop.permute.xlu1 %1206  ;;  %v2010_v35 = vld [vmem:[%s5152_s10 + $0x18] sm:$0xff] }
 0x1ea   : > { %3118 = vmatmul.msk.f32.gmra.mxu3 %vm1112_vm6, %v5177_v33  ;;  %vm1093_vm14 = vcmp.eq.s32.totalorder %v3939_v31, %v1015_v37  ;;  %vm1285_vm0 = vcmp.eq.s32.totalorder %v3939_v31, %v1207_v38 }
 0x1eb   : > { %3064 = vmatmul.msk.f32.gmra.mxu0 %vm1282_vm7, %v5177_v33  ;;  %1810 = vmatmul.f32.vlgmr.msrb.gmra.mxu2 %v4077_v36 }
 0x1ec   : > { %3097 = vmatmul.msk.f32.gmra.mxu1 %vm1091_vm8, %v5177_v33  ;;  %2039 = vmatpush.msrb.mxu3 %v2010_v35 }
 0x1f0   : > { %v1075_v39 = vpop.permute.xlu2 %1074 }
 0x1f1   : > { %vm1113_vm9 = vcmp.eq.s32.totalorder %v3939_v31, %v1075_v39  ;;  %v1018_v41 = vpop.permute.xlu0 %1017  ;;  %v1210_v42 = vpop.permute.xlu1 %1209  ;;  %v4252_v39 = vld [vmem:[%s3716_s24 + $0x68] sm:$0xff] }
 0x1f2   : > { %3119 = vmatmul.msk.f32.gmra.mxu3 %vm1113_vm9, %v5177_v33  ;;  %vm1094_vm1 = vcmp.eq.s32.totalorder %v3939_v31, %v1018_v41  ;;  %vm1286_vm3 = vcmp.eq.s32.totalorder %v3939_v31, %v1210_v42  ;;  %v2009_v41 = vld [vmem:[%s5152_s10 + $0x10] sm:$0xff]  ;;  %v2008_v42 = vld [vmem:[%s5152_s10 + $0x8] sm:$0xff] }
 0x1f3   : > { %3065 = vmatmul.msk.f32.gmra.mxu0 %vm1283_vm10, %v5177_v33  ;;  %1813 = vmatmul.f32.gmra.mxu2 %v4088_v40 }
 0x1f4   : > { %3098 = vmatmul.msk.f32.gmra.mxu1 %vm1092_vm11, %v5177_v33  ;;  %2040 = vmatpush.msrb.mxu3 %v2009_v41 }
 0x1f6   : > { %2041 = vmatpush.msrb.mxu3 %v2008_v42 }
 0x1f8   : > { %v1078_v43 = vpop.permute.xlu2 %1077 }
 0x1f9   : > { %vm1114_vm12 = vcmp.eq.s32.totalorder %v3939_v31, %v1078_v43  ;;  %v1021_v45 = vpop.permute.xlu0 %1020  ;;  %v1213_v48 = vpop.permute.xlu1 %1212 }
 0x1fa   : > { %3120 = vmatmul.msk.f32.gmra.mxu3 %vm1114_vm12, %v5177_v33  ;;  %vm1095_vm4 = vcmp.eq.s32.totalorder %v3939_v31, %v1021_v45  ;;  %vm1287_vm5 = vcmp.eq.s32.totalorder %v3939_v31, %v1213_v48  ;;  %v2007_v45 = vld [vmem:[%s5152_s10] sm:$0xff] }
 0x1fb   : > { %3066 = vmatmul.msk.f32.gmra.mxu0 %vm1284_vm13, %v5177_v33  ;;  %1816 = vmatmul.f32.gmra.mxu2 %v4098_v44 }
 0x1fc   : > { %3099 = vmatmul.msk.f32.gmra.mxu1 %vm1093_vm14, %v5177_v33  ;;  %2042 = vmatpush.msrb.mxu3 %v2007_v45  ;;  %v4330_v45 = vld [vmem:[%s3716_s24 + $0x98] sm:$0xff] }
 0x200   : > { %v1081_v46 = vpop.permute.xlu2 %1080 }
 0x201   : > { %vm1115_vm15 = vcmp.eq.s32.totalorder %v3939_v31, %v1081_v46  ;;  %v1024_v49 = vpop.permute.xlu0 %1023  ;;  %v1216_v52 = vpop.permute.xlu1 %1215 }
 0x202   : > { %3121 = vmatmul.msk.f32.gmra.mxu3 %vm1115_vm15, %v5177_v33  ;;  %vm1096_vm6 = vcmp.eq.s32.totalorder %v3939_v31, %v1024_v49  ;;  %vm1288_vm7 = vcmp.eq.s32.totalorder %v3939_v31, %v1216_v52 }
 0x203   : > { %3067 = vmatmul.msk.f32.gmra.mxu0 %vm1285_vm0, %v5177_v33  ;;  %1819 = vmatmul.f32.gmra.mxu2 %v4109_v47 }
 0x204   : > { %3100 = vmatmul.msk.f32.gmra.mxu1 %vm1094_vm1, %v5177_v33 }
 0x208   : > { %v1084_v50 = vpop.permute.xlu2 %1083 }
 0x209   : > { %vm1116_vm2 = vcmp.eq.s32.totalorder %v3939_v31, %v1084_v50  ;;  %v1027_v53 = vpop.permute.xlu0 %1026  ;;  %v1219_v55 = vpop.permute.xlu1 %1218  ;;  %v4273_v50 = vld [vmem:[%s3716_s24 + $0x70] sm:$0xff] }
 0x20a   : > { %3122 = vmatmul.msk.f32.gmra.mxu3 %vm1116_vm2, %v5177_v33  ;;  %vm1097_vm8 = vcmp.eq.s32.totalorder %v3939_v31, %v1027_v53  ;;  %vm1289_vm9 = vcmp.eq.s32.totalorder %v3939_v31, %v1219_v55 }
 0x20b   : > { %3068 = vmatmul.msk.f32.gmra.mxu0 %vm1286_vm3, %v5177_v33  ;;  %1822 = vmatmul.f32.gmra.mxu2 %v4119_v51 }
 0x20c   : > { %3101 = vmatmul.msk.f32.gmra.mxu1 %vm1095_vm4, %v5177_v33 }
 0x210   : > { %v1042_v14 = vpop.permute.xlu2 %1041 }
 0x211   : > { %v1030_v57 = vpop.permute.xlu0 %1029  ;;  %v1222_v58 = vpop.permute.xlu1 %1221  ;;  %vm1102_vm2 = vcmp.eq.s32.totalorder %v3939_v31, %v1042_v14 }
 0x212   : > { %vm1098_vm10 = vcmp.eq.s32.totalorder %v3939_v31, %v1030_v57  ;;  %vm1290_vm11 = vcmp.eq.s32.totalorder %v3939_v31, %v1222_v58 }
 0x213   : > { %3069 = vmatmul.msk.f32.gmra.mxu0 %vm1287_vm5, %v5177_v33  ;;  %1825 = vmatmul.f32.gmra.mxu2 %v4129_v54 }
 0x214   : > { %3102 = vmatmul.msk.f32.gmra.mxu1 %vm1096_vm6, %v5177_v33 }
 0x218   : > { %v1237_v32 = vpop.permute.xlu2 %1236 }
 0x219   : > { %v1033_v60 = vpop.permute.xlu0 %1032  ;;  %v1225_v62 = vpop.permute.xlu1 %1224  ;;  %vm1295_vm5 = vcmp.eq.s32.totalorder %v3939_v31, %v1237_v32  ;;  %v4321_v32 = vld [vmem:[%s3716_s24 + $0x90] sm:$0xff] }
 0x21a   : > { %vm1099_vm12 = vcmp.eq.s32.totalorder %v3939_v31, %v1033_v60  ;;  %vm1291_vm13 = vcmp.eq.s32.totalorder %v3939_v31, %v1225_v62  ;;  %v4285_v60 = vld [vmem:[%s3716_s24 + $0x78] sm:$0xff] }
 0x21b   : > { %3070 = vmatmul.msk.f32.gmra.mxu0 %vm1288_vm7, %v5177_v33  ;;  %1828 = vmatmul.f32.gmra.mxu2 %v4137_v56 }
 0x21c   : > { %3103 = vmatmul.msk.f32.gmra.mxu1 %vm1097_vm8, %v5177_v33 }
 0x21f   : > { %v4192_v11 = vpop.f32.mrf.mxu1 }
 0x220   : > { %v1051_v49 = vpop.permute.xlu2 %1050 }
 0x221   : > { %v1036_v63 = vpop.permute.xlu0 %1035  ;;  %v1228_v2 = vpop.permute.xlu1 %1227  ;;  %vm1105_vm8 = vcmp.eq.s32.totalorder %v3939_v31, %v1051_v49 }
 0x222   : > { %vm1100_vm14 = vcmp.eq.s32.totalorder %v3939_v31, %v1036_v63  ;;  %vm1292_vm15 = vcmp.eq.s32.totalorder %v3939_v31, %v1228_v2 }
 0x223   : > { %3071 = vmatmul.msk.f32.gmra.mxu0 %vm1289_vm9, %v5177_v33  ;;  %1831 = vmatmul.f32.gmra.mxu2 %v4145_v59 }
 0x224   : > { %3104 = vmatmul.msk.f32.gmra.mxu1 %vm1098_vm10, %v5177_v33 }
 0x228   : > { %v1246_v63 = vpop.permute.xlu2 %1245 }
 0x229   : > { %v1039_v5 = vpop.permute.xlu0 %1038  ;;  %v1231_v10 = vpop.permute.xlu1 %1230 }
 0x22a   : > { %vm1101_vm0 = vcmp.eq.s32.totalorder %v3939_v31, %v1039_v5  ;;  %vm1293_vm1 = vcmp.eq.s32.totalorder %v3939_v31, %v1231_v10 }
 0x22b   : > { %3072 = vmatmul.msk.f32.gmra.mxu0 %vm1290_vm11, %v5177_v33  ;;  %1834 = vmatmul.f32.gmra.mxu2 %v4153_v61  ;;  %vm1298_vm11 = vcmp.eq.s32.totalorder %v3939_v31, %v1246_v63 }
 0x22c   : > { %3105 = vmatmul.msk.f32.gmra.mxu1 %vm1099_vm12, %v5177_v33 }
 0x22e   : > { %v4160_v0 = vpop.f32.mrf.mxu2 }
 0x230   : > { %v1060_v18 = vpop.permute.xlu2 %1059 }
 0x231   : > { %v1234_v20 = vpop.permute.xlu0 %1233  ;;  %v1045_v23 = vpop.permute.xlu1 %1044 }
 0x232   : > { %vm1294_vm3 = vcmp.eq.s32.totalorder %v3939_v31, %v1234_v20  ;;  %vm1103_vm4 = vcmp.eq.s32.totalorder %v3939_v31, %v1045_v23  ;;  %v4310_v20 = vld [vmem:[%s3716_s24 + $0x88] sm:$0xff] }
 0x233   : > { %3073 = vmatmul.msk.f32.gmra.mxu0 %vm1291_vm13, %v5177_v33  ;;  %1837 = vmatmul.f32.gmra.mxu2 %v4163_v1 }
 0x234   : > { %3106 = vmatmul.msk.f32.gmra.mxu1 %vm1100_vm14, %v5177_v33  ;;  %vm1108_vm14 = vcmp.eq.s32.totalorder %v3939_v31, %v1060_v18 }
 0x236   : > { %v4170_v3 = vpop.f32.mrf.mxu2 }
 0x239   : > { %v1048_v37 = vpop.permute.xlu0 %1047  ;;  %v1240_v46 = vpop.permute.xlu1 %1239 }
 0x23a   : > { %vm1104_vm6 = vcmp.eq.s32.totalorder %v3939_v31, %v1048_v37  ;;  %vm1296_vm7 = vcmp.eq.s32.totalorder %v3939_v31, %v1240_v46 }
 0x23b   : > { %3074 = vmatmul.msk.f32.gmra.mxu0 %vm1292_vm15, %v5177_v33  ;;  %1840 = vmatmul.f32.gmra.mxu2 %v4176_v6 }
 0x23c   : > { %3107 = vmatmul.msk.f32.gmra.mxu1 %vm1101_vm0, %v5177_v33 }
 0x23e   : > { %v4194_v12 = vpop.f32.mrf.mxu2 }
 0x240   : > { %v4199_v15 = vpop.f32.mrf.mxu0 }
 0x241   : > { %v4223_v24 = vpop.f32.mrf.mxu1  ;;  %v1243_v55 = vpop.permute.xlu0 %1242  ;;  %v1683_v8 = vadd.f32 %v4192_v11, %v4199_v15 }
 0x242   : > { %v1054_v58 = vpop.permute.xlu1 %1053  ;;  %vm1297_vm9 = vcmp.eq.s32.totalorder %v3939_v31, %v1243_v55 }
 0x243   : > { %3075 = vmatmul.msk.f32.gmra.mxu0 %vm1293_vm1, %v5177_v33  ;;  %1843 = vmatmul.f32.gmra.mxu2 %v4202_v16  ;;  %vm1106_vm10 = vcmp.eq.s32.totalorder %v3939_v31, %v1054_v58 }
 0x244   : > { %3108 = vmatmul.msk.f32.gmra.mxu1 %vm1102_vm2, %v5177_v33 }
 0x246   : > { %v4218_v21 = vpop.f32.mrf.mxu2 }
 0x248   : > { %v4225_v25 = vpop.f32.mrf.mxu0 }
 0x249   : > { %v4261_v43 = vpop.f32.mrf.mxu1  ;;  %v1057_v5 = vpop.permute.xlu0 %1056  ;;  %v1686_v15 = vadd.f32 %v4223_v24, %v4225_v25 }
 0x24a   : > { %vm1107_vm12 = vcmp.eq.s32.totalorder %v3939_v31, %v1057_v5  ;;  %v1249_v14 = vpop.permute.xlu1 %1248 }
 0x24b   : > { %3076 = vmatmul.msk.f32.gmra.mxu0 %vm1294_vm3, %v5177_v33  ;;  %1846 = vmatmul.f32.gmra.mxu2 %v4228_v26  ;;  %vm1299_vm13 = vcmp.eq.s32.totalorder %v3939_v31, %v1249_v14 }
 0x24c   : > { %3109 = vmatmul.msk.f32.gmra.mxu1 %vm1103_vm4, %v5177_v33 }
 0x24e   : > { %v4244_v34 = vpop.f32.mrf.mxu2 }
 0x250   : > { %v4249_v38 = vpop.f32.mrf.mxu0 }
 0x251   : > { %v1691_v53 = vpop.f32.mrf.mxu1  ;;  %v1252_v28 = vpop.permute.xlu0 %1251  ;;  %v1689_v24 = vadd.f32 %v4261_v43, %v4249_v38 }
 0x252   : > { %vm1300_vm15 = vcmp.eq.s32.totalorder %v3939_v31, %v1252_v28 }
 0x253   : > { %3077 = vmatmul.msk.f32.gmra.mxu0 %vm1295_vm5, %v5177_v33  ;;  %1849 = vmatmul.f32.gmra.mxu2 %v4252_v39 }
 0x254   : > { %3110 = vmatmul.msk.f32.gmra.mxu1 %vm1104_vm6, %v5177_v33 }
 0x256   : > { %v4270_v48 = vpop.f32.mrf.mxu2 }
 0x258   : > { %v4276_v52 = vpop.f32.mrf.mxu0 }
 0x259   : > { %v1694_v2 = vpop.f32.mrf.mxu1  ;;  %v1692_v58 = vadd.f32 %v1691_v53, %v4276_v52 }
 0x25b   : > { %3078 = vmatmul.msk.f32.gmra.mxu0 %vm1296_vm7, %v5177_v33  ;;  %1852 = vmatmul.f32.gmra.mxu2 %v4273_v50 }
 0x25c   : > { %3111 = vmatmul.msk.f32.gmra.mxu1 %vm1105_vm8, %v5177_v33 }
 0x25e   : > { %v4282_v57 = vpop.f32.mrf.mxu2 }
 0x260   : > { %v1581_v62 = vpop.f32.mrf.mxu0 }
 0x261   : > { %v1697_v19 = vpop.f32.mrf.mxu1  ;;  %v1695_v14 = vadd.f32 %v1694_v2, %v1581_v62 }
 0x263   : > { %3079 = vmatmul.msk.f32.gmra.mxu0 %vm1297_vm9, %v5177_v33  ;;  %1855 = vmatmul.f32.gmra.mxu2 %v4285_v60 }
 0x264   : > { %3112 = vmatmul.msk.f32.gmra.mxu1 %vm1106_vm10, %v5177_v33 }
 0x266   : > { %v4292_v4 = vpop.f32.mrf.mxu2 }
 0x268   : > { %v1584_v10 = vpop.f32.mrf.mxu0 }
 0x269   : > { %v1700_v37 = vpop.f32.mrf.mxu1 }
 0x26b   : > { %3080 = vmatmul.msk.f32.gmra.mxu0 %vm1298_vm11, %v5177_v33  ;;  %1858 = vmatmul.f32.gmra.mxu2 %v4295_v7 }
 0x26c   : > { %3113 = vmatmul.msk.f32.gmra.mxu1 %vm1107_vm12, %v5177_v33 }
 0x26e   : > { %v1811_v13 = vpop.f32.mrf.mxu2 }
 0x26f   : > { %v1907_v17 = vadd.f32 %v1811_v13, %v1683_v8  ;;  %v4336_v8 = vld [vmem:[%s3716_s24 + $0xa0] sm:$0xff] }
 0x270   : > { %v1587_v30 = vpop.f32.mrf.mxu0 }
 0x271   : > { %v1943_v22 = vadd.f32 %v4307_v9, %v1907_v17  ;;  %v1703_v55 = vpop.f32.mrf.mxu1 }
 0x273   : > { %3081 = vmatmul.msk.f32.gmra.mxu0 %vm1299_vm13, %v5177_v33  ;;  %1861 = vmatmul.f32.gmra.mxu2 %v4310_v20  ;;  %v1975_v11 = vmax.f32 %v1943_v22, 0.0 }
 0x274   : > { %3114 = vmatmul.msk.f32.gmra.mxu1 %vm1108_vm14, %v5177_v33 }
 0x275   : > { %2043 = vmatmul.f32.vlgmr.msrb.gmra.mxu3 %v1975_v11  ;;  %v4341_v11 = vld [vmem:[%s3716_s24 + $0xa8] sm:$0xff] }
 0x276   : > { %v1814_v23 = vpop.f32.mrf.mxu2 }
 0x277   : > { %v1908_v29 = vadd.f32 %v1814_v23, %v1686_v15  ;;  %v1698_v15 = vadd.f32 %v1697_v19, %v1584_v10 }
 0x278   : > { %v1590_v49 = vpop.f32.mrf.mxu0 }
 0x279   : > { %v1944_v35 = vadd.f32 %v4307_v9, %v1908_v29  ;;  %v1706_v17 = vpop.f32.mrf.mxu1 }
 0x27b   : > { %3082 = vmatmul.msk.f32.gmra.mxu0 %vm1300_vm15, %v5177_v33  ;;  %1864 = vmatmul.f32.gmra.mxu2 %v4321_v32  ;;  %v1976_v41 = vmax.f32 %v1944_v35, 0.0 }
 0x27d   : > { %2046 = vmatmul.f32.gmra.mxu3 %v1976_v41  ;;  %v4346_v41 = vld [vmem:[%s3716_s24 + $0xb0] sm:$0xff] }
 0x27e   : > { %v1817_v25 = vpop.f32.mrf.mxu2 }
 0x27f   : > { %v1909_v42 = vadd.f32 %v1817_v25, %v1689_v24  ;;  %v1701_v24 = vadd.f32 %v1700_v37, %v1587_v30  ;;  %v4358_v30 = vpop.f32.mrf.mxu3 }
 0x280   : > { %v1593_v13 = vpop.f32.mrf.mxu0 }
 0x281   : > { %v1945_v46 = vadd.f32 %v4307_v9, %v1909_v42  ;;  %v1709_v35 = vpop.f32.mrf.mxu1 }
 0x283   : > { %1867 = vmatmul.f32.gmra.mxu2 %v4330_v45  ;;  %v1977_v31 = vmax.f32 %v1945_v46, 0.0 }
 0x285   : > { %2049 = vmatmul.f32.gmra.mxu3 %v1977_v31  ;;  %v4351_v31 = vld [vmem:[%s3716_s24 + $0xb8] sm:$0xff] }
 0x286   : > { %v1820_v63 = vpop.f32.mrf.mxu2 }
 0x287   : > { %v1910_v5 = vadd.f32 %v1820_v63, %v1692_v58  ;;  %v1704_v63 = vadd.f32 %v1703_v55, %v1590_v49  ;;  %v4363_v49 = vld [vmem:[%s3716_s24 + $0xc8] sm:$0xff] }
 0x288   : > { %v1596_v23 = vpop.f32.mrf.mxu0 }
 0x289   : > { %v1946_v38 = vadd.f32 %v4307_v9, %v1910_v5  ;;  %v1712_v19 = vpop.f32.mrf.mxu1 }
 0x28b   : > { %1870 = vmatmul.f32.gmra.mxu2 %v4336_v8  ;;  %v1978_v43 = vmax.f32 %v1946_v38, 0.0 }
 0x28d   : > { %2052 = vmatmul.f32.gmra.mxu3 %v1978_v43  ;;  %v4356_v43 = vld [vmem:[%s3716_s24 + $0xc0] sm:$0xff] }
 0x28e   : > { %v1823_v18 = vpop.f32.mrf.mxu2 }
 0x28f   : > { %v1911_v22 = vadd.f32 %v1823_v18, %v1695_v14 }
 0x290   : > { %v1599_v46 = vpop.f32.mrf.mxu0 }
 0x291   : > { %v1947_v52 = vadd.f32 %v4307_v9, %v1911_v22  ;;  %v1715_v22 = vpop.f32.mrf.mxu1 }
 0x293   : > { %1873 = vmatmul.f32.gmra.mxu2 %v4341_v11  ;;  %v1979_v53 = vmax.f32 %v1947_v52, 0.0  ;;  %v1707_v52 = vadd.f32 %v1706_v17, %v1593_v13  ;;  %v4370_v13 = vld [vmem:[%s3716_s24 + $0xd0] sm:$0xff] }
 0x295   : > { %2055 = vmatmul.f32.gmra.mxu3 %v1979_v53 }
 0x296   : > { %v1826_v28 = vpop.f32.mrf.mxu2 }
 0x297   : > { %v1912_v29 = vadd.f32 %v1826_v28, %v1698_v15  ;;  %v4366_v28 = vpop.f32.mrf.mxu3 }
 0x298   : > { %v1602_v14 = vpop.f32.mrf.mxu0 }
 0x299   : > { %v1948_v62 = vadd.f32 %v4307_v9, %v1912_v29 }
 0x29b   : > { %1876 = vmatmul.f32.gmra.mxu2 %v4346_v41  ;;  %v1980_v2 = vmax.f32 %v1948_v62, 0.0 }
 0x29d   : > { %2058 = vmatmul.f32.gmra.mxu3 %v1980_v2  ;;  %v1710_v2 = vadd.f32 %v1709_v35, %v1596_v23 }
 0x29e   : > { %v1829_v25 = vpop.f32.mrf.mxu2 }
 0x29f   : > { %v1913_v42 = vadd.f32 %v1829_v25, %v1701_v24  ;;  %v1718_v24 = vpop.f32.mrf.mxu1 }
 0x2a0   : > { %v1605_v62 = vpop.f32.mrf.mxu0 }
 0x2a1   : > { %v1949_v10 = vadd.f32 %v4307_v9, %v1913_v42 }
 0x2a3   : > { %1879 = vmatmul.f32.gmra.mxu2 %v4351_v31  ;;  %v1981_v58 = vmax.f32 %v1949_v10, 0.0 }
 0x2a5   : > { %2061 = vmatmul.f32.gmra.mxu3 %v1981_v58  ;;  %v4374_v58 = vpop.f32.mrf.mxu3 }
 0x2a6   : > { %v1832_v5 = vpop.f32.mrf.mxu2 }
 0x2a7   : > { %v1914_v38 = vadd.f32 %v1832_v5, %v1704_v63  ;;  %v1713_v63 = vadd.f32 %v1712_v19, %v1599_v46  ;;  %v1721_v35 = vpop.f32.mrf.mxu1 }
 0x2a8   : > { %v1608_v5 = vpop.f32.mrf.mxu0 }
 0x2a9   : > { %v1950_v37 = vadd.f32 %v4307_v9, %v1914_v38 }
 0x2ab   : > { %1882 = vmatmul.f32.gmra.mxu2 %v4356_v43  ;;  %v1982_v18 = vmax.f32 %v1950_v37, 0.0  ;;  %v4377_v37 = vld [vmem:[%s3716_s24 + $0xd8] sm:$0xff] }
 0x2ad   : > { %2064 = vmatmul.f32.gmra.mxu3 %v1982_v18 }
 0x2ae   : > { %v1835_v53 = vpop.f32.mrf.mxu2 }
 0x2af   : > { %v1915_v15 = vadd.f32 %v1835_v53, %v1707_v52  ;;  %v1716_v53 = vadd.f32 %v1715_v22, %v1602_v14  ;;  %v4389_v14 = vld [vmem:[%s3716_s24 + $0xe8] sm:$0xff] }
 0x2b0   : > { %v1611_v19 = vpop.f32.mrf.mxu0  ;;  %5211 = vst [vmem:[#allocation24_spill] sm:$0xff] %v4389_v14 }
 0x2b1   : > { %v1951_v55 = vadd.f32 %v4307_v9, %v1915_v15 }
 0x2b3   : > { %1885 = vmatmul.f32.gmra.mxu2 %v4363_v49  ;;  %v1983_v29 = vmax.f32 %v1951_v55, 0.0  ;;  %v4381_v55 = vpop.f32.mrf.mxu3 }
 0x2b5   : > { %2067 = vmatmul.f32.gmra.mxu3 %v1983_v29  ;;  %v4384_v29 = vld [vmem:[%s3716_s24 + $0xe0] sm:$0xff] }
 0x2b6   : > { %v1838_v25 = vpop.f32.mrf.mxu2 }
 0x2b7   : > { %v1916_v42 = vadd.f32 %v1838_v25, %v1710_v2  ;;  %v1724_v25 = vpop.f32.mrf.mxu1 }
 0x2b9   : > { %v1952_v17 = vadd.f32 %v4307_v9, %v1916_v42 }
 0x2bb   : > { %1888 = vmatmul.f32.gmra.mxu2 %v4370_v13  ;;  %v1984_v10 = vmax.f32 %v1952_v17, 0.0  ;;  %v1719_v17 = vadd.f32 %v1718_v24, %v1605_v62  ;;  %v4391_v22 = vpop.f32.mrf.mxu3  ;;  %v4396_v62 = vld [vmem:[%s3716_s24 + $0xf0] sm:$0xff]  ;;  %s2140_s24 = sadd.f32 1.0, %s3724_s25 }
 0x2bc   : > { %5212 = vst [vmem:[#allocation25_spill] sm:$0xff] %v4396_v62 }
 0x2bd   : > { %2070 = vmatmul.f32.gmra.mxu3 %v1984_v10 }
 0x2be   : > { %v1841_v38 = vpop.f32.mrf.mxu2 }
 0x2bf   : > { %v1917_v23 = vadd.f32 %v1841_v38, %v1713_v63 }
 0x2c1   : > { %v1953_v18 = vadd.f32 %v4307_v9, %v1917_v23  ;;  %v1614_v23 = vpop.f32.mrf.mxu0 }
 0x2c3   : > { %1891 = vmatmul.f32.gmra.mxu2 %v4377_v37  ;;  %v1985_v52 = vmax.f32 %v1953_v18, 0.0 }
 0x2c5   : > { %2073 = vmatmul.f32.gmra.mxu3 %v1985_v52  ;;  %v1727_v52 = vpop.f32.mrf.mxu1 }
 0x2c6   : > { %v1844_v15 = vpop.f32.mrf.mxu2 }
 0x2c7   : > { %v1918_v46 = vadd.f32 %v1844_v15, %v1716_v53  ;;  %v1722_v53 = vadd.f32 %v1721_v35, %v1608_v5 }
 0x2c9   : > { %v1954_v2 = vadd.f32 %v4307_v9, %v1918_v46 }
 0x2cb   : > { %1894 = vmatmul.f32.gmra.mxu2 %v4384_v29  ;;  %v1986_v42 = vmax.f32 %v1954_v2, 0.0  ;;  %v4399_v2 = vpop.f32.mrf.mxu3 }
 0x2cd   : > { %2076 = vmatmul.f32.gmra.mxu3 %v1986_v42 }
 0x2ce   : > { %v1847_v10 = vpop.f32.mrf.mxu2 }
 0x2cf   : > { %v1919_v63 = vadd.f32 %v1847_v10, %v1719_v17  ;;  %v1617_v17 = vpop.f32.mrf.mxu0  ;;  %v1725_v10 = vadd.f32 %v1724_v25, %v1611_v19 }
 0x2d1   : > { %v1955_v38 = vadd.f32 %v4307_v9, %v1919_v63  ;;  %v1730_v63 = vpop.f32.mrf.mxu1 }
 0x2d3   : > { %1897 = vmatmul.f32.gmra.mxu2 %v4389_v14  ;;  %v1987_v18 = vmax.f32 %v1955_v38, 0.0 }
 0x2d5   : > { %2079 = vmatmul.f32.gmra.mxu3 %v1987_v18  ;;  %v4407_v18 = vpop.f32.mrf.mxu3 }
 0x2d6   : > { %v1850_v15 = vpop.f32.mrf.mxu2 }
 0x2d7   : > { %v1920_v46 = vadd.f32 %v1850_v15, %v1722_v53  ;;  %v1728_v53 = vadd.f32 %v1727_v52, %v1614_v23  ;;  %v1620_v15 = vpop.f32.mrf.mxu0  ;;  %v4414_v52 = vstv %s2140_s24 }
 0x2d9   : > { %v1956_v24 = vadd.f32 %v4307_v9, %v1920_v46  ;;  %v1733_v19 = vpop.f32.mrf.mxu1 }
 0x2db   : > { %1900 = vmatmul.f32.gmra.mxu2 %v4396_v62  ;;  %v1988_v42 = vmax.f32 %v1956_v24, 0.0 }
 0x2dd   : > { %2082 = vmatmul.f32.gmra.mxu3 %v1988_v42 }
 0x2de   : > { %v1853_v38 = vpop.f32.mrf.mxu2 }
 0x2df   : > { %v1921_v33 = vadd.f32 %v1853_v38, %v1725_v10  ;;  %v1731_v10 = vadd.f32 %v1730_v63, %v1617_v17  ;;  %v4419_v17 = vld [vmem:[%s5153_s11] ss:$0 sm:$0xff] }
 0x2e1   : > { %v1957_v5 = vadd.f32 %v4307_v9, %v1921_v33  ;;  %v4411_v33 = vpop.f32.mrf.mxu3  ;;  %v1736_v14 = vpop.f32.mrf.mxu1 }
 0x2e3   : > { %1903 = vmatmul.f32.gmra.mxu2 %v4403_v27  ;;  %v1989_v35 = vmax.f32 %v1957_v5, 0.0  ;;  %v1623_v27 = vpop.f32.mrf.mxu0 }
 0x2e5   : > { %2085 = vmatmul.f32.gmra.mxu3 %v1989_v35  ;;  %v1734_v35 = vadd.f32 %v1733_v19, %v1620_v15  ;;  %v1737_v19 = vadd.f32 %v1736_v14, %v1623_v27 }
 0x2e6   : > { %v1856_v46 = vpop.f32.mrf.mxu2 }
 0x2e7   : > { %v1922_v24 = vadd.f32 %v1856_v46, %v1728_v53  ;;  %v2142_v53 = vmul.f32 %v4414_v52, %v4077_v36  ;;  %v2143_v36 = vmul.f32 %v4414_v52, %v4088_v40  ;;  %v2144_v40 = vmul.f32 %v4414_v52, %v4098_v44 }
 0x2e9   : > { %v1958_v25 = vadd.f32 %v4307_v9, %v1922_v24  ;;  %v1739_v15 = vpop.f32.mrf.mxu1 }
 0x2eb   : > { %v1990_v42 = vmax.f32 %v1958_v25, 0.0 }
 0x2ed   : > { %2088 = vmatmul.f32.gmra.mxu3 %v1990_v42  ;;  %v1626_v42 = vpop.f32.mrf.mxu0 }
 0x2ee   : > { %v1859_v38 = vpop.f32.mrf.mxu2 }
 0x2ef   : > { %v1923_v62 = vadd.f32 %v1859_v38, %v1731_v10 }
 0x2f1   : > { %v1959_v5 = vadd.f32 %v4307_v9, %v1923_v62  ;;  %v1742_v27 = vpop.f32.mrf.mxu1 }
 0x2f3   : > { %v1991_v23 = vmax.f32 %v1959_v5, 0.0 }
 0x2f5   : > { %2091 = vmatmul.f32.gmra.mxu3 %v1991_v23 }
 0x2f6   : > { %v1862_v63 = vpop.f32.mrf.mxu2 }
 0x2f7   : > { %v1924_v46 = vadd.f32 %v1862_v63, %v1734_v35 }
 0x2f8   : > { %v2044_v24 = vpop.f32.mrf.mxu3 }
 0x2f9   : > { %v1960_v62 = vadd.f32 %v4307_v9, %v1924_v46  ;;  %v2045_v25 = vadd.f32 %v4419_v17, %v2044_v24 }
 0x2fb   : > { %v1992_v10 = vmax.f32 %v1960_v62, 0.0  ;;  %v4425_v38 = vadd.f32 %v2142_v53, %v2045_v25  ;;  %v1629_v53 = vpop.f32.mrf.mxu0  ;;  %v1740_v25 = vadd.f32 %v1739_v15, %v1626_v42 }
 0x2fd   : > { %2094 = vmatmul.f32.gmra.mxu3 %v1992_v10  ;;  %2206 = vst [vmem:[%s3744_s1] sm:$0xff] %v4425_v38 }
 0x2fe   : > { %v1865_v5 = vpop.f32.mrf.mxu2 }
 0x2ff   : > { %v1925_v23 = vadd.f32 %v1865_v5, %v1737_v19 }
 0x300   : > { %v2047_v35 = vpop.f32.mrf.mxu3 }
 0x301   : > { %v1961_v63 = vadd.f32 %v4307_v9, %v1925_v23  ;;  %v2048_v46 = vadd.f32 %v4419_v17, %v2047_v35 }
 0x303   : > { %v1993_v24 = vmax.f32 %v1961_v63, 0.0  ;;  %v4433_v62 = vadd.f32 %v2143_v36, %v2048_v46  ;;  %v1743_v63 = vadd.f32 %v1742_v27, %v1629_v53  ;;  %v1632_v42 = vpop.f32.mrf.mxu0  ;;  %v2145_v46 = vmul.f32 %v4414_v52, %v4109_v47 }
 0x305   : > { %2097 = vmatmul.f32.gmra.mxu3 %v1993_v24  ;;  %2207 = vst [vmem:[%s3744_s1 + $0x8] sm:$0xff] %v4433_v62  ;;  %v1745_v24 = vpop.f32.mrf.mxu1 }
 0x306   : > { %v1868_v14 = vpop.f32.mrf.mxu2  ;;  %v1746_v53 = vadd.f32 %v1745_v24, %v1632_v42 }
 0x307   : > { %v1926_v10 = vadd.f32 %v1868_v14, %v1740_v25 }
 0x308   : > { %v2050_v19 = vpop.f32.mrf.mxu3 }
 0x309   : > { %v1962_v5 = vadd.f32 %v4307_v9, %v1926_v10  ;;  %v2051_v23 = vadd.f32 %v4419_v17, %v2050_v19 }
 0x30b   : > { %v1994_v35 = vmax.f32 %v1962_v5, 0.0  ;;  %v4441_v36 = vadd.f32 %v2144_v40, %v2051_v23  ;;  %v2146_v5 = vmul.f32 %v4414_v52, %v4119_v51  ;;  %v1635_v23 = vpop.f32.mrf.mxu0  ;;  %v2147_v51 = vmul.f32 %v4414_v52, %v4129_v54 }
 0x30c   : > { %v2148_v54 = vmul.f32 %v4414_v52, %v4137_v56  ;;  %v2149_v56 = vmul.f32 %v4414_v52, %v4145_v59  ;;  %v2150_v59 = vmul.f32 %v4414_v52, %v4153_v61  ;;  %v2151_v61 = vmul.f32 %v4414_v52, %v4163_v1 }
 0x30d   : > { %2100 = vmatmul.f32.gmra.mxu3 %v1994_v35  ;;  %2208 = vst [vmem:[%s3744_s1 + $0x10] sm:$0xff] %v4441_v36  ;;  %v2152_v1 = vmul.f32 %v4414_v52, %v4176_v6  ;;  %v2153_v6 = vmul.f32 %v4414_v52, %v4202_v16 }
 0x30e   : > { %v1871_v15 = vpop.f32.mrf.mxu2 }
 0x30f   : > { %v1927_v44 = vadd.f32 %v1871_v15, %v1743_v63 }
 0x310   : > { %v2053_v25 = vpop.f32.mrf.mxu3 }
 0x311   : > { %v1963_v14 = vadd.f32 %v4307_v9, %v1927_v44  ;;  %v2054_v10 = vadd.f32 %v4419_v17, %v2053_v25  ;;  %v1748_v44 = vpop.f32.mrf.mxu1 }
 0x312   : > { %v1749_v42 = vadd.f32 %v1748_v44, %v1635_v23 }
 0x313   : > { %v1995_v19 = vmax.f32 %v1963_v14, 0.0  ;;  %v4449_v40 = vadd.f32 %v2145_v46, %v2054_v10 }
 0x315   : > { %2103 = vmatmul.f32.gmra.mxu3 %v1995_v19  ;;  %2209 = vst [vmem:[%s3744_s1 + $0x18] sm:$0xff] %v4449_v40 }
 0x316   : > { %v1874_v27 = vpop.f32.mrf.mxu2 }
 0x317   : > { %v1928_v47 = vadd.f32 %v1874_v27, %v1746_v53  ;;  %v1638_v27 = vpop.f32.mrf.mxu0 }
 0x318   : > { %v2056_v35 = vpop.f32.mrf.mxu3 }
 0x319   : > { %v1964_v63 = vadd.f32 %v4307_v9, %v1928_v47  ;;  %v2057_v15 = vadd.f32 %v4419_v17, %v2056_v35  ;;  %v1751_v35 = vpop.f32.mrf.mxu1 }
 0x31a   : > { %v1752_v23 = vadd.f32 %v1751_v35, %v1638_v27 }
 0x31b   : > { %v1996_v25 = vmax.f32 %v1964_v63, 0.0  ;;  %v4457_v46 = vadd.f32 %v2146_v5, %v2057_v15 }
 0x31d   : > { %2106 = vmatmul.f32.gmra.mxu3 %v1996_v25  ;;  %2210 = vst [vmem:[%s3744_s1 + $0x20] sm:$0xff] %v4457_v46 }
 0x31e   : > { %v1877_v24 = vpop.f32.mrf.mxu2 }
 0x31f   : > { %v1929_v14 = vadd.f32 %v1877_v24, %v1749_v42 }
 0x320   : > { %v2059_v10 = vpop.f32.mrf.mxu3 }
 0x321   : > { %v1965_v19 = vadd.f32 %v4307_v9, %v1929_v14  ;;  %v2060_v53 = vadd.f32 %v4419_v17, %v2059_v10 }
 0x323   : > { %v1997_v47 = vmax.f32 %v1965_v19, 0.0  ;;  %v4465_v5 = vadd.f32 %v2147_v51, %v2060_v53  ;;  %v1755_v51 = vadd.f32 %v4358_v30, %v4160_v0  ;;  %v1758_v0 = vadd.f32 %v4366_v28, %v4170_v3 }
 0x324   : > { %v1761_v3 = vadd.f32 %v4374_v58, %v4194_v12  ;;  %v1764_v12 = vadd.f32 %v4381_v55, %v4218_v21  ;;  %v1767_v21 = vadd.f32 %v4391_v22, %v4244_v34  ;;  %v2154_v22 = vmul.f32 %v4414_v52, %v4228_v26 }
 0x325   : > { %2109 = vmatmul.f32.gmra.mxu3 %v1997_v47  ;;  %2211 = vst [vmem:[%s3744_s1 + $0x28] sm:$0xff] %v4465_v5 }
 0x326   : > { %v1880_v63 = vpop.f32.mrf.mxu2 }
 0x327   : > { %v1930_v15 = vadd.f32 %v1880_v63, %v1752_v23 }
 0x328   : > { %v2062_v44 = vpop.f32.mrf.mxu3 }
 0x329   : > { %v1966_v25 = vadd.f32 %v4307_v9, %v1930_v15  ;;  %v2063_v42 = vadd.f32 %v4419_v17, %v2062_v44 }
 0x32b   : > { %v1998_v24 = vmax.f32 %v1966_v25, 0.0  ;;  %v4473_v14 = vadd.f32 %v2148_v54, %v2063_v42 }
 0x32d   : > { %2112 = vmatmul.f32.gmra.mxu3 %v1998_v24  ;;  %2212 = vst [vmem:[%s3744_s1 + $0x30] sm:$0xff] %v4473_v14 }
 0x32e   : > { %v1883_v10 = vpop.f32.mrf.mxu2 }
 0x32f   : > { %v1931_v19 = vadd.f32 %v1883_v10, %v1755_v51 }
 0x330   : > { %v2065_v53 = vpop.f32.mrf.mxu3 }
 0x331   : > { %v1967_v27 = vadd.f32 %v4307_v9, %v1931_v19  ;;  %v2066_v47 = vadd.f32 %v4419_v17, %v2065_v53 }
 0x333   : > { %v1999_v35 = vmax.f32 %v1967_v27, 0.0  ;;  %v4483_v23 = vadd.f32 %v2149_v56, %v2066_v47 }
 0x335   : > { %2115 = vmatmul.f32.gmra.mxu3 %v1999_v35  ;;  %2213 = vst [vmem:[%s3744_s1 + $0x38] sm:$0xff] %v4483_v23 }
 0x336   : > { %v1886_v30 = vpop.f32.mrf.mxu2 }
 0x337   : > { %v1932_v63 = vadd.f32 %v1886_v30, %v1758_v0 }
 0x338   : > { %v2068_v54 = vpop.f32.mrf.mxu3 }
 0x339   : > { %v1968_v15 = vadd.f32 %v4307_v9, %v1932_v63  ;;  %v2069_v44 = vadd.f32 %v4419_v17, %v2068_v54 }
 0x33b   : > { %v2000_v25 = vmax.f32 %v1968_v15, 0.0  ;;  %v4493_v42 = vadd.f32 %v2150_v59, %v2069_v44 }
 0x33d   : > { %2118 = vmatmul.f32.gmra.mxu3 %v2000_v25  ;;  %2214 = vst [vmem:[%s3744_s1 + $0x40] sm:$0xff] %v4493_v42 }
 0x33e   : > { %v1889_v28 = vpop.f32.mrf.mxu2 }
 0x33f   : > { %v1933_v24 = vadd.f32 %v1889_v28, %v1761_v3  ;;  %v1770_v28 = vadd.f32 %v4399_v2, %v4270_v48  ;;  %v2155_v2 = vmul.f32 %v4414_v52, %v4252_v39 }
 0x340   : > { %v2071_v51 = vpop.f32.mrf.mxu3 }
 0x341   : > { %v1969_v10 = vadd.f32 %v4307_v9, %v1933_v24  ;;  %v2072_v56 = vadd.f32 %v4419_v17, %v2071_v51 }
 0x343   : > { %v2001_v19 = vmax.f32 %v1969_v10, 0.0  ;;  %v4503_v53 = vadd.f32 %v2151_v61, %v2072_v56 }
 0x345   : > { %2121 = vmatmul.f32.gmra.mxu3 %v2001_v19  ;;  %2215 = vst [vmem:[%s3744_s1 + $0x48] sm:$0xff] %v4503_v53  ;;  %v1773_v19 = vadd.f32 %v4407_v18, %v4282_v57  ;;  %v2156_v18 = vmul.f32 %v4414_v52, %v4273_v50  ;;  %v2158_v50 = vmul.f32 %v4414_v52, %v4295_v7 }
 0x346   : > { %v1892_v58 = vpop.f32.mrf.mxu2 }
 0x347   : > { %v1934_v27 = vadd.f32 %v1892_v58, %v1764_v12 }
 0x348   : > { %v2074_v47 = vpop.f32.mrf.mxu3 }
 0x349   : > { %v1970_v35 = vadd.f32 %v4307_v9, %v1934_v27  ;;  %v2075_v0 = vadd.f32 %v4419_v17, %v2074_v47 }
 0x34b   : > { %v2002_v30 = vmax.f32 %v1970_v35, 0.0  ;;  %v4513_v59 = vadd.f32 %v2152_v1, %v2075_v0  ;;  %v1776_v35 = vadd.f32 %v4411_v33, %v4292_v4  ;;  %v2157_v4 = vmul.f32 %v4414_v52, %v4285_v60 }
 0x34c   : > { %v2159_v60 = vmul.f32 %v4414_v52, %v4310_v20 }
 0x34d   : > { %2124 = vmatmul.f32.gmra.mxu3 %v2002_v30  ;;  %2216 = vst [vmem:[%s3744_s1 + $0x50] sm:$0xff] %v4513_v59 }
 0x34e   : > { %v1895_v55 = vpop.f32.mrf.mxu2 }
 0x34f   : > { %v1935_v63 = vadd.f32 %v1895_v55, %v1767_v21 }
 0x350   : > { %v2077_v54 = vpop.f32.mrf.mxu3 }
 0x351   : > { %v1971_v15 = vadd.f32 %v4307_v9, %v1935_v63  ;;  %v2078_v44 = vadd.f32 %v4419_v17, %v2077_v54 }
 0x353   : > { %v2003_v25 = vmax.f32 %v1971_v15, 0.0  ;;  %v2185_v3 = vadd.f32 %v2153_v6, %v2078_v44 }
 0x355   : > { %2127 = vmatmul.f32.gmra.mxu3 %v2003_v25  ;;  %2217 = vst [vmem:[%s3744_s1 + $0x58] sm:$0xff] %v2185_v3 }
 0x356   : > { %v1898_v34 = vpop.f32.mrf.mxu2 }
 0x357   : > { %v1936_v61 = vadd.f32 %v1898_v34, %v1770_v28 }
 0x358   : > { %v2080_v16 = vpop.f32.mrf.mxu3 }
 0x359   : > { %v1972_v24 = vadd.f32 %v4307_v9, %v1936_v61  ;;  %v2081_v51 = vadd.f32 %v4419_v17, %v2080_v16 }
 0x35b   : > { %v2004_v10 = vmax.f32 %v1972_v24, 0.0  ;;  %v2186_v56 = vadd.f32 %v2154_v22, %v2081_v51 }
 0x35d   : > { %2130 = vmatmul.f32.gmra.mxu3 %v2004_v10  ;;  %2218 = vst [vmem:[%s3744_s1 + $0x60] sm:$0xff] %v2186_v56 }
 0x35e   : > { %v1901_v48 = vpop.f32.mrf.mxu2 }
 0x35f   : > { %v1937_v12 = vadd.f32 %v1901_v48, %v1773_v19 }
 0x360   : > { %v2083_v26 = vpop.f32.mrf.mxu3 }
 0x361   : > { %v1973_v58 = vadd.f32 %v4307_v9, %v1937_v12  ;;  %v2084_v1 = vadd.f32 %v4419_v17, %v2083_v26 }
 0x363   : > { %v2005_v27 = vmax.f32 %v1973_v58, 0.0  ;;  %v2187_v47 = vadd.f32 %v2155_v2, %v2084_v1  ;;  %v2167_v2 = vmul.f32 %v4414_v52, %v4363_v49  ;;  %v2168_v58 = vmul.f32 %v4414_v52, %v4370_v13 }
 0x365   : > { %2133 = vmatmul.f32.gmra.mxu3 %v2005_v27  ;;  %2219 = vst [vmem:[%s3744_s1 + $0x68] sm:$0xff] %v2187_v47 }
 0x366   : > { %v1904_v57 = vpop.f32.mrf.mxu2 }
 0x367   : > { %v1938_v39 = vadd.f32 %v1904_v57, %v1776_v35 }
 0x368   : > { %v2086_v0 = vpop.f32.mrf.mxu3 }
 0x369   : > { %v1974_v30 = vadd.f32 %v4307_v9, %v1938_v39  ;;  %v2087_v21 = vadd.f32 %v4419_v17, %v2086_v0 }
 0x36b   : > { %v2006_v55 = vmax.f32 %v1974_v30, 0.0  ;;  %v2188_v6 = vadd.f32 %v2156_v18, %v2087_v21  ;;  %v2170_v18 = vmul.f32 %v4414_v52, %v4384_v29  ;;  %v5214_v30 = vld [vmem:[#allocation24_spill] sm:$0xff] }
 0x36c   : > { %v2171_v21 = vmul.f32 %v4414_v52, %v5214_v30  ;;  %v2243_v30 = vld [vmem:[#allocation2 + $0x68] sm:$0xff] }
 0x36d   : > { %2136 = vmatmul.f32.gmra.mxu3 %v2006_v55  ;;  %2220 = vst [vmem:[%s3744_s1 + $0x70] sm:$0xff] %v2188_v6 }
 0x370   : > { %v2089_v33 = vpop.f32.mrf.mxu3 }
 0x371   : > { %v2090_v63 = vadd.f32 %v4419_v17, %v2089_v33 }
 0x373   : > { %v2189_v54 = vadd.f32 %v2157_v4, %v2090_v63  ;;  %v5215_v4 = vld [vmem:[#allocation25_spill] sm:$0xff] }
 0x374   : > { %v2172_v33 = vmul.f32 %v4414_v52, %v5215_v4 }
 0x375   : > { %2221 = vst [vmem:[%s3744_s1 + $0x78] sm:$0xff] %v2189_v54  ;;  %2254 = vmatpush.msrb.mxu0 %v2189_v54 }
 0x377   : > { %2255 = vmatpush.msrb.mxu0 %v2188_v6 }
 0x378   : > { %v2092_v9 = vpop.f32.mrf.mxu3 }
 0x379   : > { %v2093_v15 = vadd.f32 %v4419_v17, %v2092_v9  ;;  %2256 = vmatpush.msrb.mxu0 %v2187_v47  ;;  %v2169_v47 = vmul.f32 %v4414_v52, %v4377_v37 }
 0x37b   : > { %2257 = vmatpush.msrb.mxu0 %v2186_v56  ;;  %v4552_v44 = vadd.f32 %v2158_v50, %v2093_v15  ;;  %v5216_v50 = vld [vmem:[#allocation26_spill] sm:$0xff] }
 0x37c   : > { %v2173_v9 = vmul.f32 %v4414_v52, %v5216_v50 }
 0x37d   : > { %2258 = vmatpush.msrb.mxu0 %v2185_v3  ;;  %2222 = vst [vmem:[%s3744_s1 + $0x80] sm:$0xff] %v4552_v44  ;;  %v2160_v3 = vmul.f32 %v4414_v52, %v4321_v32  ;;  %v2161_v32 = vmul.f32 %v4414_v52, %v4330_v45 }
 0x37f   : > { %2259 = vmatpush.msrb.mxu0 %v4513_v59 }
 0x380   : > { %v2095_v25 = vpop.f32.mrf.mxu3 }
 0x381   : > { %v2096_v7 = vadd.f32 %v4419_v17, %v2095_v25  ;;  %2260 = vmatpush.msrb.mxu0 %v4503_v53  ;;  %v986_v25 = vld [vmem:[%s671_s17] sm:$0x3] }
 0x383   : > { %2261 = vmatpush.msrb.mxu0 %v4493_v42  ;;  %v4562_v28 = vadd.f32 %v2159_v60, %v2096_v7  ;;  %v5217_v7 = vlaneseq }
 0x385   : > { %2262 = vmatpush.msrb.mxu0 %v4483_v23  ;;  %2223 = vst [vmem:[%s3744_s1 + $0x88] sm:$0xff] %v4562_v28 }
 0x387   : > { %2263 = vmatpush.msrb.mxu0 %v4473_v14 }
 0x388   : > { %v2098_v20 = vpop.f32.mrf.mxu3 }
 0x389   : > { %v2099_v59 = vadd.f32 %v4419_v17, %v2098_v20  ;;  %2264 = vmatpush.msrb.mxu0 %v4465_v5  ;;  %v4652_v20 = vperm.slane %v986_v25, 0 }
 0x38b   : > { %2265 = vmatpush.msrb.mxu0 %v4457_v46  ;;  %v4573_v42 = vadd.f32 %v2160_v3, %v2099_v59  ;;  %v4650_v3 = vshrl.u32 %v5217_v7, 7 }
 0x38d   : > { %2266 = vmatpush.msrb.mxu0 %v4449_v40  ;;  %2224 = vst [vmem:[%s3744_s1 + $0x90] sm:$0xff] %v4573_v42  ;;  %v2162_v40 = vmul.f32 %v4414_v52, %v4336_v8  ;;  %v2164_v8 = vmul.f32 %v4414_v52, %v4346_v41  ;;  %v2166_v41 = vmul.f32 %v4414_v52, %v4356_v43 }
 0x38e   : > { %vm1392_vm0 = vcmp.eq.s32.totalorder %v4650_v3, %v4652_v20 }
 0x38f   : > { %2267 = vmatpush.msrb.mxu0 %v4441_v36 }
 0x390   : > { %v2101_v14 = vpop.f32.mrf.mxu3 }
 0x391   : > { %v2102_v23 = vadd.f32 %v4419_v17, %v2101_v14  ;;  %2268 = vmatpush.msrb.mxu0 %v4433_v62  ;;  %v2163_v62 = vmul.f32 %v4414_v52, %v4341_v11  ;;  %v2165_v11 = vmul.f32 %v4414_v52, %v4351_v31  ;;  %v5218_v52 = vmov 1.0  }
 0x392   : > { %v1377_v14 = vadd.s32 24, %v4650_v3 }
 0x393   : > { %2269 = vmatpush.msrb.mxu0 %v4425_v38  ;;  %v4584_v46 = vadd.f32 %v2161_v32, %v2102_v23  ;;  %v1376_v32 = vadd.s32 16, %v4650_v3  ;;  %v4670_v23 = vperm.slane %v986_v25, 1  ;;  %v2246_v25 = vld [vmem:[#allocation2 + $0x40] sm:$0xff] }
 0x394   : > { %3123 = vmatmul.msk.f32.vlgmr.msrb.gmra.mxu0 %vm1392_vm0, %v5218_v52  ;;  %vm1398_vm3 = vcmp.eq.s32.totalorder %v1377_v14, %v4652_v20 }
 0x395   : > { %2225 = vst [vmem:[%s3744_s1 + $0x98] sm:$0xff] %v4584_v46  ;;  %vm1396_vm2 = vcmp.eq.s32.totalorder %v1376_v32, %v4652_v20  ;;  %vm1393_vm4 = vcmp.eq.s32.totalorder %v4650_v3, %v4670_v23  ;;  %vm1397_vm8 = vcmp.eq.s32.totalorder %v1376_v32, %v4670_v23  ;;  %vm1399_vm10 = vcmp.eq.s32.totalorder %v1377_v14, %v4670_v23 }
 0x398   : > { %v2104_v5 = vpop.f32.mrf.mxu3 }
 0x399   : > { %v2105_v45 = vadd.f32 %v4419_v17, %v2104_v5  ;;  %v1383_v5 = vadd.s32 72, %v4650_v3 }
 0x39b   : > { %v4591_v36 = vadd.f32 %v2162_v40, %v2105_v45  ;;  %v1378_v40 = vadd.s32 32, %v4650_v3  ;;  %vm1410_vm15 = vcmp.eq.s32.totalorder %v1383_v5, %v4652_v20  ;;  %v1384_v45 = vadd.s32 80, %v4650_v3 }
 0x39d   : > { %2226 = vst [vmem:[%s3744_s1 + $0xa0] sm:$0xff] %v4591_v36  ;;  %vm1400_vm5 = vcmp.eq.s32.totalorder %v1378_v40, %v4652_v20  ;;  %vm1401_vm12 = vcmp.eq.s32.totalorder %v1378_v40, %v4670_v23  ;;  %v2248_v40 = vld [vmem:[#allocation2 + $0x10] sm:$0xff] }
 0x3a0   : > { %v2107_v38 = vpop.f32.mrf.mxu3 }
 0x3a1   : > { %v2108_v53 = vadd.f32 %v4419_v17, %v2107_v38  ;;  %v1387_v38 = vadd.s32 104, %v4650_v3 }
 0x3a3   : > { %v4598_v34 = vadd.f32 %v2163_v62, %v2108_v53  ;;  %v1386_v62 = vadd.s32 96, %v4650_v3  ;;  %v1388_v53 = vadd.s32 112, %v4650_v3 }
 0x3a5   : > { %2227 = vst [vmem:[%s3744_s1 + $0xa8] sm:$0xff] %v4598_v34 }
 0x3a8   : > { %v2110_v22 = vpop.f32.mrf.mxu3 }
 0x3a9   : > { %v2111_v61 = vadd.f32 %v4419_v17, %v2110_v22 }
 0x3ab   : > { %v4605_v16 = vadd.f32 %v2164_v8, %v2111_v61 }
 0x3ad   : > { %2228 = vst [vmem:[%s3744_s1 + $0xb0] sm:$0xff] %v4605_v16 }
 0x3b0   : > { %v2113_v24 = vpop.f32.mrf.mxu3 }
 0x3b1   : > { %v2114_v51 = vadd.f32 %v4419_v17, %v2113_v24 }
 0x3b3   : > { %v2197_v10 = vadd.f32 %v2165_v11, %v2114_v51  ;;  %v2238_v11 = vld [vmem:[#allocation2 + $0x30] sm:$0xff] }
 0x3b5   : > { %2229 = vst [vmem:[%s3744_s1 + $0xb8] sm:$0xff] %v2197_v10 }
 0x3b8   : > { %v2116_v56 = vpop.f32.mrf.mxu3 }
 0x3b9   : > { %v2117_v19 = vadd.f32 %v4419_v17, %v2116_v56 }
 0x3bb   : > { %v2198_v48 = vadd.f32 %v2166_v41, %v2117_v19  ;;  %v2239_v41 = vld [vmem:[#allocation2] sm:$0xff] }
 0x3bd   : > { %2230 = vst [vmem:[%s3744_s1 + $0xc0] sm:$0xff] %v2198_v48 }
 0x3c0   : > { %v2119_v12 = vpop.f32.mrf.mxu3 }
 0x3c1   : > { %v2120_v31 = vadd.f32 %v4419_v17, %v2119_v12  ;;  %v2240_v12 = vld [vmem:[#allocation2 + $0x58] sm:$0xff] }
 0x3c3   : > { %v2199_v26 = vadd.f32 %v2167_v2, %v2120_v31 }
 0x3c5   : > { %2231 = vst [vmem:[%s3744_s1 + $0xc8] sm:$0xff] %v2199_v26 }
 0x3c8   : > { %v2122_v1 = vpop.f32.mrf.mxu3 }
 0x3c9   : > { %v2123_v43 = vadd.f32 %v4419_v17, %v2122_v1 }
 0x3cb   : > { %v2200_v27 = vadd.f32 %v2168_v58, %v2123_v43  ;;  %v2241_v43 = vld [vmem:[#allocation2 + $0x18] sm:$0xff] }
 0x3cd   : > { %2232 = vst [vmem:[%s3744_s1 + $0xd0] sm:$0xff] %v2200_v27 }
 0x3d0   : > { %v2125_v35 = vpop.f32.mrf.mxu3 }
 0x3d1   : > { %v2126_v49 = vadd.f32 %v4419_v17, %v2125_v35 }
 0x3d3   : > { %v2201_v57 = vadd.f32 %v2169_v47, %v2126_v49 }
 0x3d5   : > { %2233 = vst [vmem:[%s3744_s1 + $0xd8] sm:$0xff] %v2201_v57 }
 0x3d8   : > { %v2128_v39 = vpop.f32.mrf.mxu3 }
 0x3d9   : > { %v2129_v13 = vadd.f32 %v4419_v17, %v2128_v39 }
 0x3db   : > { %v2202_v0 = vadd.f32 %v2170_v18, %v2129_v13 }
 0x3dd   : > { %2234 = vst [vmem:[%s3744_s1 + $0xe0] sm:$0xff] %v2202_v0 }
 0x3e0   : > { %v2131_v55 = vpop.f32.mrf.mxu3 }
 0x3e1   : > { %v2132_v37 = vadd.f32 %v4419_v17, %v2131_v55 }
 0x3e3   : > { %v2203_v6 = vadd.f32 %v2171_v21, %v2132_v37 }
 0x3e5   : > { %2235 = vst [vmem:[%s3744_s1 + $0xe8] sm:$0xff] %v2203_v6 }
 0x3e8   : > { %v2134_v63 = vpop.f32.mrf.mxu3 }
 0x3e9   : > { %v2135_v29 = vadd.f32 %v4419_v17, %v2134_v63 }
 0x3eb   : > { %v2204_v54 = vadd.f32 %v2172_v33, %v2135_v29 }
 0x3ed   : > { %2236 = vst [vmem:[%s3744_s1 + $0xf0] sm:$0xff] %v2204_v54 }
 0x3f0   : > { %v2137_v15 = vpop.f32.mrf.mxu3 }
 0x3f1   : > { %v2138_v60 = vadd.f32 %v4419_v17, %v2137_v15  ;;  %v1375_v17 = vadd.s32 8, %v4650_v3 }
 0x3f3   : > { %v2205_v59 = vadd.f32 %v2173_v9, %v2138_v60  ;;  %vm1394_vm1 = vcmp.eq.s32.totalorder %v1375_v17, %v4652_v20  ;;  %vm1395_vm6 = vcmp.eq.s32.totalorder %v1375_v17, %v4670_v23 }
 0x3f4   : > { %3124 = vmatmul.msk.f32.gmra.mxu0 %vm1394_vm1, %v5218_v52  ;;  %vm1412_vm1 = vcmp.eq.s32.totalorder %v1384_v45, %v4652_v20 }
 0x3f5   : > { %2237 = vst [vmem:[%s3744_s1 + $0xf8] sm:$0xff] %v2205_v59  ;;  %2319 = vmatpush.msrb.mxu1 %v2205_v59 }
 0x3f7   : > { %2320 = vmatpush.msrb.mxu1 %v2204_v54  ;;  %v2245_v54 = vld [vmem:[#allocation2 + $0x48] sm:$0xff] }
 0x3f9   : > { %2321 = vmatpush.msrb.mxu1 %v2203_v6  ;;  %v2244_v6 = vld [vmem:[#allocation2 + $0x8] sm:$0xff] }
 0x3fb   : > { %2322 = vmatpush.msrb.mxu1 %v2202_v0 }
 0x3fc   : > { %3125 = vmatmul.msk.f32.gmra.mxu0 %vm1396_vm2, %v5218_v52 }
 0x3fd   : > { %2323 = vmatpush.msrb.mxu1 %v2201_v57  ;;  %v2242_v57 = vld [vmem:[#allocation2 + $0x50] sm:$0xff] }
 0x3ff   : > { %2324 = vmatpush.msrb.mxu1 %v2200_v27 }
 0x401   : > { %2325 = vmatpush.msrb.mxu1 %v2199_v26 }
 0x403   : > { %2326 = vmatpush.msrb.mxu1 %v2198_v48 }
 0x404   : > { %3126 = vmatmul.msk.f32.gmra.mxu0 %vm1398_vm3, %v5218_v52 }
 0x405   : > { %2327 = vmatpush.msrb.mxu1 %v2197_v10 }
 0x407   : > { %2328 = vmatpush.msrb.mxu1 %v4605_v16 }
 0x409   : > { %2329 = vmatpush.msrb.mxu1 %v4598_v34  ;;  %v1389_v34 = vadd.s32 120, %v4650_v3 }
 0x40b   : > { %2330 = vmatpush.msrb.mxu1 %v4591_v36  ;;  %v1385_v36 = vadd.s32 88, %v4650_v3 }
 0x40c   : > { %3127 = vmatmul.msk.f32.gmra.mxu0 %vm1400_vm5, %v5218_v52  ;;  %vm1416_vm5 = vcmp.eq.s32.totalorder %v1386_v62, %v4652_v20 }
 0x40d   : > { %2331 = vmatpush.msrb.mxu1 %v4584_v46  ;;  %v1379_v46 = vadd.s32 40, %v4650_v3  ;;  %vm1414_vm3 = vcmp.eq.s32.totalorder %v1385_v36, %v4652_v20 }
 0x40f   : > { %2332 = vmatpush.msrb.mxu1 %v4573_v42  ;;  %vm1402_vm7 = vcmp.eq.s32.totalorder %v1379_v46, %v4652_v20  ;;  %v1382_v42 = vadd.s32 64, %v4650_v3  ;;  %vm1403_vm14 = vcmp.eq.s32.totalorder %v1379_v46, %v4670_v23 }
 0x411   : > { %2333 = vmatpush.msrb.mxu1 %v4562_v28  ;;  %v1380_v28 = vadd.s32 48, %v4650_v3  ;;  %vm1408_vm13 = vcmp.eq.s32.totalorder %v1382_v42, %v4652_v20  ;;  %v2271_v8 = vpop.f32.mrf.mxu0 }
 0x413   : > { %2334 = vmatpush.msrb.mxu1 %v4552_v44  ;;  %vm1404_vm9 = vcmp.eq.s32.totalorder %v1380_v28, %v4652_v20  ;;  %v1381_v44 = vadd.s32 56, %v4650_v3  ;;  %vm1405_vm0 = vcmp.eq.s32.totalorder %v1380_v28, %v4670_v23 }
 0x414   : > { %3139 = vmatmul.msk.f32.vlgmr.msrb.gmra.mxu1 %vm1393_vm4, %v5218_v52  ;;  %3128 = vmatmul.msk.f32.gmra.mxu0 %vm1402_vm7, %v5218_v52  ;;  %vm1409_vm4 = vcmp.eq.s32.totalorder %v1382_v42, %v4670_v23  ;;  %vm1418_vm7 = vcmp.eq.s32.totalorder %v1387_v38, %v4652_v20  ;;  %v2249_v42 = vld [vmem:[#allocation2 + $0x38] sm:$0xff] }
 0x415   : > { %vm1406_vm11 = vcmp.eq.s32.totalorder %v1381_v44, %v4652_v20  ;;  %vm1407_vm2 = vcmp.eq.s32.totalorder %v1381_v44, %v4670_v23 }
 0x41c   : > { %3140 = vmatmul.msk.f32.gmra.mxu1 %vm1395_vm6, %v5218_v52  ;;  %3129 = vmatmul.msk.f32.gmra.mxu0 %vm1404_vm9, %v5218_v52  ;;  %vm1411_vm6 = vcmp.eq.s32.totalorder %v1383_v5, %v4670_v23  ;;  %vm1420_vm9 = vcmp.eq.s32.totalorder %v1388_v53, %v4652_v20 }
 0x424   : > { %3141 = vmatmul.msk.f32.gmra.mxu1 %vm1397_vm8, %v5218_v52  ;;  %3130 = vmatmul.msk.f32.gmra.mxu0 %vm1406_vm11, %v5218_v52  ;;  %vm1413_vm8 = vcmp.eq.s32.totalorder %v1384_v45, %v4670_v23  ;;  %vm1422_vm11 = vcmp.eq.s32.totalorder %v1389_v34, %v4652_v20 }
 0x42c   : > { %3142 = vmatmul.msk.f32.gmra.mxu1 %vm1399_vm10, %v5218_v52  ;;  %3131 = vmatmul.msk.f32.gmra.mxu0 %vm1408_vm13, %v5218_v52  ;;  %vm1415_vm10 = vcmp.eq.s32.totalorder %v1385_v36, %v4670_v23  ;;  %vm1419_vm13 = vcmp.eq.s32.totalorder %v1387_v38, %v4670_v23  ;;  %v2250_v38 = vld [vmem:[#allocation2 + $0x60] sm:$0xff] }
 0x434   : > { %3143 = vmatmul.msk.f32.gmra.mxu1 %vm1401_vm12, %v5218_v52  ;;  %3132 = vmatmul.msk.f32.gmra.mxu0 %vm1410_vm15, %v5218_v52  ;;  %vm1417_vm12 = vcmp.eq.s32.totalorder %v1386_v62, %v4670_v23  ;;  %vm1423_vm15 = vcmp.eq.s32.totalorder %v1389_v34, %v4670_v23 }
 0x43c   : > { %3144 = vmatmul.msk.f32.gmra.mxu1 %vm1403_vm14, %v5218_v52  ;;  %3133 = vmatmul.msk.f32.gmra.mxu0 %vm1412_vm1, %v5218_v52  ;;  %vm1421_vm14 = vcmp.eq.s32.totalorder %v1388_v53, %v4670_v23 }
 0x444   : > { %3145 = vmatmul.msk.f32.gmra.mxu1 %vm1405_vm0, %v5218_v52  ;;  %3134 = vmatmul.msk.f32.gmra.mxu0 %vm1414_vm3, %v5218_v52 }
 0x44c   : > { %3146 = vmatmul.msk.f32.gmra.mxu1 %vm1407_vm2, %v5218_v52  ;;  %3135 = vmatmul.msk.f32.gmra.mxu0 %vm1416_vm5, %v5218_v52 }
 0x454   : > { %3147 = vmatmul.msk.f32.gmra.mxu1 %vm1409_vm4, %v5218_v52  ;;  %3136 = vmatmul.msk.f32.gmra.mxu0 %vm1418_vm7, %v5218_v52 }
 0x45c   : > { %3148 = vmatmul.msk.f32.gmra.mxu1 %vm1411_vm6, %v5218_v52  ;;  %3137 = vmatmul.msk.f32.gmra.mxu0 %vm1420_vm9, %v5218_v52 }
 0x464   : > { %3149 = vmatmul.msk.f32.gmra.mxu1 %vm1413_vm8, %v5218_v52  ;;  %3138 = vmatmul.msk.f32.gmra.mxu0 %vm1422_vm11, %v5218_v52 }
 0x46c   : > { %3150 = vmatmul.msk.f32.gmra.mxu1 %vm1415_vm10, %v5218_v52 }
 0x471   : > { %v2274_v22 = vpop.f32.mrf.mxu0 }
 0x474   : > { %3151 = vmatmul.msk.f32.gmra.mxu1 %vm1417_vm12, %v5218_v52 }
 0x479   : > { %v2277_v61 = vpop.f32.mrf.mxu0 }
 0x47c   : > { %3152 = vmatmul.msk.f32.gmra.mxu1 %vm1419_vm13, %v5218_v52 }
 0x481   : > { %v2280_v16 = vpop.f32.mrf.mxu0 }
 0x484   : > { %3153 = vmatmul.msk.f32.gmra.mxu1 %vm1421_vm14, %v5218_v52 }
 0x489   : > { %v2283_v19 = vpop.f32.mrf.mxu0 }
 0x48c   : > { %3154 = vmatmul.msk.f32.gmra.mxu1 %vm1423_vm15, %v5218_v52  ;;  %v2247_v52 = vld [vmem:[#allocation2 + $0x20] sm:$0xff] }
 0x491   : > { %v2336_v24 = vpop.f32.mrf.mxu1  ;;  %v2286_v58 = vpop.f32.mrf.mxu0 }
 0x492   : > { %v2337_v51 = vadd.f32 %v2336_v24, %v2271_v8 }
 0x494   : > { %v2384_v10 = vadd.f32 %v2337_v51, %v2238_v11 }
 0x496   : > { %2400 = vst [vmem:[#allocation2 + $0x30] sm:$0xff] %v2384_v10  ;;  %v2252_v10 = vld [vmem:[#allocation2 + $0x78] sm:$0xff] }
 0x499   : > { %v2339_v56 = vpop.f32.mrf.mxu1  ;;  %v2289_v49 = vpop.f32.mrf.mxu0 }
 0x49a   : > { %v2340_v48 = vadd.f32 %v2339_v56, %v2274_v22 }
 0x49c   : > { %v2385_v2 = vadd.f32 %v2340_v48, %v2239_v41 }
 0x49e   : > { %2401 = vst [vmem:[#allocation2] sm:$0xff] %v2385_v2  ;;  %v2253_v2 = vld [vmem:[#allocation2 + $0x28] sm:$0xff] }
 0x4a1   : > { %v2342_v31 = vpop.f32.mrf.mxu1  ;;  %v2292_v0 = vpop.f32.mrf.mxu0 }
 0x4a2   : > { %v2343_v26 = vadd.f32 %v2342_v31, %v2277_v61  ;;  %v2251_v61 = vld [vmem:[#allocation2 + $0x70] sm:$0xff] }
 0x4a4   : > { %v2386_v1 = vadd.f32 %v2343_v26, %v2240_v12 }
 0x4a6   : > { %2402 = vst [vmem:[#allocation2 + $0x58] sm:$0xff] %v2386_v1 }
 0x4a9   : > { %v2345_v27 = vpop.f32.mrf.mxu1  ;;  %v2295_v33 = vpop.f32.mrf.mxu0 }
 0x4aa   : > { %v2346_v47 = vadd.f32 %v2345_v27, %v2280_v16 }
 0x4ac   : > { %v2387_v35 = vadd.f32 %v2346_v47, %v2241_v43 }
 0x4ae   : > { %2403 = vst [vmem:[#allocation2 + $0x18] sm:$0xff] %v2387_v35 }
 0x4b1   : > { %v2348_v18 = vpop.f32.mrf.mxu1  ;;  %v2298_v15 = vpop.f32.mrf.mxu0 }
 0x4b2   : > { %v2349_v39 = vadd.f32 %v2348_v18, %v2283_v19 }
 0x4b4   : > { %v2388_v13 = vadd.f32 %v2349_v39, %v2242_v57 }
 0x4b6   : > { %2404 = vst [vmem:[#allocation2 + $0x50] sm:$0xff] %v2388_v13 }
 0x4b9   : > { %v2351_v21 = vpop.f32.mrf.mxu1  ;;  %v2301_v59 = vpop.f32.mrf.mxu0 }
 0x4ba   : > { %v2352_v55 = vadd.f32 %v2351_v21, %v2286_v58 }
 0x4bc   : > { %v2389_v37 = vadd.f32 %v2352_v55, %v2243_v30 }
 0x4be   : > { %2405 = vst [vmem:[#allocation2 + $0x68] sm:$0xff] %v2389_v37 }
 0x4c1   : > { %v2354_v4 = vpop.f32.mrf.mxu1  ;;  %v2304_v23 = vpop.f32.mrf.mxu0 }
 0x4c2   : > { %v2355_v63 = vadd.f32 %v2354_v4, %v2289_v49 }
 0x4c4   : > { %v2390_v29 = vadd.f32 %v2355_v63, %v2244_v6 }
 0x4c6   : > { %2406 = vst [vmem:[#allocation2 + $0x8] sm:$0xff] %v2390_v29 }
 0x4c9   : > { %v2357_v50 = vpop.f32.mrf.mxu1  ;;  %v2307_v45 = vpop.f32.mrf.mxu0 }
 0x4ca   : > { %v2358_v9 = vadd.f32 %v2357_v50, %v2292_v0 }
 0x4cc   : > { %v2391_v60 = vadd.f32 %v2358_v9, %v2245_v54 }
 0x4ce   : > { %2407 = vst [vmem:[#allocation2 + $0x48] sm:$0xff] %v2391_v60 }
 0x4d1   : > { %v2360_v7 = vpop.f32.mrf.mxu1  ;;  %v2310_v8 = vpop.f32.mrf.mxu0 }
 0x4d2   : > { %v2361_v3 = vadd.f32 %v2360_v7, %v2295_v33 }
 0x4d4   : > { %v2392_v20 = vadd.f32 %v2361_v3, %v2246_v25 }
 0x4d6   : > { %2408 = vst [vmem:[#allocation2 + $0x40] sm:$0xff] %v2392_v20 }
 0x4d9   : > { %v2363_v17 = vpop.f32.mrf.mxu1  ;;  %v2313_v51 = vpop.f32.mrf.mxu0 }
 0x4da   : > { %v2364_v32 = vadd.f32 %v2363_v17, %v2298_v15 }
 0x4dc   : > { %v2393_v14 = vadd.f32 %v2364_v32, %v2247_v52 }
 0x4de   : > { %2409 = vst [vmem:[#allocation2 + $0x20] sm:$0xff] %v2393_v14 }
 0x4e1   : > { %v2366_v46 = vpop.f32.mrf.mxu1  ;;  %v2316_v48 = vpop.f32.mrf.mxu0 }
 0x4e2   : > { %v2367_v28 = vadd.f32 %v2366_v46, %v2301_v59 }
 0x4e4   : > { %v2394_v44 = vadd.f32 %v2367_v28, %v2248_v40 }
 0x4e6   : > { %2410 = vst [vmem:[#allocation2 + $0x10] sm:$0xff] %v2394_v44 }
 0x4e9   : > { %v2369_v5 = vpop.f32.mrf.mxu1 }
 0x4ea   : > { %v2370_v36 = vadd.f32 %v2369_v5, %v2304_v23 }
 0x4ec   : > { %v2395_v62 = vadd.f32 %v2370_v36, %v2249_v42 }
 0x4ee   : > { %2411 = vst [vmem:[#allocation2 + $0x38] sm:$0xff] %v2395_v62 }
 0x4f1   : > { %v2372_v53 = vpop.f32.mrf.mxu1 }
 0x4f2   : > { %v2373_v34 = vadd.f32 %v2372_v53, %v2307_v45 }
 0x4f4   : > { %v2396_v22 = vadd.f32 %v2373_v34, %v2250_v38 }
 0x4f6   : > { %2412 = vst [vmem:[#allocation2 + $0x60] sm:$0xff] %v2396_v22 }
 0x4f9   : > { %v2375_v16 = vpop.f32.mrf.mxu1 }
 0x4fa   : > { %v2376_v11 = vadd.f32 %v2375_v16, %v2310_v8 }
 0x4fc   : > { %v2397_v24 = vadd.f32 %v2376_v11, %v2251_v61 }
 0x4fe   : > { %2413 = vst [vmem:[#allocation2 + $0x70] sm:$0xff] %v2397_v24 }
 0x501   : > { %v2378_v41 = vpop.f32.mrf.mxu1 }
 0x502   : > { %v2379_v56 = vadd.f32 %v2378_v41, %v2313_v51 }
 0x504   : > { %v2398_v19 = vadd.f32 %v2379_v56, %v2252_v10 }
 0x506   : > { %2414 = vst [vmem:[#allocation2 + $0x78] sm:$0xff] %v2398_v19 }
 0x509   : > { %v2381_v12 = vpop.f32.mrf.mxu1 }
 0x50a   : > { %v2382_v31 = vadd.f32 %v2381_v12, %v2316_v48  ;;  %2419 = sbr.rel (%p3155_p1) target bundleno = 1685 (0x695), region = 104 }
 0x50c   : > { %v2399_v26 = vadd.f32 %v2382_v31, %v2253_v2 }
 0x50e   : > { %2415 = vst [vmem:[#allocation2 + $0x28] sm:$0xff] %v2399_v26 }
 0x50f   : > { %v2483_v58 = vld [vmem:[%s5155_s13 + $0x78] sm:$0xff]  ;;  %v2482_v43 = vld [vmem:[%s5155_s13 + $0x70] sm:$0xff]  ;;  %v2481_v47 = vld [vmem:[%s5155_s13 + $0x68] sm:$0xff] }
 0x510   : > { %v4752_v1 = vld [vmem:[%s5219_s21 + $0x78] sm:$0xff]  ;;  %2484 = vmatpush.msra.mxu0 %v2483_v58  ;;  %3229 = vmatpush.msra.mxu3 %v2483_v58  ;;  %v4760_v27 = vld [vmem:[%s5219_s21 + $0x70] sm:$0xff]  ;;  %v4769_v35 = vld [vmem:[%s5219_s21 + $0x68] sm:$0xff] }
 0x511   : > { %2549 = vmatpush.msra.mxu1 %v4752_v1  ;;  %v2480_v49 = vld [vmem:[%s5155_s13 + $0x60] sm:$0xff]  ;;  %v2479_v18 = vld [vmem:[%s5155_s13 + $0x58] sm:$0xff]  ;;  %v2478_v13 = vld [vmem:[%s5155_s13 + $0x50] sm:$0xff] }
 0x512   : > { %2485 = vmatpush.msra.mxu0 %v2482_v43  ;;  %3230 = vmatpush.msra.mxu3 %v2482_v43  ;;  %v4778_v57 = vld [vmem:[%s5219_s21 + $0x60] sm:$0xff]  ;;  %v4787_v39 = vld [vmem:[%s5219_s21 + $0x58] sm:$0xff]  ;;  %v4796_v0 = vld [vmem:[%s5219_s21 + $0x50] sm:$0xff] }
 0x513   : > { %2550 = vmatpush.msra.mxu1 %v4760_v27  ;;  %v2477_v30 = vld [vmem:[%s5155_s13 + $0x48] sm:$0xff]  ;;  %v2476_v55 = vld [vmem:[%s5155_s13 + $0x40] sm:$0xff]  ;;  %v2475_v6 = vld [vmem:[%s5155_s13 + $0x38] sm:$0xff] }
 0x514   : > { %2486 = vmatpush.msra.mxu0 %v2481_v47  ;;  %3231 = vmatpush.msra.mxu3 %v2481_v47  ;;  %v4805_v21 = vld [vmem:[%s5219_s21 + $0x48] sm:$0xff]  ;;  %v4814_v37 = vld [vmem:[%s5219_s21 + $0x40] sm:$0xff]  ;;  %v4823_v4 = vld [vmem:[%s5219_s21 + $0x38] sm:$0xff] }
 0x515   : > { %2551 = vmatpush.msra.mxu1 %v4769_v35  ;;  %v2474_v33 = vld [vmem:[%s5155_s13 + $0x30] sm:$0xff]  ;;  %v2473_v29 = vld [vmem:[%s5155_s13 + $0x28] sm:$0xff]  ;;  %v2472_v50 = vld [vmem:[%s5155_s13 + $0x20] sm:$0xff] }
 0x516   : > { %2487 = vmatpush.msra.mxu0 %v2480_v49  ;;  %3232 = vmatpush.msra.mxu3 %v2480_v49  ;;  %v2442_v63 = vld [vmem:[%s5219_s21 + $0x30] sm:$0xff]  ;;  %v2441_v54 = vld [vmem:[%s5219_s21 + $0x28] sm:$0xff]  ;;  %v2440_v9 = vld [vmem:[%s5219_s21 + $0x20] sm:$0xff] }
 0x517   : > { %2552 = vmatpush.msra.mxu1 %v4778_v57  ;;  %v2471_v15 = vld [vmem:[%s5155_s13 + $0x18] sm:$0xff]  ;;  %v2470_v25 = vld [vmem:[%s5155_s13 + $0x10] sm:$0xff]  ;;  %v2469_v3 = vld [vmem:[%s5155_s13 + $0x8] sm:$0xff] }
 0x518   : > { %2488 = vmatpush.msra.mxu0 %v2479_v18  ;;  %3233 = vmatpush.msra.mxu3 %v2479_v18  ;;  %v2439_v60 = vld [vmem:[%s5219_s21 + $0x18] sm:$0xff]  ;;  %v2438_v7 = vld [vmem:[%s5219_s21 + $0x10] sm:$0xff]  ;;  %v2437_v20 = vld [vmem:[%s5219_s21 + $0x8] sm:$0xff] }
 0x519   : > { %2553 = vmatpush.msra.mxu1 %v4787_v39  ;;  %v2468_v59 = vld [vmem:[%s5155_s13] sm:$0xff]  ;;  %v2452_v17 = vld [vmem:[#allocation2 + $0x30] sm:$0xff]  ;;  %v4881_v46 = vld [vmem:[%s5220_s26 + $0x8] sm:$0xff] }
 0x51a   : > { %2489 = vmatpush.msra.mxu0 %v2478_v13  ;;  %3234 = vmatpush.msra.mxu3 %v2478_v13  ;;  %v2436_v52 = vld [vmem:[%s5219_s21] sm:$0xff]  ;;  %v2465_v40 = vld [vmem:[#allocation2 + $0x70] sm:$0xff]  ;;  %v2454_v28 = vld [vmem:[#allocation2 + $0x58] sm:$0xff] }
 0x51b   : > { %2554 = vmatpush.msra.mxu1 %v4796_v0  ;;  %v2464_v32 = vld [vmem:[#allocation2 + $0x60] sm:$0xff]  ;;  %v2466_v44 = vld [vmem:[#allocation2 + $0x78] sm:$0xff]  ;;  %v4891_v42 = vld [vmem:[%s5220_s26 + $0x10] sm:$0xff] }
 0x51c   : > { %2490 = vmatpush.msra.mxu0 %v2477_v30  ;;  %3235 = vmatpush.msra.mxu3 %v2477_v30  ;;  %v4872_v14 = vld [vmem:[%s5220_s26] sm:$0xff]  ;;  %v2455_v5 = vld [vmem:[#allocation2 + $0x18] sm:$0xff]  ;;  %v2467_v45 = vld [vmem:[#allocation2 + $0x28] sm:$0xff] }
 0x51d   : > { %2555 = vmatpush.msra.mxu1 %v4805_v21  ;;  %v2453_v23 = vld [vmem:[#allocation2] sm:$0xff]  ;;  %v4899_v36 = vld [vmem:[%s5220_s26 + $0x18] sm:$0xff]  ;;  %v2456_v62 = vld [vmem:[#allocation2 + $0x50] sm:$0xff] }
 0x51e   : > { %2491 = vmatpush.msra.mxu0 %v2476_v55  ;;  %3236 = vmatpush.msra.mxu3 %v2476_v55  ;;  %v4905_v38 = vld [vmem:[%s5220_s26 + $0x20] sm:$0xff]  ;;  %v2457_v34 = vld [vmem:[#allocation2 + $0x68] sm:$0xff]  ;;  %v4929_v16 = vld [vmem:[%s5220_s26 + $0x30] sm:$0xff] }
 0x51f   : > { %2556 = vmatpush.msra.mxu1 %v4814_v37  ;;  %v4910_v53 = vld [vmem:[%s5220_s26 + $0x60] sm:$0xff]  ;;  %v4917_v8 = vld [vmem:[%s5220_s26 + $0x28] sm:$0xff]  ;;  %v4934_v11 = vld [vmem:[%s5220_s26 + $0x70] sm:$0xff] }
 0x520   : > { %2492 = vmatpush.msra.mxu0 %v2475_v6  ;;  %3237 = vmatpush.msra.mxu3 %v2475_v6  ;;  %v4922_v22 = vld [vmem:[%s5220_s26 + $0x68] sm:$0xff]  ;;  %v4941_v51 = vld [vmem:[%s5220_s26 + $0x38] sm:$0xff]  ;;  %v2664_v56 = vld [vmem:[%s5222_s15 + $0x70] sm:$0xff] }
 0x521   : > { %2557 = vmatpush.msra.mxu1 %v4823_v4  ;;  %v2458_v61 = vld [vmem:[#allocation2 + $0x8] sm:$0xff]  ;;  %v4946_v10 = vld [vmem:[%s5220_s26 + $0x78] sm:$0xff]  ;;  %v2460_v48 = vld [vmem:[#allocation2 + $0x40] sm:$0xff] }
 0x522   : > { %2493 = vmatpush.msra.mxu0 %v2474_v33  ;;  %3238 = vmatpush.msra.mxu3 %v2474_v33  ;;  %v2459_v24 = vld [vmem:[#allocation2 + $0x48] sm:$0xff]  ;;  %v2665_v41 = vld [vmem:[%s5221_s27 + $0x78] sm:$0xff]  ;;  %v2662_v2 = vld [vmem:[%s5222_s15 + $0x60] sm:$0xff] }
 0x523   : > { %2558 = vmatpush.msra.mxu1 %v2442_v63  ;;  %2670 = vmatpush.msra.mxu2 %v2665_v41  ;;  %v2663_v19 = vld [vmem:[%s5222_s15 + $0x68] sm:$0xff]  ;;  %v4965_v12 = vld [vmem:[%s5220_s26 + $0x40] sm:$0xff]  ;;  %v2661_v31 = vld [vmem:[%s5222_s15 + $0x58] sm:$0xff] }
 0x524   : > { %2494 = vmatpush.msra.mxu0 %v2473_v29  ;;  %3239 = vmatpush.msra.mxu3 %v2473_v29  ;;  %v2660_v26 = vld [vmem:[%s5222_s15 + $0x50] sm:$0xff]  ;;  %v2659_v58 = vld [vmem:[%s5222_s15 + $0x48] sm:$0xff]  ;;  %v2658_v43 = vld [vmem:[%s5222_s15 + $0x40] sm:$0xff] }
 0x525   : > { %2559 = vmatpush.msra.mxu1 %v2441_v54  ;;  %2671 = vmatpush.msra.mxu2 %v2664_v56  ;;  %v2657_v47 = vld [vmem:[%s5222_s15 + $0x38] sm:$0xff]  ;;  %v2655_v49 = vld [vmem:[%s5222_s15 + $0x28] sm:$0xff]  ;;  %v2654_v18 = vld [vmem:[%s5222_s15 + $0x20] sm:$0xff] }
 0x526   : > { %2495 = vmatpush.msra.mxu0 %v2472_v50  ;;  %3240 = vmatpush.msra.mxu3 %v2472_v50  ;;  %v2463_v13 = vld [vmem:[#allocation2 + $0x38] sm:$0xff]  ;;  %v2651_v55 = vld [vmem:[%s5222_s15 + $0x8] sm:$0xff] }
 0x527   : > { %2560 = vmatpush.msra.mxu1 %v2440_v9  ;;  %2672 = vmatpush.msra.mxu2 %v2663_v19  ;;  %v2653_v30 = vld [vmem:[%s5222_s15 + $0x18] sm:$0xff] }
 0x528   : > { %2496 = vmatpush.msra.mxu0 %v2471_v15  ;;  %3241 = vmatpush.msra.mxu3 %v2471_v15 }
 0x529   : > { %2561 = vmatpush.msra.mxu1 %v2439_v60  ;;  %2673 = vmatpush.msra.mxu2 %v2662_v2 }
 0x52a   : > { %2497 = vmatpush.msra.mxu0 %v2470_v25  ;;  %3242 = vmatpush.msra.mxu3 %v2470_v25 }
 0x52b   : > { %2562 = vmatpush.msra.mxu1 %v2438_v7  ;;  %2674 = vmatpush.msra.mxu2 %v2661_v31 }
 0x52c   : > { %2498 = vmatpush.msra.mxu0 %v2469_v3  ;;  %3243 = vmatpush.msra.mxu3 %v2469_v3 }
 0x52d   : > { %2563 = vmatpush.msra.mxu1 %v2437_v20  ;;  %2675 = vmatpush.msra.mxu2 %v2660_v26 }
 0x52e   : > { %2499 = vmatpush.msra.mxu0 %v2468_v59  ;;  %3244 = vmatpush.msra.mxu3 %v2468_v59 }
 0x52f   : > { %2564 = vmatpush.msra.mxu1 %v2436_v52  ;;  %2500 = vmatmul.f32.vlgmr.msra.gmra.mxu0 %v2452_v17 }
 0x530   : > { %2536 = vmatmul.f32.vlgmr.msra.gmra.mxu3 %v2464_v32  ;;  %2565 = vmatmul.f32.vlgmr.msra.gmra.mxu1 %v4872_v14 }
 0x531   : > { %3245 = vmatpush.msrb.mxu3 %v4752_v1  ;;  %v2461_v1 = vld [vmem:[#allocation2 + $0x20] sm:$0xff]  ;;  %2676 = vmatpush.msra.mxu2 %v2659_v58 }
 0x533   : > { %3246 = vmatpush.msrb.mxu3 %v4760_v27  ;;  %v4983_v27 = vld [vmem:[%s5220_s26 + $0x48] sm:$0xff]  ;;  %2677 = vmatpush.msra.mxu2 %v2658_v43 }
 0x535   : > { %3247 = vmatpush.msrb.mxu3 %v4769_v35  ;;  %v2656_v35 = vld [vmem:[%s5222_s15 + $0x30] sm:$0xff]  ;;  %2678 = vmatpush.msra.mxu2 %v2657_v47 }
 0x537   : > { %3248 = vmatpush.msrb.mxu3 %v4778_v57  ;;  %2503 = vmatmul.f32.gmra.mxu0 %v2453_v23  ;;  %v2462_v57 = vld [vmem:[#allocation2 + $0x10] sm:$0xff] }
 0x538   : > { %2539 = vmatmul.f32.gmra.mxu3 %v2465_v40  ;;  %2568 = vmatmul.f32.gmra.mxu1 %v4881_v46 }
 0x539   : > { %3249 = vmatpush.msrb.mxu3 %v4787_v39  ;;  %2679 = vmatpush.msra.mxu2 %v2656_v35  ;;  %v5001_v39 = vld [vmem:[%s5220_s26 + $0x50] sm:$0xff] }
 0x53b   : > { %3250 = vmatpush.msrb.mxu3 %v4796_v0  ;;  %2680 = vmatpush.msra.mxu2 %v2655_v49  ;;  %v5007_v0 = vld [vmem:[%s5220_s26 + $0x58] sm:$0xff] }
 0x53d   : > { %3251 = vmatpush.msrb.mxu3 %v4805_v21  ;;  %2681 = vmatpush.msra.mxu2 %v2654_v18  ;;  %v2652_v21 = vld [vmem:[%s5222_s15 + $0x10] sm:$0xff] }
 0x53f   : > { %3252 = vmatpush.msrb.mxu3 %v4814_v37  ;;  %2506 = vmatmul.f32.gmra.mxu0 %v2454_v28  ;;  %v2650_v37 = vld [vmem:[%s5222_s15] sm:$0xff] }
 0x540   : > { %2542 = vmatmul.f32.gmra.mxu3 %v2466_v44  ;;  %2571 = vmatmul.f32.gmra.mxu1 %v4891_v42 }
 0x541   : > { %3253 = vmatpush.msrb.mxu3 %v4823_v4  ;;  %2682 = vmatpush.msra.mxu2 %v2653_v30  ;;  %v5025_v4 = vld [vmem:[%s5223_s2] ss:$0 sm:$0xff] }
 0x543   : > { %3254 = vmatpush.msrb.mxu3 %v2442_v63  ;;  %2683 = vmatpush.msra.mxu2 %v2652_v21 }
 0x545   : > { %3255 = vmatpush.msrb.mxu3 %v2441_v54  ;;  %2684 = vmatpush.msra.mxu2 %v2651_v55 }
 0x547   : > { %3256 = vmatpush.msrb.mxu3 %v2440_v9  ;;  %2509 = vmatmul.f32.gmra.mxu0 %v2455_v5 }
 0x548   : > { %2545 = vmatmul.f32.gmra.mxu3 %v2467_v45  ;;  %2574 = vmatmul.f32.gmra.mxu1 %v4899_v36 }
 0x549   : > { %3257 = vmatpush.msrb.mxu3 %v2439_v60  ;;  %2685 = vmatpush.msra.mxu2 %v2650_v37 }
 0x54b   : > { %3258 = vmatpush.msrb.mxu3 %v2438_v7 }
 0x54d   : > { %3259 = vmatpush.msrb.mxu3 %v2437_v20 }
 0x54f   : > { %3260 = vmatpush.msrb.mxu3 %v2436_v52  ;;  %2512 = vmatmul.f32.gmra.mxu0 %v2456_v62 }
 0x550   : > { %2577 = vmatmul.f32.gmra.mxu1 %v4905_v38  ;;  %2601 = vmatmul.f32.vlgmr.msrb.gmra.mxu3 %v4910_v53 }
 0x551   : > { %3261 = vmatpush.msra.mxu3 %v2665_v41 }
 0x553   : > { %3262 = vmatpush.msra.mxu3 %v2664_v56 }
 0x555   : > { %3263 = vmatpush.msra.mxu3 %v2663_v19 }
 0x557   : > { %2515 = vmatmul.f32.gmra.mxu0 %v2457_v34  ;;  %3264 = vmatpush.msra.mxu3 %v2662_v2 }
 0x558   : > { %2580 = vmatmul.f32.gmra.mxu1 %v4917_v8  ;;  %2604 = vmatmul.f32.gmra.mxu3 %v4922_v22 }
 0x559   : > { %3265 = vmatpush.msra.mxu3 %v2661_v31 }
 0x55b   : > { %3266 = vmatpush.msra.mxu3 %v2660_v26 }
 0x55d   : > { %3267 = vmatpush.msra.mxu3 %v2659_v58 }
 0x55f   : > { %2518 = vmatmul.f32.gmra.mxu0 %v2458_v61  ;;  %3268 = vmatpush.msra.mxu3 %v2658_v43 }
 0x560   : > { %2583 = vmatmul.f32.gmra.mxu1 %v4929_v16  ;;  %2607 = vmatmul.f32.gmra.mxu3 %v4934_v11 }
 0x561   : > { %3269 = vmatpush.msra.mxu3 %v2657_v47 }
 0x563   : > { %3270 = vmatpush.msra.mxu3 %v2656_v35 }
 0x565   : > { %3271 = vmatpush.msra.mxu3 %v2655_v49 }
 0x567   : > { %2521 = vmatmul.f32.gmra.mxu0 %v2459_v24  ;;  %3272 = vmatpush.msra.mxu3 %v2654_v18 }
 0x568   : > { %2586 = vmatmul.f32.gmra.mxu1 %v4941_v51  ;;  %2610 = vmatmul.f32.gmra.mxu3 %v4946_v10 }
 0x569   : > { %3273 = vmatpush.msra.mxu3 %v2653_v30 }
 0x56b   : > { %3274 = vmatpush.msra.mxu3 %v2652_v21 }
 0x56d   : > { %3275 = vmatpush.msra.mxu3 %v2651_v55 }
 0x56f   : > { %2524 = vmatmul.f32.gmra.mxu0 %v2460_v48  ;;  %3276 = vmatpush.msra.mxu3 %v2650_v37 }
 0x570   : > { %2589 = vmatmul.f32.gmra.mxu1 %v4965_v12 }
 0x577   : > { %2527 = vmatmul.f32.gmra.mxu0 %v2461_v1 }
 0x578   : > { %2592 = vmatmul.f32.gmra.mxu1 %v4983_v27 }
 0x57f   : > { %2530 = vmatmul.f32.gmra.mxu0 %v2462_v57 }
 0x580   : > { %2595 = vmatmul.f32.gmra.mxu1 %v5001_v39 }
 0x587   : > { %2533 = vmatmul.f32.gmra.mxu0 %v2463_v13 }
 0x588   : > { %2598 = vmatmul.f32.gmra.mxu1 %v5007_v0 }
 0x5ac   : > { %v2501_v6 = vpop.f32.mrf.mxu0 }
 0x5ad   : > { %v2566_v33 = vpop.f32.mrf.mxu1 }
 0x5ae   : > { %v2567_v63 = vadd.f32 %v2566_v33, %v2501_v6 }
 0x5b0   : > { %v2618_v29 = vadd.f32 %v5025_v4, %v2567_v63 }
 0x5b2   : > { %v2634_v54 = vmax.f32 %v2618_v29, 0.0 }
 0x5b3   : > { %v2537_v50 = vpop.f32.mrf.mxu3 }
 0x5b4   : > { %2686 = vmatmul.f32.vlgmr.msra.gmra.mxu2 %v2634_v54  ;;  %v2504_v9 = vpop.f32.mrf.mxu0 }
 0x5b5   : > { %v2569_v15 = vpop.f32.mrf.mxu1 }
 0x5b6   : > { %v2570_v60 = vadd.f32 %v2569_v15, %v2504_v9 }
 0x5b8   : > { %v2619_v25 = vadd.f32 %v5025_v4, %v2570_v60 }
 0x5ba   : > { %v2635_v7 = vmax.f32 %v2619_v25, 0.0 }
 0x5bb   : > { %v2540_v3 = vpop.f32.mrf.mxu3 }
 0x5bc   : > { %2689 = vmatmul.f32.gmra.mxu2 %v2635_v7  ;;  %v2507_v20 = vpop.f32.mrf.mxu0 }
 0x5bd   : > { %v2572_v59 = vpop.f32.mrf.mxu1 }
 0x5be   : > { %v2573_v52 = vadd.f32 %v2572_v59, %v2507_v20 }
 0x5c0   : > { %v2620_v17 = vadd.f32 %v5025_v4, %v2573_v52 }
 0x5c2   : > { %v2636_v32 = vmax.f32 %v2620_v17, 0.0 }
 0x5c3   : > { %v2543_v23 = vpop.f32.mrf.mxu3 }
 0x5c4   : > { %2692 = vmatmul.f32.gmra.mxu2 %v2636_v32  ;;  %v2510_v40 = vpop.f32.mrf.mxu0 }
 0x5c5   : > { %v2575_v28 = vpop.f32.mrf.mxu1 }
 0x5c6   : > { %v2576_v44 = vadd.f32 %v2575_v28, %v2510_v40 }
 0x5c8   : > { %v2621_v5 = vadd.f32 %v5025_v4, %v2576_v44 }
 0x5ca   : > { %v2637_v45 = vmax.f32 %v2621_v5, 0.0 }
 0x5cb   : > { %v2546_v62 = vpop.f32.mrf.mxu3 }
 0x5cc   : > { %2695 = vmatmul.f32.gmra.mxu2 %v2637_v45  ;;  %v2513_v34 = vpop.f32.mrf.mxu0 }
 0x5cd   : > { %v2578_v61 = vpop.f32.mrf.mxu1 }
 0x5ce   : > { %v2579_v24 = vadd.f32 %v2578_v61, %v2513_v34 }
 0x5d0   : > { %v2622_v41 = vadd.f32 %v5025_v4, %v2579_v24 }
 0x5d2   : > { %v2638_v56 = vmax.f32 %v2622_v41, 0.0 }
 0x5d3   : > { %v2602_v19 = vpop.f32.mrf.mxu3 }
 0x5d4   : > { %v2603_v48 = vadd.f32 %v2602_v19, %v2537_v50  ;;  %2698 = vmatmul.f32.gmra.mxu2 %v2638_v56  ;;  %v2516_v2 = vpop.f32.mrf.mxu0 }
 0x5d5   : > { %v2581_v31 = vpop.f32.mrf.mxu1 }
 0x5d6   : > { %v2630_v26 = vadd.f32 %v5025_v4, %v2603_v48  ;;  %v2582_v58 = vadd.f32 %v2581_v31, %v2516_v2 }
 0x5d8   : > { %v2646_v1 = vmax.f32 %v2630_v26, 0.0  ;;  %v2623_v43 = vadd.f32 %v5025_v4, %v2582_v58  ;;  %v5044_v26 = vstv %s2735_s18  ;;  %v5049_v58 = vld [vmem:[%s5224_s14] ss:$0 sm:$0xff] }
 0x5da   : > { %2722 = vmatmul.f32.vlgmr.msra.gmra.mxu3 %v2646_v1  ;;  %v2639_v47 = vmax.f32 %v2623_v43, 0.0  ;;  %v2737_v1 = vmul.f32 %v5044_v26, %v4872_v14 }
 0x5db   : > { %v2605_v35 = vpop.f32.mrf.mxu3 }
 0x5dc   : > { %v2606_v49 = vadd.f32 %v2605_v35, %v2540_v3  ;;  %2701 = vmatmul.f32.gmra.mxu2 %v2639_v47  ;;  %v2519_v57 = vpop.f32.mrf.mxu0 }
 0x5dd   : > { %v2584_v18 = vpop.f32.mrf.mxu1 }
 0x5de   : > { %v2585_v13 = vadd.f32 %v2584_v18, %v2519_v57  ;;  %v2631_v30 = vadd.f32 %v5025_v4, %v2606_v49 }
 0x5e0   : > { %v2647_v21 = vmax.f32 %v2631_v30, 0.0  ;;  %v2624_v55 = vadd.f32 %v5025_v4, %v2585_v13  ;;  %v2739_v13 = vmul.f32 %v5044_v26, %v4891_v42 }
 0x5e2   : > { %2725 = vmatmul.f32.gmra.mxu3 %v2647_v21  ;;  %v2640_v37 = vmax.f32 %v2624_v55, 0.0  ;;  %v2740_v55 = vmul.f32 %v5044_v26, %v4899_v36  ;;  %v2742_v36 = vmul.f32 %v5044_v26, %v4917_v8 }
 0x5e3   : > { %v2608_v6 = vpop.f32.mrf.mxu3 }
 0x5e4   : > { %v2609_v33 = vadd.f32 %v2608_v6, %v2543_v23  ;;  %2704 = vmatmul.f32.gmra.mxu2 %v2640_v37  ;;  %v2522_v63 = vpop.f32.mrf.mxu0 }
 0x5e5   : > { %v2587_v29 = vpop.f32.mrf.mxu1 }
 0x5e6   : > { %v2588_v54 = vadd.f32 %v2587_v29, %v2522_v63  ;;  %v2632_v50 = vadd.f32 %v5025_v4, %v2609_v33  ;;  %v2741_v33 = vmul.f32 %v5044_v26, %v4905_v38 }
 0x5e8   : > { %v2648_v9 = vmax.f32 %v2632_v50, 0.0  ;;  %v2625_v15 = vadd.f32 %v5025_v4, %v2588_v54  ;;  %v2749_v54 = vmul.f32 %v5044_v26, %v4910_v53  ;;  %v2743_v53 = vmul.f32 %v5044_v26, %v4929_v16 }
 0x5ea   : > { %2728 = vmatmul.f32.gmra.mxu3 %v2648_v9  ;;  %v2641_v60 = vmax.f32 %v2625_v15, 0.0 }
 0x5eb   : > { %v2611_v25 = vpop.f32.mrf.mxu3 }
 0x5ec   : > { %v2612_v7 = vadd.f32 %v2611_v25, %v2546_v62  ;;  %2707 = vmatmul.f32.gmra.mxu2 %v2641_v60  ;;  %v2525_v3 = vpop.f32.mrf.mxu0 }
 0x5ed   : > { %v2590_v20 = vpop.f32.mrf.mxu1 }
 0x5ee   : > { %v2591_v59 = vadd.f32 %v2590_v20, %v2525_v3  ;;  %v2633_v52 = vadd.f32 %v5025_v4, %v2612_v7  ;;  %v2750_v7 = vmul.f32 %v5044_v26, %v4922_v22  ;;  %v2744_v22 = vmul.f32 %v5044_v26, %v4941_v51 }
 0x5f0   : > { %v2649_v17 = vmax.f32 %v2633_v52, 0.0  ;;  %v2626_v32 = vadd.f32 %v5025_v4, %v2591_v59 }
 0x5f2   : > { %2731 = vmatmul.f32.gmra.mxu3 %v2649_v17  ;;  %v2642_v23 = vmax.f32 %v2626_v32, 0.0  ;;  %v2751_v32 = vmul.f32 %v5044_v26, %v4934_v11  ;;  %v2745_v11 = vmul.f32 %v5044_v26, %v4965_v12  ;;  %v2747_v12 = vmul.f32 %v5044_v26, %v5001_v39 }
 0x5f4   : > { %2710 = vmatmul.f32.gmra.mxu2 %v2642_v23  ;;  %v2528_v40 = vpop.f32.mrf.mxu0 }
 0x5f5   : > { %v2593_v28 = vpop.f32.mrf.mxu1 }
 0x5f6   : > { %v2594_v44 = vadd.f32 %v2593_v28, %v2528_v40 }
 0x5f8   : > { %v2627_v5 = vadd.f32 %v5025_v4, %v2594_v44 }
 0x5fa   : > { %v2643_v45 = vmax.f32 %v2627_v5, 0.0 }
 0x5fc   : > { %2713 = vmatmul.f32.gmra.mxu2 %v2643_v45  ;;  %v2531_v62 = vpop.f32.mrf.mxu0  ;;  %v2752_v45 = vmul.f32 %v5044_v26, %v4946_v10 }
 0x5fd   : > { %v2596_v34 = vpop.f32.mrf.mxu1 }
 0x5fe   : > { %v2597_v61 = vadd.f32 %v2596_v34, %v2531_v62 }
 0x600   : > { %v2628_v24 = vadd.f32 %v5025_v4, %v2597_v61 }
 0x602   : > { %v2644_v41 = vmax.f32 %v2628_v24, 0.0 }
 0x604   : > { %2716 = vmatmul.f32.gmra.mxu2 %v2644_v41  ;;  %v2534_v56 = vpop.f32.mrf.mxu0 }
 0x605   : > { %v2599_v19 = vpop.f32.mrf.mxu1 }
 0x606   : > { %v2600_v48 = vadd.f32 %v2599_v19, %v2534_v56  ;;  %v2746_v56 = vmul.f32 %v5044_v26, %v4983_v27 }
 0x608   : > { %v2629_v2 = vadd.f32 %v5025_v4, %v2600_v48  ;;  %v2738_v4 = vmul.f32 %v5044_v26, %v4881_v46 }
 0x60a   : > { %v2645_v31 = vmax.f32 %v2629_v2, 0.0 }
 0x60c   : > { %2719 = vmatmul.f32.gmra.mxu2 %v2645_v31 }
 0x637   : > { %v2687_v43 = vpop.f32.mrf.mxu2 }
 0x638   : > { %v2688_v47 = vadd.f32 %v5049_v58, %v2687_v43  ;;  %v2748_v43 = vmul.f32 %v5044_v26, %v5007_v0 }
 0x63a   : > { %v2753_v35 = vadd.f32 %v2737_v1, %v2688_v47 }
 0x63c   : > { %2769 = vst [vmem:[#allocation11] sm:$0xff] %v2753_v35 }
 0x63f   : > { %v2690_v49 = vpop.f32.mrf.mxu2 }
 0x640   : > { %v2691_v57 = vadd.f32 %v5049_v58, %v2690_v49 }
 0x642   : > { %v2754_v18 = vadd.f32 %v2738_v4, %v2691_v57 }
 0x644   : > { %2770 = vst [vmem:[#allocation11 + $0x8] sm:$0xff] %v2754_v18 }
 0x647   : > { %v2693_v30 = vpop.f32.mrf.mxu2 }
 0x648   : > { %v2694_v21 = vadd.f32 %v5049_v58, %v2693_v30 }
 0x64a   : > { %v2755_v14 = vadd.f32 %v2739_v13, %v2694_v21 }
 0x64c   : > { %2771 = vst [vmem:[#allocation11 + $0x10] sm:$0xff] %v2755_v14 }
 0x64f   : > { %v2696_v37 = vpop.f32.mrf.mxu2 }
 0x650   : > { %v2697_v6 = vadd.f32 %v5049_v58, %v2696_v37 }
 0x652   : > { %v2756_v46 = vadd.f32 %v2740_v55, %v2697_v6 }
 0x654   : > { %2772 = vst [vmem:[#allocation11 + $0x18] sm:$0xff] %v2756_v46 }
 0x657   : > { %v2699_v63 = vpop.f32.mrf.mxu2 }
 0x658   : > { %v2700_v29 = vadd.f32 %v5049_v58, %v2699_v63 }
 0x65a   : > { %v2757_v42 = vadd.f32 %v2741_v33, %v2700_v29 }
 0x65c   : > { %2773 = vst [vmem:[#allocation11 + $0x20] sm:$0xff] %v2757_v42 }
 0x65d   : > { %v2723_v50 = vpop.f32.mrf.mxu3 }
 0x65e   : > { %v2724_v9 = vadd.f32 %v5049_v58, %v2723_v50 }
 0x65f   : > { %v2702_v15 = vpop.f32.mrf.mxu2 }
 0x660   : > { %v2765_v60 = vadd.f32 %v2749_v54, %v2724_v9  ;;  %v2703_v25 = vadd.f32 %v5049_v58, %v2702_v15 }
 0x662   : > { %2781 = vst [vmem:[#allocation11 + $0x60] sm:$0xff] %v2765_v60  ;;  %v2758_v38 = vadd.f32 %v2742_v36, %v2703_v25 }
 0x664   : > { %2774 = vst [vmem:[#allocation11 + $0x28] sm:$0xff] %v2758_v38 }
 0x665   : > { %v2726_v3 = vpop.f32.mrf.mxu3 }
 0x666   : > { %v2727_v20 = vadd.f32 %v5049_v58, %v2726_v3 }
 0x667   : > { %v2705_v59 = vpop.f32.mrf.mxu2 }
 0x668   : > { %v2766_v8 = vadd.f32 %v2750_v7, %v2727_v20  ;;  %v2706_v52 = vadd.f32 %v5049_v58, %v2705_v59 }
 0x66a   : > { %2782 = vst [vmem:[#allocation11 + $0x68] sm:$0xff] %v2766_v8  ;;  %v2759_v17 = vadd.f32 %v2743_v53, %v2706_v52 }
 0x66c   : > { %2775 = vst [vmem:[#allocation11 + $0x30] sm:$0xff] %v2759_v17 }
 0x66d   : > { %v2729_v23 = vpop.f32.mrf.mxu3 }
 0x66e   : > { %v2730_v40 = vadd.f32 %v5049_v58, %v2729_v23 }
 0x66f   : > { %v2708_v28 = vpop.f32.mrf.mxu2 }
 0x670   : > { %v2767_v16 = vadd.f32 %v2751_v32, %v2730_v40  ;;  %v2709_v44 = vadd.f32 %v5049_v58, %v2708_v28 }
 0x672   : > { %2783 = vst [vmem:[#allocation11 + $0x70] sm:$0xff] %v2767_v16  ;;  %v2760_v5 = vadd.f32 %v2744_v22, %v2709_v44 }
 0x674   : > { %2776 = vst [vmem:[#allocation11 + $0x38] sm:$0xff] %v2760_v5 }
 0x675   : > { %v2732_v62 = vpop.f32.mrf.mxu3 }
 0x676   : > { %v2733_v34 = vadd.f32 %v5049_v58, %v2732_v62 }
 0x677   : > { %v2711_v61 = vpop.f32.mrf.mxu2 }
 0x678   : > { %v2768_v51 = vadd.f32 %v2752_v45, %v2733_v34  ;;  %v2712_v24 = vadd.f32 %v5049_v58, %v2711_v61 }
 0x67a   : > { %2784 = vst [vmem:[#allocation11 + $0x78] sm:$0xff] %v2768_v51  ;;  %v2761_v41 = vadd.f32 %v2745_v11, %v2712_v24 }
 0x67c   : > { %2777 = vst [vmem:[#allocation11 + $0x40] sm:$0xff] %v2761_v41 }
 0x67f   : > { %v2714_v19 = vpop.f32.mrf.mxu2 }
 0x680   : > { %v2715_v10 = vadd.f32 %v5049_v58, %v2714_v19 }
 0x682   : > { %v2762_v48 = vadd.f32 %v2746_v56, %v2715_v10 }
 0x684   : > { %2778 = vst [vmem:[#allocation11 + $0x48] sm:$0xff] %v2762_v48 }
 0x687   : > { %v2717_v2 = vpop.f32.mrf.mxu2 }
 0x688   : > { %v2718_v31 = vadd.f32 %v5049_v58, %v2717_v2 }
 0x68a   : > { %v2763_v1 = vadd.f32 %v2747_v12, %v2718_v31 }
 0x68c   : > { %2779 = vst [vmem:[#allocation11 + $0x50] sm:$0xff] %v2763_v1 }
 0x68f   : > { %v2720_v47 = vpop.f32.mrf.mxu2 }
 0x690   : > { %v2721_v35 = vadd.f32 %v5049_v58, %v2720_v47 }
 0x692   : > { %v2764_v27 = vadd.f32 %v2748_v43, %v2721_v35 }
 0x694   : > { %2780 = vst [vmem:[#allocation11 + $0x58] sm:$0xff] %v2764_v27 }
 0x695 PF: > { %s3164_s24 = sshll.u32 %s3629_s0, 8  ;;  %s5226_s25 = sld [smem:[#allocation35_spill]] }
 0x696   : > { %s2798_s26 = sshll.u32 %s3744_s1, 4  ;;  %s2786_s17 = scalar_lea.sflag [#allocation7], %s3712_s12  ;;  %s2799_s26 = int_to_ptr.vmem [resolvable:$true] %s2798_s26 }
 0x69b   : > { %s2797_s23 = scalar_lea.hbm %s5226_s25, %s3164_s24  ;;  %s3420_s20 = scalar_lea.hbm %s5226_s25, 512 }
 0x69c   : > { %s2800_s29 = sshll.u32 %s2797_s23, 4  ;;  %s2801_s29 = int_to_ptr.hbm [resolvable:$true] %s2800_s29 }
 0x69d   : > { %s3414_s27 = sshra.s32 %s2801_s29, 4  ;;  %s3415_s27 = int_to_ptr.hbm [resolvable:$true] %s3414_s27 }
 0x69e   : > { %s3416_s2 = scalar_lea.hbm %s3415_s27, 256  ;;  %p3421_p7 = scmp.lt.s32.totalorder %s3415_s27, %s5226_s25 }
 0x69f   : > { %p3417_p0 = scmp.ne.s32.totalorder %s3415_s27, %s3416_s2  ;;  %p3422_p9 = scmp.lt.s32.totalorder %s3420_s20, %s3416_s2 }
 0x6a1   : > { %p3418_p8 = pnand %p3417_p0, %p3662_p11  ;;  %p3423_p10 = por %p3422_p9, %p3421_p7 }
 0x6a3   : > { %p3419_p5 = pneg %p3418_p8 }
 0x6a5   : > { %p3424_p2 = pnand %p3423_p10, %p3419_p5 }
 0x6a7   : > { %3427 = shalt.err (!%p3424_p2)
}
 0x6a8   : > { %s3510_s12 = smov 128   ;;  %s3511_s1 = smov 8  }
 0x6a9   : > { %3283 = dma.vmem_to_hbm [thread:$0]  (%p3662_p11), %s2799_s26, 4096, %s2801_s29, %s2786_s17, %s3510_s12, %s3510_s12, %s3511_s1  }
 0x6aa   : > { %s3512_s24 = smov [#allocation11]   ;;  %s5227_s18 = sld [smem:[#allocation36_spill]] }
 0x6ab   : > { %s2812_s22 = sshll.u32 %s3512_s24, 4  ;;  %p5228_p3 = scmp.eq.s32.totalorder %s3629_s0, 1  ;;  %s2813_s22 = int_to_ptr.vmem [resolvable:$true] %s2812_s22 }
 0x6ad   : > { %p5229_p4 = pmov %p5228_p3 }
 0x6b0   : > { %s2814_s30 = sshll.u32 %s5227_s18, 4  ;;  %s2815_s30 = int_to_ptr.hbm [resolvable:$true] %s2814_s30 }
 0x6b1   : > { %3285 = dma.vmem_to_hbm [thread:$0]  (%p5228_p3), %s2813_s22, 2048, %s2815_s30, [#allocation12], %s3510_s12, %s3510_s12, %s3511_s1  }
 0x6b2   : > { %3481 = dma.done.wait (%p5229_p4), [#allocation12], 2048   ;;  %p5230_p13 = pmov %p5228_p3 }
 0x6b4   : > { %3483 = vsyncadd (%p5230_p13), [#allocation12], 4294965248 }
 0x6b5 PF: > { %s5231_s3 = sld [smem:[#allocation17_spill]] }
 0x6b6   : > { %s5233_s19 = sld [smem:[#allocation19_spill]] }
 0x6bb   : > { %s2834_s26 = sand.u32 1, %s5231_s3  }
 0x6bc   : > { %p5234_p11 = scmp.ge.s32.totalorder %s5233_s19, 2  ;;  %s2835_s29 = scalar_lea.sflag [#allocation7], %s2834_s26 }
 0x6be   : > { %p3298_p6 = pnand %p5234_p11, %p3666_p12 }
 0x6c0   : > { %p3299_p1 = pneg %p3298_p6 }
 0x6c2   : > { %3485 = dma.done.wait (%p3299_p1), %s2835_s29, 4096  }
 0x6c3   : > { %3487 = vsyncadd (%p3299_p1), %s2835_s29, 4294963200  ;;  %s5235_s30 = sld [smem:[#allocation20_spill]]  ;;  %s5238_s27 = smov %s3494_s28 }
 0x6c4   : > { %s5236_s17 = sld [smem:[#allocation18_spill]] }
 0x6c5   : > { %s5237_s29 = sld [smem:[#allocation21_spill]] }
 0x6c9   : > { %p34_p0 = scmp.ge.s32.totalorder %s5235_s30, 4  }
 0x6ca   : > { %s5239_s28 = smov %s5236_s17 }
 0x6cb   :  { %36 = sbr.rel (!%p34_p0) target bundleno = 18 (0x12), region = 163 }
 0x6d0   :  { %2841 = vsyncpa [#allocation6], 1 }
 0x6d1   :  { %2843 = vsyncpa [#allocation6 + $0x1], 1 }
 0x6d2   :  { %2844 = vsyncpa [#allocation7], 1 }
 0x6d3   :  { %2846 = vsyncpa [#allocation7 + $0x1], 1 }
 0x6d4   :  { %2847 = vsyncpa [#allocation12], 1 }
 0x6d5   :  { %2848 = vsyncpa [#allocation8], 1 }
 0x6d6   :  { %2850 = vsyncpa [#allocation8 + $0x1], 1 }

</bundles_post_ra>
